<compile_context>
chip_gen: v7x
topology: tpu7x:2x2x1
jax: 0.10.0
libtpu: 0.0.40
codegen_flags: <defaults>
</compile_context>

<pallas_src>
import math
import functools

import jax
import jax.numpy as jnp
from jax import lax
from jax.experimental import pallas as pl
from jax.experimental.pallas import tpu as pltpu

_NEG_INF = -1e30  # additive mask value (finite so online softmax never hits -inf - -inf)


def _pick_tile(dim, max_tile, granule):
    """Largest divisor of `dim` that is <= max_tile and a multiple of `granule`;
    falls back to the full dim (full-dim blocks always satisfy the (8,128) rule)."""
    if dim <= max_tile:
        return dim
    t = (max_tile // granule) * granule
    while t >= granule:
        if dim % t == 0:
            return t
        t -= granule
    return dim


# ----------------------------------------------------------------------------
# Fused multi-output projection:  [o_0 | o_1 | ...] = x @ W_cat   (no bias)
# One launch, activation read once, outputs are separate lane-dense arrays.
# ----------------------------------------------------------------------------
def _proj_kernel(x_ref, w_ref, *o_refs, d_out_each):
    y = jnp.dot(x_ref[...].astype(jnp.bfloat16), w_ref[...],
                preferred_element_type=jnp.float32)
    for i, o_ref in enumerate(o_refs):
        o_ref[...] = y[:, i * d_out_each:(i + 1) * d_out_each].astype(o_ref.dtype)


def fused_projection(x, w_cat, n_out):
    b, s, d_in = x.shape
    d_total = w_cat.shape[1]
    d_each = d_total // n_out
    rows = b * s
    tr = _pick_tile(rows, 256, 8)
    x2 = x.reshape(rows, d_in)
    kernel = functools.partial(_proj_kernel, d_out_each=d_each)
    outs = pl.pallas_call(
        kernel,
        out_shape=tuple(jax.ShapeDtypeStruct((rows, d_each), jnp.bfloat16)
                        for _ in range(n_out)),
        grid_spec=pltpu.PrefetchScalarGridSpec(
            num_scalar_prefetch=0,
            grid=(rows // tr,),
            in_specs=[
                pl.BlockSpec((tr, d_in), lambda r: (r, 0)),
                pl.BlockSpec((d_in, d_total), lambda r: (0, 0)),
            ],
            out_specs=tuple(pl.BlockSpec((tr, d_each), lambda r: (r, 0))
                            for _ in range(n_out)),
        ),
        compiler_params=pltpu.CompilerParams(dimension_semantics=("parallel",)),
    )(x2, w_cat.astype(jnp.bfloat16))
    if not isinstance(outs, (list, tuple)):
        outs = (outs,)
    return tuple(o.reshape(b, s, d_each) for o in outs)


# ----------------------------------------------------------------------------
# Generic linear:  y = x @ W (+ b) (+ relu)   grid = (row_tiles, n_tiles, k_tiles)
# bf16 MXU operands, f32 VMEM accumulator across the K axis.
# ----------------------------------------------------------------------------
def _linear_kernel(x_ref, w_ref, b_ref, o_ref, acc_ref, *, activation):
    kk = pl.program_id(2)

    @pl.when(kk == 0)
    def _init():
        acc_ref[...] = jnp.zeros_like(acc_ref)

    acc_ref[...] += jnp.dot(x_ref[...].astype(jnp.bfloat16), w_ref[...],
                            preferred_element_type=jnp.float32)

    @pl.when(kk == pl.num_programs(2) - 1)
    def _fin():
        y = acc_ref[...] + b_ref[...]
        if activation == "relu":
            y = jnp.maximum(y, 0.0)
        o_ref[...] = y.astype(o_ref.dtype)


def linear(x, w, b=None, activation=None, out_dtype=jnp.float32):
    bsz, s, d_in = x.shape
    d_out = w.shape[1]
    rows = bsz * s
    x2 = x.reshape(rows, d_in)
    b2 = (jnp.zeros((1, d_out), jnp.float32) if b is None
          else b.reshape(1, d_out).astype(jnp.float32))
    tr = _pick_tile(rows, 256, 8)
    tn = _pick_tile(d_out, 512, 128)
    tk = _pick_tile(d_in, 512, 128)
    kernel = functools.partial(_linear_kernel, activation=activation)
    y = pl.pallas_call(
        kernel,
        out_shape=jax.ShapeDtypeStruct((rows, d_out), out_dtype),
        grid_spec=pltpu.PrefetchScalarGridSpec(
            num_scalar_prefetch=0,
            grid=(rows // tr, d_out // tn, d_in // tk),
            in_specs=[
                pl.BlockSpec((tr, tk), lambda r, n, k: (r, k)),
                pl.BlockSpec((tk, tn), lambda r, n, k: (k, n)),
                pl.BlockSpec((1, tn), lambda r, n, k: (0, n)),
            ],
            out_specs=pl.BlockSpec((tr, tn), lambda r, n, k: (r, n)),
            scratch_shapes=[pltpu.VMEM((tr, tn), jnp.float32)],
        ),
        compiler_params=pltpu.CompilerParams(
            dimension_semantics=("parallel", "parallel", "arbitrary")),
    )(x2, w.astype(jnp.bfloat16), b2)
    return y.reshape(bsz, s, d_out)


# ----------------------------------------------------------------------------
# Fused second-FFN matmul + bias + residual + LayerNorm.
# grid = (row_tiles, k_tiles); d_out (= d_model) kept as one block so the LN
# row statistics can be computed in the epilogue (no extra HBM round trip).
# ----------------------------------------------------------------------------
def _linear_res_norm_kernel(x_ref, w_ref, b_ref, res_ref, g_ref, be_ref,
                            o_ref, acc_ref, *, eps):
    kk = pl.program_id(1)

    @pl.when(kk == 0)
    def _init():
        acc_ref[...] = jnp.zeros_like(acc_ref)

    acc_ref[...] += jnp.dot(x_ref[...].astype(jnp.bfloat16), w_ref[...],
                            preferred_element_type=jnp.float32)

    @pl.when(kk == pl.num_programs(1) - 1)
    def _fin():
        z = acc_ref[...] + b_ref[...] + res_ref[...]
        mean = jnp.mean(z, axis=-1, keepdims=True)
        zc = z - mean
        var = jnp.mean(zc * zc, axis=-1, keepdims=True)
        o_ref[...] = (zc * lax.rsqrt(var + eps) * g_ref[...]
                      + be_ref[...]).astype(o_ref.dtype)


def linear_residual_norm(x, w, b, residual, norm, eps=1e-5):
    bsz, s, d_in = x.shape
    d_out = w.shape[1]
    rows = bsz * s
    x2 = x.reshape(rows, d_in)
    res2 = residual.reshape(rows, d_out)
    b2 = b.reshape(1, d_out).astype(jnp.float32)
    tr = _pick_tile(rows, 256, 8)
    tk = _pick_tile(d_in, 512, 128)
    kernel = functools.partial(_linear_res_norm_kernel, eps=eps)
    y = pl.pallas_call(
        kernel,
        out_shape=jax.ShapeDtypeStruct((rows, d_out), jnp.float32),
        grid_spec=pltpu.PrefetchScalarGridSpec(
            num_scalar_prefetch=0,
            grid=(rows // tr, d_in // tk),
            in_specs=[
                pl.BlockSpec((tr, tk), lambda r, k: (r, k)),
                pl.BlockSpec((tk, d_out), lambda r, k: (k, 0)),
                pl.BlockSpec((1, d_out), lambda r, k: (0, 0)),
                pl.BlockSpec((tr, d_out), lambda r, k: (r, 0)),
                pl.BlockSpec((1, d_out), lambda r, k: (0, 0)),
                pl.BlockSpec((1, d_out), lambda r, k: (0, 0)),
            ],
            out_specs=pl.BlockSpec((tr, d_out), lambda r, k: (r, 0)),
            scratch_shapes=[pltpu.VMEM((tr, d_out), jnp.float32)],
        ),
        compiler_params=pltpu.CompilerParams(
            dimension_semantics=("parallel", "arbitrary")),
    )(x2, w.astype(jnp.bfloat16), b2, res2, norm["gamma"], norm["beta"])
    return y.reshape(bsz, s, d_out)


# ----------------------------------------------------------------------------
# Flash-style multi-head attention with fused W_O + residual + LayerNorm.
# grid = (batch, q_tiles, kv_tiles); kv is the reduction axis; online-softmax
# state lives in VMEM scratch; W_O is applied once as a single K=d_model matmul
# in the finalize; causal kv tiles above the diagonal are skipped.
# ----------------------------------------------------------------------------
def _attn_kernel(q_ref, k_ref, v_ref, bias_ref, wo_ref, res_ref, g_ref, be_ref,
                 o_ref, m_ref, l_ref, acc_ref,
                 *, num_heads, d_head, causal, tq, tk, eps):
    qi = pl.program_id(1)
    ki = pl.program_id(2)

    @pl.when(ki == 0)
    def _init():
        m_ref[...] = jnp.full_like(m_ref, _NEG_INF)
        l_ref[...] = jnp.zeros_like(l_ref)
        acc_ref[...] = jnp.zeros_like(acc_ref)

    def _compute():
        # Additive key bias for this kv tile (0.0 = valid, -1e30 = padded key).
        bias = bias_ref[0]                                        # (1, tk) f32
        if causal:
            q_idx = qi * tq + lax.broadcasted_iota(jnp.int32, (tq, tk), 0)
            k_idx = ki * tk + lax.broadcasted_iota(jnp.int32, (tq, tk), 1)
            bias = bias + jnp.where(q_idx >= k_idx, 0.0, _NEG_INF).astype(jnp.float32)

        for h in range(num_heads):                                # static unroll
            lo = h * d_head
            hi = lo + d_head
            q_h = q_ref[0, :, lo:hi]                              # (tq, dh) bf16, Q pre-scaled
            k_h = k_ref[0, :, lo:hi]                              # (tk, dh) bf16
            v_h = v_ref[0, :, lo:hi]                              # (tk, dh) bf16

            # scores = Q K^T without materializing a transpose of K.
            s = lax.dot_general(q_h, k_h, (((1,), (1,)), ((), ())),
                                preferred_element_type=jnp.float32)   # (tq, tk)
            s = s + bias

            m_prev = m_ref[h]                                     # (tq, 1)
            m_new = jnp.maximum(m_prev, jnp.max(s, axis=-1, keepdims=True))
            alpha = jnp.exp(m_prev - m_new)
            p = jnp.exp(s - m_new)
            l_ref[h] = alpha * l_ref[h] + jnp.sum(p, axis=-1, keepdims=True)
            acc_ref[:, lo:hi] = (alpha * acc_ref[:, lo:hi]
                                 + jnp.dot(p.astype(jnp.bfloat16), v_h,
                                           preferred_element_type=jnp.float32))
            m_ref[h] = m_new

    if causal:
        # Skip kv tiles that are entirely above the diagonal (fully masked).
        pl.when(ki * tk <= qi * tq + (tq - 1))(_compute)
    else:
        _compute()

    @pl.when(ki == pl.num_programs(2) - 1)
    def _finalize():
        # Per-head 1/l broadcast across that head's lanes -> single (tq, d_model)
        # normalization, then ONE K=d_model matmul with W_O (no per-head matmuls,
        # no register-accumulated partial outputs).
        scale = jnp.concatenate(
            [jnp.broadcast_to(pl.reciprocal(l_ref[h], approx=True), (tq, d_head))
             for h in range(num_heads)], axis=-1)                 # (tq, d_model)
        attn = (acc_ref[...] * scale).astype(jnp.bfloat16)
        proj = jnp.dot(attn, wo_ref[...], preferred_element_type=jnp.float32)
        # Fused residual add + LayerNorm (the whole d_model row is already here).
        z = res_ref[0] + proj
        mean = jnp.mean(z, axis=-1, keepdims=True)
        zc = z - mean
        var = jnp.mean(zc * zc, axis=-1, keepdims=True)
        o_ref[0] = (zc * lax.rsqrt(var + eps) * g_ref[...]
                    + be_ref[...]).astype(o_ref.dtype)
        # TODO(synk): rows whose keys are ALL masked give a uniform distribution here
        # instead of PyTorch's NaN (degenerate input only).


def attention_core(q, k, v, kv_bias, residual, wo, norm, num_heads, causal,
                   eps=1e-5):
    b, s_q, d_model = q.shape
    s_kv = k.shape[1]
    d_head = d_model // num_heads
    tq = _pick_tile(s_q, 256, 8)
    tk = _pick_tile(s_kv, 256, 8)
    kernel = functools.partial(_attn_kernel, num_heads=num_heads, d_head=d_head,
                               causal=causal, tq=tq, tk=tk, eps=eps)
    return pl.pallas_call(
        kernel,
        out_shape=jax.ShapeDtypeStruct((b, s_q, d_model), jnp.float32),
        grid_spec=pltpu.PrefetchScalarGridSpec(
            num_scalar_prefetch=0,
            grid=(b, s_q // tq, s_kv // tk),
            in_specs=[
                pl.BlockSpec((1, tq, d_model), lambda bi, qi, ki: (bi, qi, 0)),
                pl.BlockSpec((1, tk, d_model), lambda bi, qi, ki: (bi, ki, 0)),
                pl.BlockSpec((1, tk, d_model), lambda bi, qi, ki: (bi, ki, 0)),
                pl.BlockSpec((1, 1, tk), lambda bi, qi, ki: (bi, 0, ki)),
                pl.BlockSpec((d_model, d_model), lambda bi, qi, ki: (0, 0)),
                pl.BlockSpec((1, tq, d_model), lambda bi, qi, ki: (bi, qi, 0)),
                pl.BlockSpec((1, d_model), lambda bi, qi, ki: (0, 0)),
                pl.BlockSpec((1, d_model), lambda bi, qi, ki: (0, 0)),
            ],
            out_specs=pl.BlockSpec((1, tq, d_model), lambda bi, qi, ki: (bi, qi, 0)),
            scratch_shapes=[
                pltpu.VMEM((num_heads, tq, 1), jnp.float32),   # running max (per head)
                pltpu.VMEM((num_heads, tq, 1), jnp.float32),   # running sum (per head)
                pltpu.VMEM((tq, d_model), jnp.float32),        # PV accumulator (concat layout)
            ],
        ),
        compiler_params=pltpu.CompilerParams(
            dimension_semantics=("parallel", "parallel", "arbitrary")),
    )(q, k, v, kv_bias, wo.astype(jnp.bfloat16), residual,
      norm["gamma"], norm["beta"])


# ----------------------------------------------------------------------------
# Layers (Python composition of Pallas kernels)
# ----------------------------------------------------------------------------
def encoder_layer(p, x, enc_bias, num_heads):
    d_model = x.shape[-1]
    d_head = d_model // num_heads
    a = p["attn"]
    scale = jnp.float32(1.0 / math.sqrt(d_head))
    # One fused projection launch; 1/sqrt(d_head) folded into W_Q once.
    w_qkv = jnp.concatenate([a["w_q"] * scale, a["w_k"], a["w_v"]], axis=1)
    q, k, v = fused_projection(x, w_qkv, 3)
    x = attention_core(q, k, v, enc_bias, residual=x, wo=a["w_o"],
                       norm=p["norm1"], num_heads=num_heads, causal=False)
    h = linear(x, p["ff"]["w1"], p["ff"]["b1"], activation="relu",
               out_dtype=jnp.bfloat16)
    return linear_residual_norm(h, p["ff"]["w2"], p["ff"]["b2"], x, p["norm2"])


def decoder_layer(p, y, enc_out, dec_bias, enc_bias, num_heads):
    d_model = y.shape[-1]
    d_head = d_model // num_heads
    scale = jnp.float32(1.0 / math.sqrt(d_head))

    a1 = p["attn1"]
    w_qkv = jnp.concatenate([a1["w_q"] * scale, a1["w_k"], a1["w_v"]], axis=1)
    q, k, v = fused_projection(y, w_qkv, 3)
    y = attention_core(q, k, v, dec_bias, residual=y, wo=a1["w_o"],
                       norm=p["norm1"], num_heads=num_heads, causal=True)

    a2 = p["attn2"]
    (q2,) = fused_projection(y, a2["w_q"] * scale, 1)
    k2, v2 = fused_projection(enc_out,
                              jnp.concatenate([a2["w_k"], a2["w_v"]], axis=1), 2)
    y = attention_core(q2, k2, v2, enc_bias, residual=y, wo=a2["w_o"],
                       norm=p["norm2"], num_heads=num_heads, causal=False)

    h = linear(y, p["ff"]["w1"], p["ff"]["b1"], activation="relu",
               out_dtype=jnp.bfloat16)
    return linear_residual_norm(h, p["ff"]["w2"], p["ff"]["b2"], y, p["norm3"])


def positional_encoding(max_len, d_model):
    pos = jnp.arange(max_len, dtype=jnp.float32)[:, None]
    exp_scale = jnp.exp(jnp.arange(0, d_model, 2, dtype=jnp.float32)
                        * (-math.log(10000.0) / d_model))
    pe = jnp.zeros((max_len, d_model), jnp.float32)
    pe = pe.at[:, 0::2].set(jnp.sin(pos * exp_scale))
    pe = pe.at[:, 1::2].set(jnp.cos(pos * exp_scale))
    return pe[None]                                                # (1, max_len, d_model)


def transformer_forward(params, enc_ids, dec_ids, *, num_heads, pad_id):
    emb = params["embedding"]
    # TODO(synk): embedding gather + positional-encoding add kept in plain JAX
    # (token gather has no tidy rectangular BlockSpec form at these sizes).
    enc_x = jnp.take(emb, enc_ids, axis=0) + params["pe_enc"][:, :enc_ids.shape[1], :]
    dec_x = jnp.take(emb, dec_ids, axis=0) + params["pe_dec"][:, :dec_ids.shape[1], :]

    enc_bias = jnp.where(enc_ids != pad_id, 0.0, _NEG_INF).astype(jnp.float32)[:, None, :]
    dec_bias = jnp.where(dec_ids != pad_id, 0.0, _NEG_INF).astype(jnp.float32)[:, None, :]

    x = enc_x
    for lp in params["encoder"]:
        x = encoder_layer(lp, x, enc_bias, num_heads)
    y = dec_x
    for lp in params["decoder"]:
        y = decoder_layer(lp, y, x, dec_bias, enc_bias, num_heads)
    return linear(y, params["w_out"], params["b_out"])


# ----------------------------------------------------------------------------
# Deterministic parameter init (xavier_uniform like the PyTorch module)
# ----------------------------------------------------------------------------
def _xavier_uniform(key, shape):
    bound = math.sqrt(6.0 / (shape[0] + shape[1]))
    return jax.random.uniform(key, shape, jnp.float32, minval=-bound, maxval=bound)


def init_params(key, d_model, num_heads, num_layers, vocab_size, enc_max_len, dec_max_len):
    d_ff = 4 * d_model
    keys = iter(jax.random.split(key, 16 * num_layers + 8))
    nk = lambda: next(keys)

    def mha():
        return {"w_q": _xavier_uniform(nk(), (d_model, d_model)),
                "w_k": _xavier_uniform(nk(), (d_model, d_model)),
                "w_v": _xavier_uniform(nk(), (d_model, d_model)),
                "w_o": _xavier_uniform(nk(), (d_model, d_model))}

    def norm():
        return {"gamma": jnp.ones((1, d_model), jnp.float32),
                "beta": jnp.zeros((1, d_model), jnp.float32)}

    def ff():
        return {"w1": _xavier_uniform(nk(), (d_model, d_ff)),
                "b1": jnp.zeros((d_ff,), jnp.float32),
                "w2": _xavier_uniform(nk(), (d_ff, d_model)),
                "b2": jnp.zeros((d_model,), jnp.float32)}

    encoder = [{"attn": mha(), "norm1": norm(), "ff": ff(), "norm2": norm()}
               for _ in range(num_layers)]
    decoder = [{"attn1": mha(), "norm1": norm(), "attn2": mha(), "norm2": norm(),
                "ff": ff(), "norm3": norm()}
               for _ in range(num_layers)]
    return {
        "embedding": jax.random.normal(nk(), (vocab_size, d_model), jnp.float32),
        "pe_enc": positional_encoding(enc_max_len, d_model),
        "pe_dec": positional_encoding(dec_max_len, d_model),
        "encoder": encoder,
        "decoder": decoder,
        "w_out": _xavier_uniform(nk(), (d_model, vocab_size)),
        "b_out": jnp.zeros((vocab_size,), jnp.float32),
    }


# ----------------------------------------------------------------------------
# Pure-JAX f32 reference (mirrors the PyTorch module)
# ----------------------------------------------------------------------------
def _ref_layer_norm(x, g, b, eps=1e-5):
    mean = jnp.mean(x, axis=-1, keepdims=True)
    var = jnp.mean((x - mean) ** 2, axis=-1, keepdims=True)
    return (x - mean) / jnp.sqrt(var + eps) * g + b


def _ref_mha(p, q_src, kv_src, kv_bias, num_heads, causal):
    b, s_q, d_model = q_src.shape
    s_kv = kv_src.shape[1]
    dh = d_model // num_heads
    Q = (q_src @ p["w_q"]).reshape(b, s_q, num_heads, dh).transpose(0, 2, 1, 3)
    K = (kv_src @ p["w_k"]).reshape(b, s_kv, num_heads, dh).transpose(0, 2, 1, 3)
    V = (kv_src @ p["w_v"]).reshape(b, s_kv, num_heads, dh).transpose(0, 2, 1, 3)
    scores = jnp.einsum("bhqd,bhkd->bhqk", Q, K) / math.sqrt(dh)
    scores = scores + kv_bias[:, :, None, :]
    if causal:
        cm = jnp.tril(jnp.ones((s_q, s_kv), jnp.float32))
        scores = jnp.where(cm[None, None] == 0, _NEG_INF, scores)
    att = jax.nn.softmax(scores, axis=-1)
    o = jnp.einsum("bhqk,bhkd->bhqd", att, V).transpose(0, 2, 1, 3).reshape(b, s_q, d_model)
    return o @ p["w_o"]


def _ref_ff(p, x):
    return jnp.maximum(x @ p["w1"] + p["b1"], 0.0) @ p["w2"] + p["b2"]


def _reference_forward(params, enc_ids, dec_ids, *, num_heads, pad_id):
    emb = params["embedding"]
    enc_x = jnp.take(emb, enc_ids, axis=0) + params["pe_enc"][:, :enc_ids.shape[1], :]
    dec_x = jnp.take(emb, dec_ids, axis=0) + params["pe_dec"][:, :dec_ids.shape[1], :]
    enc_bias = jnp.where(enc_ids != pad_id, 0.0, _NEG_INF).astype(jnp.float32)[:, None, :]
    dec_bias = jnp.where(dec_ids != pad_id, 0.0, _NEG_INF).astype(jnp.float32)[:, None, :]
    x = enc_x
    for lp in params["encoder"]:
        x = _ref_layer_norm(x + _ref_mha(lp["attn"], x, x, enc_bias, num_heads, False),
                            lp["norm1"]["gamma"], lp["norm1"]["beta"])
        x = _ref_layer_norm(x + _ref_ff(lp["ff"], x),
                            lp["norm2"]["gamma"], lp["norm2"]["beta"])
    y = dec_x
    for lp in params["decoder"]:
        y = _ref_layer_norm(y + _ref_mha(lp["attn1"], y, y, dec_bias, num_heads, True),
                            lp["norm1"]["gamma"], lp["norm1"]["beta"])
        y = _ref_layer_norm(y + _ref_mha(lp["attn2"], y, x, enc_bias, num_heads, False),
                            lp["norm2"]["gamma"], lp["norm2"]["beta"])
        y = _ref_layer_norm(y + _ref_ff(lp["ff"], y),
                            lp["norm3"]["gamma"], lp["norm3"]["beta"])
    return y @ params["w_out"] + params["b_out"]


# ----------------------------------------------------------------------------
if __name__ == "__main__":
    d_model, num_heads, num_layers = 32, 4, 2
    vocab_size, enc_max_len, dec_max_len = 64, 16, 16
    batch, enc_len, dec_len = 2, 8, 8
    pad_id = 0

    key = jax.random.PRNGKey(0)
    k_params, k_enc, k_dec = jax.random.split(key, 3)
    params = init_params(k_params, d_model, num_heads, num_layers,
                         vocab_size, enc_max_len, dec_max_len)

    enc_ids = jax.random.randint(k_enc, (batch, enc_len), 1, vocab_size)
    dec_ids = jax.random.randint(k_dec, (batch, dec_len), 1, vocab_size)
    enc_ids = enc_ids.at[0, -2:].set(pad_id)   # exercise encoder padding mask
    dec_ids = dec_ids.at[1, -3:].set(pad_id)   # exercise decoder padding mask

    fwd = jax.jit(functools.partial(transformer_forward,
                                    num_heads=num_heads, pad_id=pad_id))
    logits = jax.block_until_ready(fwd(params, enc_ids, dec_ids))

    ref = _reference_forward(params, enc_ids, dec_ids,
                             num_heads=num_heads, pad_id=pad_id)

    assert logits.shape == (batch, dec_len, vocab_size)
    assert bool(jnp.all(jnp.isfinite(logits)))
    # bf16 MXU operands vs a pure-f32 reference: check tight relative-norm error
    # plus a loose element-wise bound.
    max_err = float(jnp.max(jnp.abs(logits - ref)))
    rel_err = float(jnp.linalg.norm(logits - ref) / jnp.linalg.norm(ref))
    assert rel_err < 3e-2, f"relative error too large: {rel_err} (max_err={max_err})"
    assert jnp.allclose(logits, ref, atol=1e-1, rtol=1e-1), f"mismatch, max_err={max_err}"

    print("KERNEL_OK")
</pallas_src>

<mosaic_0001>
module attributes {stable_mosaic.version = 11 : i64} {
  func.func @_proj_kernel(%arg0: i32, %arg1: memref<16x32xf32, #tpu.memory_space<vmem>>, %arg2: memref<32x96xbf16, #tpu.memory_space<vmem>>, %arg3: memref<16x32xbf16, #tpu.memory_space<vmem>>, %arg4: memref<16x32xbf16, #tpu.memory_space<vmem>>, %arg5: memref<16x32xbf16, #tpu.memory_space<vmem>>) attributes {dimension_semantics = [#tpu.dimension_semantics<parallel>], iteration_bounds = array<i64: 1>, scalar_prefetch = 0 : i64, scratch_operands = 0 : i64, tpu.core_type = #tpu.core_type<tc>, window_params = [{transform_indices = @transform_0, window_bounds = array<i64: 16, 32>}, {pipeline_mode = #tpu.pipeline_mode<synchronous>, transform_indices = @transform_1, window_bounds = array<i64: 32, 96>}, {transform_indices = @transform_2, window_bounds = array<i64: 16, 32>}, {transform_indices = @transform_3, window_bounds = array<i64: 16, 32>}, {transform_indices = @transform_4, window_bounds = array<i64: 16, 32>}]} {
    %c0 = arith.constant 0 : index
    %c0_0 = arith.constant 0 : index
    %0 = vector.load %arg1[%c0, %c0_0] : memref<16x32xf32, #tpu.memory_space<vmem>>, vector<16x32xf32>
    %1 = arith.truncf %0 : vector<16x32xf32> to vector<16x32xbf16>
    %c0_1 = arith.constant 0 : index
    %c0_2 = arith.constant 0 : index
    %2 = vector.load %arg2[%c0_1, %c0_2] : memref<32x96xbf16, #tpu.memory_space<vmem>>, vector<32x96xbf16>
    %cst = arith.constant dense<0.000000e+00> : vector<16x96xf32>
    %3 = tpu.matmul %1, %2, %cst {dimension_numbers = #tpu.dot_dimension_numbers<[1], [0], [0], [1], [0, 0, 1, 1], [], []>} : vector<16x32xbf16>, vector<32x96xbf16>, vector<16x96xf32> -> vector<16x96xf32>
    %4 = vector.extract_strided_slice %3 {offsets = [0, 0], sizes = [16, 32], strides = [1, 1]} : vector<16x96xf32> to vector<16x32xf32>
    %5 = arith.truncf %4 : vector<16x32xf32> to vector<16x32xbf16>
    %c0_3 = arith.constant 0 : index
    %c0_4 = arith.constant 0 : index
    %6 = vector.load %arg3[%c0_3, %c0_4] : memref<16x32xbf16, #tpu.memory_space<vmem>>, vector<16x32xbf16>
    tpu.vector_store %arg3[%c0_3, %c0_4], %5 {strides = array<i32>} : memref<16x32xbf16, #tpu.memory_space<vmem>>, vector<16x32xbf16>,
    %7 = vector.extract_strided_slice %3 {offsets = [0, 32], sizes = [16, 32], strides = [1, 1]} : vector<16x96xf32> to vector<16x32xf32>
    %8 = arith.truncf %7 : vector<16x32xf32> to vector<16x32xbf16>
    %c0_5 = arith.constant 0 : index
    %c0_6 = arith.constant 0 : index
    %9 = vector.load %arg4[%c0_5, %c0_6] : memref<16x32xbf16, #tpu.memory_space<vmem>>, vector<16x32xbf16>
    tpu.vector_store %arg4[%c0_5, %c0_6], %8 {strides = array<i32>} : memref<16x32xbf16, #tpu.memory_space<vmem>>, vector<16x32xbf16>,
    %10 = vector.extract_strided_slice %3 {offsets = [0, 64], sizes = [16, 32], strides = [1, 1]} : vector<16x96xf32> to vector<16x32xf32>
    %11 = arith.truncf %10 : vector<16x32xf32> to vector<16x32xbf16>
    %c0_7 = arith.constant 0 : index
    %c0_8 = arith.constant 0 : index
    %12 = vector.load %arg5[%c0_7, %c0_8] : memref<16x32xbf16, #tpu.memory_space<vmem>>, vector<16x32xbf16>
    tpu.vector_store %arg5[%c0_7, %c0_8], %11 {strides = array<i32>} : memref<16x32xbf16, #tpu.memory_space<vmem>>, vector<16x32xbf16>,
    return
  }
  func.func @transform_0(%arg0: i32) -> (i32, i32) {
    %c0_i32 = arith.constant 0 : i32
    %c0_i32_0 = arith.constant 0 : i32
    return %arg0, %c0_i32 : i32, i32
  }
  func.func @transform_1(%arg0: i32) -> (i32, i32) {
    %c0_i32 = arith.constant 0 : i32
    %c0_i32_0 = arith.constant 0 : i32
    %c0_i32_1 = arith.constant 0 : i32
    return %c0_i32, %c0_i32_0 : i32, i32
  }
  func.func @transform_2(%arg0: i32) -> (i32, i32) {
    %c0_i32 = arith.constant 0 : i32
    %c0_i32_0 = arith.constant 0 : i32
    return %arg0, %c0_i32 : i32, i32
  }
  func.func @transform_3(%arg0: i32) -> (i32, i32) {
    %c0_i32 = arith.constant 0 : i32
    %c0_i32_0 = arith.constant 0 : i32
    return %arg0, %c0_i32 : i32, i32
  }
  func.func @transform_4(%arg0: i32) -> (i32, i32) {
    %c0_i32 = arith.constant 0 : i32
    %c0_i32_0 = arith.constant 0 : i32
    return %arg0, %c0_i32 : i32, i32
  }
}

module attributes {stable_mosaic.version = 11 : i64} {
  func.func @_proj_kernel(%arg0: i32, %arg1: memref<16x32xf32, #tpu.memory_space<vmem>>, %arg2: memref<32x32xbf16, #tpu.memory_space<vmem>>, %arg3: memref<16x32xbf16, #tpu.memory_space<vmem>>) attributes {dimension_semantics = [#tpu.dimension_semantics<parallel>], iteration_bounds = array<i64: 1>, scalar_prefetch = 0 : i64, scratch_operands = 0 : i64, tpu.core_type = #tpu.core_type<tc>, window_params = [{transform_indices = @transform_0, window_bounds = array<i64: 16, 32>}, {pipeline_mode = #tpu.pipeline_mode<synchronous>, transform_indices = @transform_1, window_bounds = array<i64: 32, 32>}, {transform_indices = @transform_2, window_bounds = array<i64: 16, 32>}]} {
    %c0 = arith.constant 0 : index
    %c0_0 = arith.constant 0 : index
    %0 = vector.load %arg1[%c0, %c0_0] : memref<16x32xf32, #tpu.memory_space<vmem>>, vector<16x32xf32>
    %1 = arith.truncf %0 : vector<16x32xf32> to vector<16x32xbf16>
    %c0_1 = arith.constant 0 : index
    %c0_2 = arith.constant 0 : index
    %2 = vector.load %arg2[%c0_1, %c0_2] : memref<32x32xbf16, #tpu.memory_space<vmem>>, vector<32x32xbf16>
    %cst = arith.constant dense<0.000000e+00> : vector<16x32xf32>
    %3 = tpu.matmul %1, %2, %cst {dimension_numbers = #tpu.dot_dimension_numbers<[1], [0], [0], [1], [0, 0, 1, 1], [], []>} : vector<16x32xbf16>, vector<32x32xbf16>, vector<16x32xf32> -> vector<16x32xf32>
    %4 = arith.truncf %3 : vector<16x32xf32> to vector<16x32xbf16>
    %c0_3 = arith.constant 0 : index
    %c0_4 = arith.constant 0 : index
    %5 = vector.load %arg3[%c0_3, %c0_4] : memref<16x32xbf16, #tpu.memory_space<vmem>>, vector<16x32xbf16>
    tpu.vector_store %arg3[%c0_3, %c0_4], %4 {strides = array<i32>} : memref<16x32xbf16, #tpu.memory_space<vmem>>, vector<16x32xbf16>,
    return
  }
  func.func @transform_0(%arg0: i32) -> (i32, i32) {
    %c0_i32 = arith.constant 0 : i32
    %c0_i32_0 = arith.constant 0 : i32
    return %arg0, %c0_i32 : i32, i32
  }
  func.func @transform_1(%arg0: i32) -> (i32, i32) {
    %c0_i32 = arith.constant 0 : i32
    %c0_i32_0 = arith.constant 0 : i32
    %c0_i32_1 = arith.constant 0 : i32
    return %c0_i32, %c0_i32_0 : i32, i32
  }
  func.func @transform_2(%arg0: i32) -> (i32, i32) {
    %c0_i32 = arith.constant 0 : i32
    %c0_i32_0 = arith.constant 0 : i32
    return %arg0, %c0_i32 : i32, i32
  }
}

module attributes {stable_mosaic.version = 11 : i64} {
  func.func @_attn_kernel(%arg0: i32, %arg1: i32, %arg2: i32, %arg3: memref<1x8x32xbf16, #tpu.memory_space<vmem>>, %arg4: memref<1x8x32xbf16, #tpu.memory_space<vmem>>, %arg5: memref<1x8x32xbf16, #tpu.memory_space<vmem>>, %arg6: memref<1x1x8xf32, #tpu.memory_space<vmem>>, %arg7: memref<32x32xbf16, #tpu.memory_space<vmem>>, %arg8: memref<1x8x32xf32, #tpu.memory_space<vmem>>, %arg9: memref<1x32xf32, #tpu.memory_space<vmem>>, %arg10: memref<1x32xf32, #tpu.memory_space<vmem>>, %arg11: memref<1x8x32xf32, #tpu.memory_space<vmem>>, %arg12: memref<4x8x1xf32, #tpu.memory_space<vmem>>, %arg13: memref<4x8x1xf32, #tpu.memory_space<vmem>>, %arg14: memref<8x32xf32, #tpu.memory_space<vmem>>) attributes {dimension_semantics = [#tpu.dimension_semantics<parallel>, #tpu.dimension_semantics<parallel>, #tpu.dimension_semantics<arbitrary>], iteration_bounds = array<i64: 2, 1, 1>, scalar_prefetch = 0 : i64, scratch_operands = 3 : i64, tpu.core_type = #tpu.core_type<tc>, window_params = [{transform_indices = @transform_0, window_bounds = array<i64: 1, 8, 32>}, {transform_indices = @transform_1, window_bounds = array<i64: 1, 8, 32>}, {transform_indices = @transform_2, window_bounds = array<i64: 1, 8, 32>}, {transform_indices = @transform_3, window_bounds = array<i64: 1, 1, 8>}, {pipeline_mode = #tpu.pipeline_mode<synchronous>, transform_indices = @transform_4, window_bounds = array<i64: 32, 32>}, {transform_indices = @transform_5, window_bounds = array<i64: 1, 8, 32>}, {pipeline_mode = #tpu.pipeline_mode<synchronous>, transform_indices = @transform_6, window_bounds = array<i64: 1, 32>}, {pipeline_mode = #tpu.pipeline_mode<synchronous>, transform_indices = @transform_7, window_bounds = array<i64: 1, 32>}, {transform_indices = @transform_8, window_bounds = array<i64: 1, 8, 32>}]} {
    %c0_i32 = arith.constant 0 : i32
    %0 = arith.cmpi eq, %arg2, %c0_i32 : i32
    %1 = arith.extui %0 : i1 to i32
    %c0_i32_0 = arith.constant 0 : i32
    %2 = arith.cmpi ne, %1, %c0_i32_0 : i32
    scf.if %2 {
      %cst = arith.constant -1.000000e+30 : f32
      %12 = vector.broadcast %cst : f32 to vector<4x8x1xf32>
      %c0 = arith.constant 0 : index
      %c0_5 = arith.constant 0 : index
      %c0_6 = arith.constant 0 : index
      %13 = vector.load %arg12[%c0, %c0_5, %c0_6] : memref<4x8x1xf32, #tpu.memory_space<vmem>>, vector<4x8x1xf32>
      tpu.vector_store %arg12[%c0, %c0_5, %c0_6], %12 {strides = array<i32>} : memref<4x8x1xf32, #tpu.memory_space<vmem>>, vector<4x8x1xf32>,
      %cst_7 = arith.constant 0.000000e+00 : f32
      %14 = vector.broadcast %cst_7 : f32 to vector<4x8x1xf32>
      %c0_8 = arith.constant 0 : index
      %c0_9 = arith.constant 0 : index
      %c0_10 = arith.constant 0 : index
      %15 = vector.load %arg13[%c0_8, %c0_9, %c0_10] : memref<4x8x1xf32, #tpu.memory_space<vmem>>, vector<4x8x1xf32>
      tpu.vector_store %arg13[%c0_8, %c0_9, %c0_10], %14 {strides = array<i32>} : memref<4x8x1xf32, #tpu.memory_space<vmem>>, vector<4x8x1xf32>,
      %cst_11 = arith.constant 0.000000e+00 : f32
      %16 = vector.broadcast %cst_11 : f32 to vector<8x32xf32>
      %c0_12 = arith.constant 0 : index
      %c0_13 = arith.constant 0 : index
      %17 = vector.load %arg14[%c0_12, %c0_13] : memref<8x32xf32, #tpu.memory_space<vmem>>, vector<8x32xf32>
      tpu.vector_store %arg14[%c0_12, %c0_13], %16 {strides = array<i32>} : memref<8x32xf32, #tpu.memory_space<vmem>>, vector<8x32xf32>,
    } else {
    }
    %c8_i32 = arith.constant 8 : i32
    %3 = arith.muli %arg2, %c8_i32 : i32
    %c8_i32_1 = arith.constant 8 : i32
    %4 = arith.muli %arg1, %c8_i32_1 : i32
    %c7_i32 = arith.constant 7 : i32
    %5 = arith.addi %4, %c7_i32 : i32
    %6 = arith.cmpi sle, %3, %5 : i32
    %7 = arith.extui %6 : i1 to i32
    %c0_i32_2 = arith.constant 0 : i32
    %8 = arith.cmpi ne, %7, %c0_i32_2 : i32
    scf.if %8 {
      %c0 = arith.constant 0 : index
      %c0_5 = arith.constant 0 : index
      %c0_6 = arith.constant 0 : index
      %12 = vector.load %arg6[%c0, %c0_5, %c0_6] : memref<1x1x8xf32, #tpu.memory_space<vmem>>, vector<1x1x8xf32>
      %13 = vector.shape_cast %12 : vector<1x1x8xf32> to vector<1x8xf32>
      %c8_i32_7 = arith.constant 8 : i32
      %14 = arith.muli %arg1, %c8_i32_7 : i32
      %15 = tpu.iota {dimensions = array<i32: 0>} : vector<8x8xi32>
      %16 = vector.broadcast %14 : i32 to vector<8x8xi32>
      %17 = arith.addi %16, %15 : vector<8x8xi32>
      %c8_i32_8 = arith.constant 8 : i32
      %18 = arith.muli %arg2, %c8_i32_8 : i32
      %19 = tpu.iota {dimensions = array<i32: 1>} : vector<8x8xi32>
      %20 = vector.broadcast %18 : i32 to vector<8x8xi32>
      %21 = arith.addi %20, %19 : vector<8x8xi32>
      %22 = arith.cmpi sge, %17, %21 : vector<8x8xi32>
      %cst = arith.constant 0.000000e+00 : f32
      %cst_9 = arith.constant -1.000000e+30 : f32
      %23 = vector.broadcast %cst : f32 to vector<8x8xf32>
      %24 = vector.broadcast %cst_9 : f32 to vector<8x8xf32>
      %25 = arith.select %22, %23, %24 : vector<8x8xi1>, vector<8x8xf32>
      %26 = vector.broadcast %13 : vector<1x8xf32> to vector<8x8xf32>
      %27 = arith.addf %26, %25 : vector<8x8xf32>
      %c0_10 = arith.constant 0 : index
      %c0_11 = arith.constant 0 : index
      %c0_12 = arith.constant 0 : index
      %28 = vector.load %arg3[%c0_10, %c0_11, %c0_12] : memref<1x8x32xbf16, #tpu.memory_space<vmem>>, vector<1x8x8xbf16>
      %29 = vector.shape_cast %28 : vector<1x8x8xbf16> to vector<8x8xbf16>
      %c0_13 = arith.constant 0 : index
      %c0_14 = arith.constant 0 : index
      %c0_15 = arith.constant 0 : index
      %30 = vector.load %arg4[%c0_13, %c0_14, %c0_15] : memref<1x8x32xbf16, #tpu.memory_space<vmem>>, vector<1x8x8xbf16>
      %31 = vector.shape_cast %30 : vector<1x8x8xbf16> to vector<8x8xbf16>
      %c0_16 = arith.constant 0 : index
      %c0_17 = arith.constant 0 : index
      %c0_18 = arith.constant 0 : index
      %32 = vector.load %arg5[%c0_16, %c0_17, %c0_18] : memref<1x8x32xbf16, #tpu.memory_space<vmem>>, vector<1x8x8xbf16>
      %33 = vector.shape_cast %32 : vector<1x8x8xbf16> to vector<8x8xbf16>
      %cst_19 = arith.constant dense<0.000000e+00> : vector<8x8xf32>
      %34 = tpu.matmul %29, %31, %cst_19 {dimension_numbers = #tpu.dot_dimension_numbers<[1], [1], [0], [0], [0, 0, 1, 0], [], []>} : vector<8x8xbf16>, vector<8x8xbf16>, vector<8x8xf32> -> vector<8x8xf32>
      %35 = arith.addf %34, %27 : vector<8x8xf32>
      %c0_20 = arith.constant 0 : index
      %c0_21 = arith.constant 0 : index
      %c0_22 = arith.constant 0 : index
      %36 = vector.load %arg12[%c0_20, %c0_21, %c0_22] : memref<4x8x1xf32, #tpu.memory_space<vmem>>, vector<1x8x1xf32>
      %37 = vector.shape_cast %36 : vector<1x8x1xf32> to vector<8x1xf32>
      %cst_23 = arith.constant dense<0xFF800000> : vector<8xf32>
      %38 = vector.multi_reduction <maximumf>, %35, %cst_23 [1] : vector<8x8xf32> to vector<8xf32>
      %39 = vector.shape_cast %38 : vector<8xf32> to vector<8x1xf32>
      %40 = arith.maximumf %37, %39 : vector<8x1xf32>
      %41 = arith.subf %37, %40 : vector<8x1xf32>
      %42 = math.exp %41 : vector<8x1xf32>
      %43 = vector.broadcast %40 : vector<8x1xf32> to vector<8x8xf32>
      %44 = arith.subf %35, %43 : vector<8x8xf32>
      %45 = math.exp %44 : vector<8x8xf32>
      %c0_24 = arith.constant 0 : index
      %c0_25 = arith.constant 0 : index
      %c0_26 = arith.constant 0 : index
      %46 = vector.load %arg13[%c0_24, %c0_25, %c0_26] : memref<4x8x1xf32, #tpu.memory_space<vmem>>, vector<1x8x1xf32>
      %47 = vector.shape_cast %46 : vector<1x8x1xf32> to vector<8x1xf32>
      %48 = arith.mulf %42, %47 : vector<8x1xf32>
      %cst_27 = arith.constant dense<0.000000e+00> : vector<8xf32>
      %49 = vector.multi_reduction <add>, %45, %cst_27 [1] : vector<8x8xf32> to vector<8xf32>
      %50 = vector.shape_cast %49 : vector<8xf32> to vector<8x1xf32>
      %51 = arith.addf %48, %50 : vector<8x1xf32>
      %c0_28 = arith.constant 0 : index
      %c0_29 = arith.constant 0 : index
      %c0_30 = arith.constant 0 : index
      %52 = vector.load %arg13[%c0_28, %c0_29, %c0_30] : memref<4x8x1xf32, #tpu.memory_space<vmem>>, vector<1x8x1xf32>
      %53 = vector.shape_cast %52 : vector<1x8x1xf32> to vector<8x1xf32>
      %54 = vector.shape_cast %51 : vector<8x1xf32> to vector<1x8x1xf32>
      tpu.vector_store %arg13[%c0_28, %c0_29, %c0_30], %54 {strides = array<i32>} : memref<4x8x1xf32, #tpu.memory_space<vmem>>, vector<1x8x1xf32>,
      %c0_31 = arith.constant 0 : index
      %c0_32 = arith.constant 0 : index
      %55 = vector.load %arg14[%c0_31, %c0_32] : memref<8x32xf32, #tpu.memory_space<vmem>>, vector<8x8xf32>
      %56 = vector.broadcast %42 : vector<8x1xf32> to vector<8x8xf32>
      %57 = arith.mulf %56, %55 : vector<8x8xf32>
      %58 = arith.truncf %45 : vector<8x8xf32> to vector<8x8xbf16>
      %cst_33 = arith.constant dense<0.000000e+00> : vector<8x8xf32>
      %59 = tpu.matmul %58, %33, %cst_33 {dimension_numbers = #tpu.dot_dimension_numbers<[1], [0], [0], [1], [0, 0, 1, 1], [], []>} : vector<8x8xbf16>, vector<8x8xbf16>, vector<8x8xf32> -> vector<8x8xf32>
      %60 = arith.addf %57, %59 : vector<8x8xf32>
      %c0_34 = arith.constant 0 : index
      %c0_35 = arith.constant 0 : index
      %61 = vector.load %arg14[%c0_34, %c0_35] : memref<8x32xf32, #tpu.memory_space<vmem>>, vector<8x8xf32>
      tpu.vector_store %arg14[%c0_34, %c0_35], %60 {strides = array<i32>} : memref<8x32xf32, #tpu.memory_space<vmem>>, vector<8x8xf32>,
      %c0_36 = arith.constant 0 : index
      %c0_37 = arith.constant 0 : index
      %c0_38 = arith.constant 0 : index
      %62 = vector.load %arg12[%c0_36, %c0_37, %c0_38] : memref<4x8x1xf32, #tpu.memory_space<vmem>>, vector<1x8x1xf32>
      %63 = vector.shape_cast %62 : vector<1x8x1xf32> to vector<8x1xf32>
      %64 = vector.shape_cast %40 : vector<8x1xf32> to vector<1x8x1xf32>
      tpu.vector_store %arg12[%c0_36, %c0_37, %c0_38], %64 {strides = array<i32>} : memref<4x8x1xf32, #tpu.memory_space<vmem>>, vector<1x8x1xf32>,
      %c0_39 = arith.constant 0 : index
      %c0_40 = arith.constant 0 : index
      %c8 = arith.constant 8 : index
      %65 = vector.load %arg3[%c0_39, %c0_40, %c8] : memref<1x8x32xbf16, #tpu.memory_space<vmem>>, vector<1x8x8xbf16>
      %66 = vector.shape_cast %65 : vector<1x8x8xbf16> to vector<8x8xbf16>
      %c0_41 = arith.constant 0 : index
      %c0_42 = arith.constant 0 : index
      %c8_43 = arith.constant 8 : index
      %67 = vector.load %arg4[%c0_41, %c0_42, %c8_43] : memref<1x8x32xbf16, #tpu.memory_space<vmem>>, vector<1x8x8xbf16>
      %68 = vector.shape_cast %67 : vector<1x8x8xbf16> to vector<8x8xbf16>
      %c0_44 = arith.constant 0 : index
      %c0_45 = arith.constant 0 : index
      %c8_46 = arith.constant 8 : index
      %69 = vector.load %arg5[%c0_44, %c0_45, %c8_46] : memref<1x8x32xbf16, #tpu.memory_space<vmem>>, vector<1x8x8xbf16>
      %70 = vector.shape_cast %69 : vector<1x8x8xbf16> to vector<8x8xbf16>
      %cst_47 = arith.constant dense<0.000000e+00> : vector<8x8xf32>
      %71 = tpu.matmul %66, %68, %cst_47 {dimension_numbers = #tpu.dot_dimension_numbers<[1], [1], [0], [0], [0, 0, 1, 0], [], []>} : vector<8x8xbf16>, vector<8x8xbf16>, vector<8x8xf32> -> vector<8x8xf32>
      %72 = arith.addf %71, %27 : vector<8x8xf32>
      %c1 = arith.constant 1 : index
      %c0_48 = arith.constant 0 : index
      %c0_49 = arith.constant 0 : index
      %73 = vector.load %arg12[%c1, %c0_48, %c0_49] : memref<4x8x1xf32, #tpu.memory_space<vmem>>, vector<1x8x1xf32>
      %74 = vector.shape_cast %73 : vector<1x8x1xf32> to vector<8x1xf32>
      %cst_50 = arith.constant dense<0xFF800000> : vector<8xf32>
      %75 = vector.multi_reduction <maximumf>, %72, %cst_50 [1] : vector<8x8xf32> to vector<8xf32>
      %76 = vector.shape_cast %75 : vector<8xf32> to vector<8x1xf32>
      %77 = arith.maximumf %74, %76 : vector<8x1xf32>
      %78 = arith.subf %74, %77 : vector<8x1xf32>
      %79 = math.exp %78 : vector<8x1xf32>
      %80 = vector.broadcast %77 : vector<8x1xf32> to vector<8x8xf32>
      %81 = arith.subf %72, %80 : vector<8x8xf32>
      %82 = math.exp %81 : vector<8x8xf32>
      %c1_51 = arith.constant 1 : index
      %c0_52 = arith.constant 0 : index
      %c0_53 = arith.constant 0 : index
      %83 = vector.load %arg13[%c1_51, %c0_52, %c0_53] : memref<4x8x1xf32, #tpu.memory_space<vmem>>, vector<1x8x1xf32>
      %84 = vector.shape_cast %83 : vector<1x8x1xf32> to vector<8x1xf32>
      %85 = arith.mulf %79, %84 : vector<8x1xf32>
      %cst_54 = arith.constant dense<0.000000e+00> : vector<8xf32>
      %86 = vector.multi_reduction <add>, %82, %cst_54 [1] : vector<8x8xf32> to vector<8xf32>
      %87 = vector.shape_cast %86 : vector<8xf32> to vector<8x1xf32>
      %88 = arith.addf %85, %87 : vector<8x1xf32>
      %c1_55 = arith.constant 1 : index
      %c0_56 = arith.constant 0 : index
      %c0_57 = arith.constant 0 : index
      %89 = vector.load %arg13[%c1_55, %c0_56, %c0_57] : memref<4x8x1xf32, #tpu.memory_space<vmem>>, vector<1x8x1xf32>
      %90 = vector.shape_cast %89 : vector<1x8x1xf32> to vector<8x1xf32>
      %91 = vector.shape_cast %88 : vector<8x1xf32> to vector<1x8x1xf32>
      tpu.vector_store %arg13[%c1_55, %c0_56, %c0_57], %91 {strides = array<i32>} : memref<4x8x1xf32, #tpu.memory_space<vmem>>, vector<1x8x1xf32>,
      %c0_58 = arith.constant 0 : index
      %c8_59 = arith.constant 8 : index
      %92 = vector.load %arg14[%c0_58, %c8_59] : memref<8x32xf32, #tpu.memory_space<vmem>>, vector<8x8xf32>
      %93 = vector.broadcast %79 : vector<8x1xf32> to vector<8x8xf32>
      %94 = arith.mulf %93, %92 : vector<8x8xf32>
      %95 = arith.truncf %82 : vector<8x8xf32> to vector<8x8xbf16>
      %cst_60 = arith.constant dense<0.000000e+00> : vector<8x8xf32>
      %96 = tpu.matmul %95, %70, %cst_60 {dimension_numbers = #tpu.dot_dimension_numbers<[1], [0], [0], [1], [0, 0, 1, 1], [], []>} : vector<8x8xbf16>, vector<8x8xbf16>, vector<8x8xf32> -> vector<8x8xf32>
      %97 = arith.addf %94, %96 : vector<8x8xf32>
      %c0_61 = arith.constant 0 : index
      %c8_62 = arith.constant 8 : index
      %98 = vector.load %arg14[%c0_61, %c8_62] : memref<8x32xf32, #tpu.memory_space<vmem>>, vector<8x8xf32>
      tpu.vector_store %arg14[%c0_61, %c8_62], %97 {strides = array<i32>} : memref<8x32xf32, #tpu.memory_space<vmem>>, vector<8x8xf32>,
      %c1_63 = arith.constant 1 : index
      %c0_64 = arith.constant 0 : index
      %c0_65 = arith.constant 0 : index
      %99 = vector.load %arg12[%c1_63, %c0_64, %c0_65] : memref<4x8x1xf32, #tpu.memory_space<vmem>>, vector<1x8x1xf32>
      %100 = vector.shape_cast %99 : vector<1x8x1xf32> to vector<8x1xf32>
      %101 = vector.shape_cast %77 : vector<8x1xf32> to vector<1x8x1xf32>
      tpu.vector_store %arg12[%c1_63, %c0_64, %c0_65], %101 {strides = array<i32>} : memref<4x8x1xf32, #tpu.memory_space<vmem>>, vector<1x8x1xf32>,
      %c0_66 = arith.constant 0 : index
      %c0_67 = arith.constant 0 : index
      %c16 = arith.constant 16 : index
      %102 = vector.load %arg3[%c0_66, %c0_67, %c16] : memref<1x8x32xbf16, #tpu.memory_space<vmem>>, vector<1x8x8xbf16>
      %103 = vector.shape_cast %102 : vector<1x8x8xbf16> to vector<8x8xbf16>
      %c0_68 = arith.constant 0 : index
      %c0_69 = arith.constant 0 : index
      %c16_70 = arith.constant 16 : index
      %104 = vector.load %arg4[%c0_68, %c0_69, %c16_70] : memref<1x8x32xbf16, #tpu.memory_space<vmem>>, vector<1x8x8xbf16>
      %105 = vector.shape_cast %104 : vector<1x8x8xbf16> to vector<8x8xbf16>
      %c0_71 = arith.constant 0 : index
      %c0_72 = arith.constant 0 : index
      %c16_73 = arith.constant 16 : index
      %106 = vector.load %arg5[%c0_71, %c0_72, %c16_73] : memref<1x8x32xbf16, #tpu.memory_space<vmem>>, vector<1x8x8xbf16>
      %107 = vector.shape_cast %106 : vector<1x8x8xbf16> to vector<8x8xbf16>
      %cst_74 = arith.constant dense<0.000000e+00> : vector<8x8xf32>
      %108 = tpu.matmul %103, %105, %cst_74 {dimension_numbers = #tpu.dot_dimension_numbers<[1], [1], [0], [0], [0, 0, 1, 0], [], []>} : vector<8x8xbf16>, vector<8x8xbf16>, vector<8x8xf32> -> vector<8x8xf32>
      %109 = arith.addf %108, %27 : vector<8x8xf32>
      %c2 = arith.constant 2 : index
      %c0_75 = arith.constant 0 : index
      %c0_76 = arith.constant 0 : index
      %110 = vector.load %arg12[%c2, %c0_75, %c0_76] : memref<4x8x1xf32, #tpu.memory_space<vmem>>, vector<1x8x1xf32>
      %111 = vector.shape_cast %110 : vector<1x8x1xf32> to vector<8x1xf32>
      %cst_77 = arith.constant dense<0xFF800000> : vector<8xf32>
      %112 = vector.multi_reduction <maximumf>, %109, %cst_77 [1] : vector<8x8xf32> to vector<8xf32>
      %113 = vector.shape_cast %112 : vector<8xf32> to vector<8x1xf32>
      %114 = arith.maximumf %111, %113 : vector<8x1xf32>
      %115 = arith.subf %111, %114 : vector<8x1xf32>
      %116 = math.exp %115 : vector<8x1xf32>
      %117 = vector.broadcast %114 : vector<8x1xf32> to vector<8x8xf32>
      %118 = arith.subf %109, %117 : vector<8x8xf32>
      %119 = math.exp %118 : vector<8x8xf32>
      %c2_78 = arith.constant 2 : index
      %c0_79 = arith.constant 0 : index
      %c0_80 = arith.constant 0 : index
      %120 = vector.load %arg13[%c2_78, %c0_79, %c0_80] : memref<4x8x1xf32, #tpu.memory_space<vmem>>, vector<1x8x1xf32>
      %121 = vector.shape_cast %120 : vector<1x8x1xf32> to vector<8x1xf32>
      %122 = arith.mulf %116, %121 : vector<8x1xf32>
      %cst_81 = arith.constant dense<0.000000e+00> : vector<8xf32>
      %123 = vector.multi_reduction <add>, %119, %cst_81 [1] : vector<8x8xf32> to vector<8xf32>
      %124 = vector.shape_cast %123 : vector<8xf32> to vector<8x1xf32>
      %125 = arith.addf %122, %124 : vector<8x1xf32>
      %c2_82 = arith.constant 2 : index
      %c0_83 = arith.constant 0 : index
      %c0_84 = arith.constant 0 : index
      %126 = vector.load %arg13[%c2_82, %c0_83, %c0_84] : memref<4x8x1xf32, #tpu.memory_space<vmem>>, vector<1x8x1xf32>
      %127 = vector.shape_cast %126 : vector<1x8x1xf32> to vector<8x1xf32>
      %128 = vector.shape_cast %125 : vector<8x1xf32> to vector<1x8x1xf32>
      tpu.vector_store %arg13[%c2_82, %c0_83, %c0_84], %128 {strides = array<i32>} : memref<4x8x1xf32, #tpu.memory_space<vmem>>, vector<1x8x1xf32>,
      %c0_85 = arith.constant 0 : index
      %c16_86 = arith.constant 16 : index
      %129 = vector.load %arg14[%c0_85, %c16_86] : memref<8x32xf32, #tpu.memory_space<vmem>>, vector<8x8xf32>
      %130 = vector.broadcast %116 : vector<8x1xf32> to vector<8x8xf32>
      %131 = arith.mulf %130, %129 : vector<8x8xf32>
      %132 = arith.truncf %119 : vector<8x8xf32> to vector<8x8xbf16>
      %cst_87 = arith.constant dense<0.000000e+00> : vector<8x8xf32>
      %133 = tpu.matmul %132, %107, %cst_87 {dimension_numbers = #tpu.dot_dimension_numbers<[1], [0], [0], [1], [0, 0, 1, 1], [], []>} : vector<8x8xbf16>, vector<8x8xbf16>, vector<8x8xf32> -> vector<8x8xf32>
      %134 = arith.addf %131, %133 : vector<8x8xf32>
      %c0_88 = arith.constant 0 : index
      %c16_89 = arith.constant 16 : index
      %135 = vector.load %arg14[%c0_88, %c16_89] : memref<8x32xf32, #tpu.memory_space<vmem>>, vector<8x8xf32>
      tpu.vector_store %arg14[%c0_88, %c16_89], %134 {strides = array<i32>} : memref<8x32xf32, #tpu.memory_space<vmem>>, vector<8x8xf32>,
      %c2_90 = arith.constant 2 : index
      %c0_91 = arith.constant 0 : index
      %c0_92 = arith.constant 0 : index
      %136 = vector.load %arg12[%c2_90, %c0_91, %c0_92] : memref<4x8x1xf32, #tpu.memory_space<vmem>>, vector<1x8x1xf32>
      %137 = vector.shape_cast %136 : vector<1x8x1xf32> to vector<8x1xf32>
      %138 = vector.shape_cast %114 : vector<8x1xf32> to vector<1x8x1xf32>
      tpu.vector_store %arg12[%c2_90, %c0_91, %c0_92], %138 {strides = array<i32>} : memref<4x8x1xf32, #tpu.memory_space<vmem>>, vector<1x8x1xf32>,
      %c0_93 = arith.constant 0 : index
      %c0_94 = arith.constant 0 : index
      %c24 = arith.constant 24 : index
      %139 = vector.load %arg3[%c0_93, %c0_94, %c24] : memref<1x8x32xbf16, #tpu.memory_space<vmem>>, vector<1x8x8xbf16>
      %140 = vector.shape_cast %139 : vector<1x8x8xbf16> to vector<8x8xbf16>
      %c0_95 = arith.constant 0 : index
      %c0_96 = arith.constant 0 : index
      %c24_97 = arith.constant 24 : index
      %141 = vector.load %arg4[%c0_95, %c0_96, %c24_97] : memref<1x8x32xbf16, #tpu.memory_space<vmem>>, vector<1x8x8xbf16>
      %142 = vector.shape_cast %141 : vector<1x8x8xbf16> to vector<8x8xbf16>
      %c0_98 = arith.constant 0 : index
      %c0_99 = arith.constant 0 : index
      %c24_100 = arith.constant 24 : index
      %143 = vector.load %arg5[%c0_98, %c0_99, %c24_100] : memref<1x8x32xbf16, #tpu.memory_space<vmem>>, vector<1x8x8xbf16>
      %144 = vector.shape_cast %143 : vector<1x8x8xbf16> to vector<8x8xbf16>
      %cst_101 = arith.constant dense<0.000000e+00> : vector<8x8xf32>
      %145 = tpu.matmul %140, %142, %cst_101 {dimension_numbers = #tpu.dot_dimension_numbers<[1], [1], [0], [0], [0, 0, 1, 0], [], []>} : vector<8x8xbf16>, vector<8x8xbf16>, vector<8x8xf32> -> vector<8x8xf32>
      %146 = arith.addf %145, %27 : vector<8x8xf32>
      %c3 = arith.constant 3 : index
      %c0_102 = arith.constant 0 : index
      %c0_103 = arith.constant 0 : index
      %147 = vector.load %arg12[%c3, %c0_102, %c0_103] : memref<4x8x1xf32, #tpu.memory_space<vmem>>, vector<1x8x1xf32>
      %148 = vector.shape_cast %147 : vector<1x8x1xf32> to vector<8x1xf32>
      %cst_104 = arith.constant dense<0xFF800000> : vector<8xf32>
      %149 = vector.multi_reduction <maximumf>, %146, %cst_104 [1] : vector<8x8xf32> to vector<8xf32>
      %150 = vector.shape_cast %149 : vector<8xf32> to vector<8x1xf32>
      %151 = arith.maximumf %148, %150 : vector<8x1xf32>
      %152 = arith.subf %148, %151 : vector<8x1xf32>
      %153 = math.exp %152 : vector<8x1xf32>
      %154 = vector.broadcast %151 : vector<8x1xf32> to vector<8x8xf32>
      %155 = arith.subf %146, %154 : vector<8x8xf32>
      %156 = math.exp %155 : vector<8x8xf32>
      %c3_105 = arith.constant 3 : index
      %c0_106 = arith.constant 0 : index
      %c0_107 = arith.constant 0 : index
      %157 = vector.load %arg13[%c3_105, %c0_106, %c0_107] : memref<4x8x1xf32, #tpu.memory_space<vmem>>, vector<1x8x1xf32>
      %158 = vector.shape_cast %157 : vector<1x8x1xf32> to vector<8x1xf32>
      %159 = arith.mulf %153, %158 : vector<8x1xf32>
      %cst_108 = arith.constant dense<0.000000e+00> : vector<8xf32>
      %160 = vector.multi_reduction <add>, %156, %cst_108 [1] : vector<8x8xf32> to vector<8xf32>
      %161 = vector.shape_cast %160 : vector<8xf32> to vector<8x1xf32>
      %162 = arith.addf %159, %161 : vector<8x1xf32>
      %c3_109 = arith.constant 3 : index
      %c0_110 = arith.constant 0 : index
      %c0_111 = arith.constant 0 : index
      %163 = vector.load %arg13[%c3_109, %c0_110, %c0_111] : memref<4x8x1xf32, #tpu.memory_space<vmem>>, vector<1x8x1xf32>
      %164 = vector.shape_cast %163 : vector<1x8x1xf32> to vector<8x1xf32>
      %165 = vector.shape_cast %162 : vector<8x1xf32> to vector<1x8x1xf32>
      tpu.vector_store %arg13[%c3_109, %c0_110, %c0_111], %165 {strides = array<i32>} : memref<4x8x1xf32, #tpu.memory_space<vmem>>, vector<1x8x1xf32>,
      %c0_112 = arith.constant 0 : index
      %c24_113 = arith.constant 24 : index
      %166 = vector.load %arg14[%c0_112, %c24_113] : memref<8x32xf32, #tpu.memory_space<vmem>>, vector<8x8xf32>
      %167 = vector.broadcast %153 : vector<8x1xf32> to vector<8x8xf32>
      %168 = arith.mulf %167, %166 : vector<8x8xf32>
      %169 = arith.truncf %156 : vector<8x8xf32> to vector<8x8xbf16>
      %cst_114 = arith.constant dense<0.000000e+00> : vector<8x8xf32>
      %170 = tpu.matmul %169, %144, %cst_114 {dimension_numbers = #tpu.dot_dimension_numbers<[1], [0], [0], [1], [0, 0, 1, 1], [], []>} : vector<8x8xbf16>, vector<8x8xbf16>, vector<8x8xf32> -> vector<8x8xf32>
      %171 = arith.addf %168, %170 : vector<8x8xf32>
      %c0_115 = arith.constant 0 : index
      %c24_116 = arith.constant 24 : index
      %172 = vector.load %arg14[%c0_115, %c24_116] : memref<8x32xf32, #tpu.memory_space<vmem>>, vector<8x8xf32>
      tpu.vector_store %arg14[%c0_115, %c24_116], %171 {strides = array<i32>} : memref<8x32xf32, #tpu.memory_space<vmem>>, vector<8x8xf32>,
      %c3_117 = arith.constant 3 : index
      %c0_118 = arith.constant 0 : index
      %c0_119 = arith.constant 0 : index
      %173 = vector.load %arg12[%c3_117, %c0_118, %c0_119] : memref<4x8x1xf32, #tpu.memory_space<vmem>>, vector<1x8x1xf32>
      %174 = vector.shape_cast %173 : vector<1x8x1xf32> to vector<8x1xf32>
      %175 = vector.shape_cast %151 : vector<8x1xf32> to vector<1x8x1xf32>
      tpu.vector_store %arg12[%c3_117, %c0_118, %c0_119], %175 {strides = array<i32>} : memref<4x8x1xf32, #tpu.memory_space<vmem>>, vector<1x8x1xf32>,
    } else {
    }
    %c0_i32_3 = arith.constant 0 : i32
    %9 = arith.cmpi eq, %arg2, %c0_i32_3 : i32
    %10 = arith.extui %9 : i1 to i32
    %c0_i32_4 = arith.constant 0 : i32
    %11 = arith.cmpi ne, %10, %c0_i32_4 : i32
    scf.if %11 {
      %c0 = arith.constant 0 : index
      %c0_5 = arith.constant 0 : index
      %c0_6 = arith.constant 0 : index
      %12 = vector.load %arg13[%c0, %c0_5, %c0_6] : memref<4x8x1xf32, #tpu.memory_space<vmem>>, vector<1x8x1xf32>
      %13 = vector.shape_cast %12 : vector<1x8x1xf32> to vector<8x1xf32>
      %14 = tpu.reciprocal %13 {approx = true} : vector<8x1xf32> -> vector<8x1xf32>
      %15 = vector.shape_cast %14 : vector<8x1xf32> to vector<8x1xf32>
      %16 = vector.broadcast %15 : vector<8x1xf32> to vector<8x8xf32>
      %c1 = arith.constant 1 : index
      %c0_7 = arith.constant 0 : index
      %c0_8 = arith.constant 0 : index
      %17 = vector.load %arg13[%c1, %c0_7, %c0_8] : memref<4x8x1xf32, #tpu.memory_space<vmem>>, vector<1x8x1xf32>
      %18 = vector.shape_cast %17 : vector<1x8x1xf32> to vector<8x1xf32>
      %19 = tpu.reciprocal %18 {approx = true} : vector<8x1xf32> -> vector<8x1xf32>
      %20 = vector.shape_cast %19 : vector<8x1xf32> to vector<8x1xf32>
      %21 = vector.broadcast %20 : vector<8x1xf32> to vector<8x8xf32>
      %c2 = arith.constant 2 : index
      %c0_9 = arith.constant 0 : index
      %c0_10 = arith.constant 0 : index
      %22 = vector.load %arg13[%c2, %c0_9, %c0_10] : memref<4x8x1xf32, #tpu.memory_space<vmem>>, vector<1x8x1xf32>
      %23 = vector.shape_cast %22 : vector<1x8x1xf32> to vector<8x1xf32>
      %24 = tpu.reciprocal %23 {approx = true} : vector<8x1xf32> -> vector<8x1xf32>
      %25 = vector.shape_cast %24 : vector<8x1xf32> to vector<8x1xf32>
      %26 = vector.broadcast %25 : vector<8x1xf32> to vector<8x8xf32>
      %c3 = arith.constant 3 : index
      %c0_11 = arith.constant 0 : index
      %c0_12 = arith.constant 0 : index
      %27 = vector.load %arg13[%c3, %c0_11, %c0_12] : memref<4x8x1xf32, #tpu.memory_space<vmem>>, vector<1x8x1xf32>
      %28 = vector.shape_cast %27 : vector<1x8x1xf32> to vector<8x1xf32>
      %29 = tpu.reciprocal %28 {approx = true} : vector<8x1xf32> -> vector<8x1xf32>
      %30 = vector.shape_cast %29 : vector<8x1xf32> to vector<8x1xf32>
      %31 = vector.broadcast %30 : vector<8x1xf32> to vector<8x8xf32>
      %32 = tpu.concatenate %16, %21, %26, %31 in 1 : vector<8x8xf32>, vector<8x8xf32>, vector<8x8xf32>, vector<8x8xf32> -> vector<8x32xf32>
      %c0_13 = arith.constant 0 : index
      %c0_14 = arith.constant 0 : index
      %33 = vector.load %arg14[%c0_13, %c0_14] : memref<8x32xf32, #tpu.memory_space<vmem>>, vector<8x32xf32>
      %34 = arith.mulf %33, %32 : vector<8x32xf32>
      %35 = arith.truncf %34 : vector<8x32xf32> to vector<8x32xbf16>
      %c0_15 = arith.constant 0 : index
      %c0_16 = arith.constant 0 : index
      %36 = vector.load %arg7[%c0_15, %c0_16] : memref<32x32xbf16, #tpu.memory_space<vmem>>, vector<32x32xbf16>
      %cst = arith.constant dense<0.000000e+00> : vector<8x32xf32>
      %37 = tpu.matmul %35, %36, %cst {dimension_numbers = #tpu.dot_dimension_numbers<[1], [0], [0], [1], [0, 0, 1, 1], [], []>} : vector<8x32xbf16>, vector<32x32xbf16>, vector<8x32xf32> -> vector<8x32xf32>
      %c0_17 = arith.constant 0 : index
      %c0_18 = arith.constant 0 : index
      %c0_19 = arith.constant 0 : index
      %38 = vector.load %arg8[%c0_17, %c0_18, %c0_19] : memref<1x8x32xf32, #tpu.memory_space<vmem>>, vector<1x8x32xf32>
      %39 = vector.shape_cast %38 : vector<1x8x32xf32> to vector<8x32xf32>
      %40 = arith.addf %39, %37 : vector<8x32xf32>
      %cst_20 = arith.constant dense<0.000000e+00> : vector<8xf32>
      %41 = vector.multi_reduction <add>, %40, %cst_20 [1] : vector<8x32xf32> to vector<8xf32>
      %42 = vector.shape_cast %41 : vector<8xf32> to vector<8x1xf32>
      %cst_21 = arith.constant 3.200000e+01 : f32
      %43 = vector.broadcast %cst_21 : f32 to vector<8x1xf32>
      %44 = arith.divf %42, %43 : vector<8x1xf32>
      %45 = vector.broadcast %44 : vector<8x1xf32> to vector<8x32xf32>
      %46 = arith.subf %40, %45 : vector<8x32xf32>
      %47 = arith.mulf %46, %46 : vector<8x32xf32>
      %cst_22 = arith.constant dense<0.000000e+00> : vector<8xf32>
      %48 = vector.multi_reduction <add>, %47, %cst_22 [1] : vector<8x32xf32> to vector<8xf32>
      %49 = vector.shape_cast %48 : vector<8xf32> to vector<8x1xf32>
      %cst_23 = arith.constant 3.200000e+01 : f32
      %50 = vector.broadcast %cst_23 : f32 to vector<8x1xf32>
      %51 = arith.divf %49, %50 : vector<8x1xf32>
      %cst_24 = arith.constant 9.99999974E-6 : f32
      %52 = vector.broadcast %cst_24 : f32 to vector<8x1xf32>
      %53 = arith.addf %51, %52 : vector<8x1xf32>
      %54 = math.rsqrt %53 : vector<8x1xf32>
      %55 = vector.broadcast %54 : vector<8x1xf32> to vector<8x32xf32>
      %56 = arith.mulf %46, %55 : vector<8x32xf32>
      %c0_25 = arith.constant 0 : index
      %c0_26 = arith.constant 0 : index
      %57 = vector.load %arg9[%c0_25, %c0_26] : memref<1x32xf32, #tpu.memory_space<vmem>>, vector<1x32xf32>
      %58 = vector.broadcast %57 : vector<1x32xf32> to vector<8x32xf32>
      %59 = arith.mulf %56, %58 : vector<8x32xf32>
      %c0_27 = arith.constant 0 : index
      %c0_28 = arith.constant 0 : index
      %60 = vector.load %arg10[%c0_27, %c0_28] : memref<1x32xf32, #tpu.memory_space<vmem>>, vector<1x32xf32>
      %61 = vector.broadcast %60 : vector<1x32xf32> to vector<8x32xf32>
      %62 = arith.addf %59, %61 : vector<8x32xf32>
      %c0_29 = arith.constant 0 : index
      %c0_30 = arith.constant 0 : index
      %c0_31 = arith.constant 0 : index
      %63 = vector.load %arg11[%c0_29, %c0_30, %c0_31] : memref<1x8x32xf32, #tpu.memory_space<vmem>>, vector<1x8x32xf32>
      %64 = vector.shape_cast %63 : vector<1x8x32xf32> to vector<8x32xf32>
      %65 = vector.shape_cast %62 : vector<8x32xf32> to vector<1x8x32xf32>
      tpu.vector_store %arg11[%c0_29, %c0_30, %c0_31], %65 {strides = array<i32>} : memref<1x8x32xf32, #tpu.memory_space<vmem>>, vector<1x8x32xf32>,
    } else {
    }
    return
  }
  func.func @transform_0(%arg0: i32, %arg1: i32, %arg2: i32) -> (i32, i32, i32) {
    %c0_i32 = arith.constant 0 : i32
    %c0_i32_0 = arith.constant 0 : i32
    return %arg0, %arg1, %c0_i32 : i32, i32, i32
  }
  func.func @transform_1(%arg0: i32, %arg1: i32, %arg2: i32) -> (i32, i32, i32) {
    %c0_i32 = arith.constant 0 : i32
    %c0_i32_0 = arith.constant 0 : i32
    return %arg0, %arg2, %c0_i32 : i32, i32, i32
  }
  func.func @transform_2(%arg0: i32, %arg1: i32, %arg2: i32) -> (i32, i32, i32) {
    %c0_i32 = arith.constant 0 : i32
    %c0_i32_0 = arith.constant 0 : i32
    return %arg0, %arg2, %c0_i32 : i32, i32, i32
  }
  func.func @transform_3(%arg0: i32, %arg1: i32, %arg2: i32) -> (i32, i32, i32) {
    %c0_i32 = arith.constant 0 : i32
    %c0_i32_0 = arith.constant 0 : i32
    return %arg0, %c0_i32, %arg2 : i32, i32, i32
  }
  func.func @transform_4(%arg0: i32, %arg1: i32, %arg2: i32) -> (i32, i32) {
    %c0_i32 = arith.constant 0 : i32
    %c0_i32_0 = arith.constant 0 : i32
    %c0_i32_1 = arith.constant 0 : i32
    return %c0_i32, %c0_i32_0 : i32, i32
  }
  func.func @transform_5(%arg0: i32, %arg1: i32, %arg2: i32) -> (i32, i32, i32) {
    %c0_i32 = arith.constant 0 : i32
    %c0_i32_0 = arith.constant 0 : i32
    return %arg0, %arg1, %c0_i32 : i32, i32, i32
  }
  func.func @transform_6(%arg0: i32, %arg1: i32, %arg2: i32) -> (i32, i32) {
    %c0_i32 = arith.constant 0 : i32
    %c0_i32_0 = arith.constant 0 : i32
    %c0_i32_1 = arith.constant 0 : i32
    return %c0_i32, %c0_i32_0 : i32, i32
  }
  func.func @transform_7(%arg0: i32, %arg1: i32, %arg2: i32) -> (i32, i32) {
    %c0_i32 = arith.constant 0 : i32
    %c0_i32_0 = arith.constant 0 : i32
    %c0_i32_1 = arith.constant 0 : i32
    return %c0_i32, %c0_i32_0 : i32, i32
  }
  func.func @transform_8(%arg0: i32, %arg1: i32, %arg2: i32) -> (i32, i32, i32) {
    %c0_i32 = arith.constant 0 : i32
    %c0_i32_0 = arith.constant 0 : i32
    return %arg0, %arg1, %c0_i32 : i32, i32, i32
  }
}

module attributes {stable_mosaic.version = 11 : i64} {
  func.func @_attn_kernel(%arg0: i32, %arg1: i32, %arg2: i32, %arg3: memref<1x8x32xbf16, #tpu.memory_space<vmem>>, %arg4: memref<1x8x32xbf16, #tpu.memory_space<vmem>>, %arg5: memref<1x8x32xbf16, #tpu.memory_space<vmem>>, %arg6: memref<1x1x8xf32, #tpu.memory_space<vmem>>, %arg7: memref<32x32xbf16, #tpu.memory_space<vmem>>, %arg8: memref<1x8x32xf32, #tpu.memory_space<vmem>>, %arg9: memref<1x32xf32, #tpu.memory_space<vmem>>, %arg10: memref<1x32xf32, #tpu.memory_space<vmem>>, %arg11: memref<1x8x32xf32, #tpu.memory_space<vmem>>, %arg12: memref<4x8x1xf32, #tpu.memory_space<vmem>>, %arg13: memref<4x8x1xf32, #tpu.memory_space<vmem>>, %arg14: memref<8x32xf32, #tpu.memory_space<vmem>>) attributes {dimension_semantics = [#tpu.dimension_semantics<parallel>, #tpu.dimension_semantics<parallel>, #tpu.dimension_semantics<arbitrary>], iteration_bounds = array<i64: 2, 1, 1>, scalar_prefetch = 0 : i64, scratch_operands = 3 : i64, tpu.core_type = #tpu.core_type<tc>, window_params = [{transform_indices = @transform_0, window_bounds = array<i64: 1, 8, 32>}, {transform_indices = @transform_1, window_bounds = array<i64: 1, 8, 32>}, {transform_indices = @transform_2, window_bounds = array<i64: 1, 8, 32>}, {transform_indices = @transform_3, window_bounds = array<i64: 1, 1, 8>}, {pipeline_mode = #tpu.pipeline_mode<synchronous>, transform_indices = @transform_4, window_bounds = array<i64: 32, 32>}, {transform_indices = @transform_5, window_bounds = array<i64: 1, 8, 32>}, {pipeline_mode = #tpu.pipeline_mode<synchronous>, transform_indices = @transform_6, window_bounds = array<i64: 1, 32>}, {pipeline_mode = #tpu.pipeline_mode<synchronous>, transform_indices = @transform_7, window_bounds = array<i64: 1, 32>}, {transform_indices = @transform_8, window_bounds = array<i64: 1, 8, 32>}]} {
    %c0_i32 = arith.constant 0 : i32
    %0 = arith.cmpi eq, %arg2, %c0_i32 : i32
    %1 = arith.extui %0 : i1 to i32
    %c0_i32_0 = arith.constant 0 : i32
    %2 = arith.cmpi ne, %1, %c0_i32_0 : i32
    scf.if %2 {
      %cst_114 = arith.constant -1.000000e+30 : f32
      %160 = vector.broadcast %cst_114 : f32 to vector<4x8x1xf32>
      %c0_115 = arith.constant 0 : index
      %c0_116 = arith.constant 0 : index
      %c0_117 = arith.constant 0 : index
      %161 = vector.load %arg12[%c0_115, %c0_116, %c0_117] : memref<4x8x1xf32, #tpu.memory_space<vmem>>, vector<4x8x1xf32>
      tpu.vector_store %arg12[%c0_115, %c0_116, %c0_117], %160 {strides = array<i32>} : memref<4x8x1xf32, #tpu.memory_space<vmem>>, vector<4x8x1xf32>,
      %cst_118 = arith.constant 0.000000e+00 : f32
      %162 = vector.broadcast %cst_118 : f32 to vector<4x8x1xf32>
      %c0_119 = arith.constant 0 : index
      %c0_120 = arith.constant 0 : index
      %c0_121 = arith.constant 0 : index
      %163 = vector.load %arg13[%c0_119, %c0_120, %c0_121] : memref<4x8x1xf32, #tpu.memory_space<vmem>>, vector<4x8x1xf32>
      tpu.vector_store %arg13[%c0_119, %c0_120, %c0_121], %162 {strides = array<i32>} : memref<4x8x1xf32, #tpu.memory_space<vmem>>, vector<4x8x1xf32>,
      %cst_122 = arith.constant 0.000000e+00 : f32
      %164 = vector.broadcast %cst_122 : f32 to vector<8x32xf32>
      %c0_123 = arith.constant 0 : index
      %c0_124 = arith.constant 0 : index
      %165 = vector.load %arg14[%c0_123, %c0_124] : memref<8x32xf32, #tpu.memory_space<vmem>>, vector<8x32xf32>
      tpu.vector_store %arg14[%c0_123, %c0_124], %164 {strides = array<i32>} : memref<8x32xf32, #tpu.memory_space<vmem>>, vector<8x32xf32>,
    } else {
    }
    %c0 = arith.constant 0 : index
    %c0_1 = arith.constant 0 : index
    %c0_2 = arith.constant 0 : index
    %3 = vector.load %arg6[%c0, %c0_1, %c0_2] : memref<1x1x8xf32, #tpu.memory_space<vmem>>, vector<1x1x8xf32>
    %4 = vector.shape_cast %3 : vector<1x1x8xf32> to vector<1x8xf32>
    %c0_3 = arith.constant 0 : index
    %c0_4 = arith.constant 0 : index
    %c0_5 = arith.constant 0 : index
    %5 = vector.load %arg3[%c0_3, %c0_4, %c0_5] : memref<1x8x32xbf16, #tpu.memory_space<vmem>>, vector<1x8x8xbf16>
    %6 = vector.shape_cast %5 : vector<1x8x8xbf16> to vector<8x8xbf16>
    %c0_6 = arith.constant 0 : index
    %c0_7 = arith.constant 0 : index
    %c0_8 = arith.constant 0 : index
    %7 = vector.load %arg4[%c0_6, %c0_7, %c0_8] : memref<1x8x32xbf16, #tpu.memory_space<vmem>>, vector<1x8x8xbf16>
    %8 = vector.shape_cast %7 : vector<1x8x8xbf16> to vector<8x8xbf16>
    %c0_9 = arith.constant 0 : index
    %c0_10 = arith.constant 0 : index
    %c0_11 = arith.constant 0 : index
    %9 = vector.load %arg5[%c0_9, %c0_10, %c0_11] : memref<1x8x32xbf16, #tpu.memory_space<vmem>>, vector<1x8x8xbf16>
    %10 = vector.shape_cast %9 : vector<1x8x8xbf16> to vector<8x8xbf16>
    %cst = arith.constant dense<0.000000e+00> : vector<8x8xf32>
    %11 = tpu.matmul %6, %8, %cst {dimension_numbers = #tpu.dot_dimension_numbers<[1], [1], [0], [0], [0, 0, 1, 0], [], []>} : vector<8x8xbf16>, vector<8x8xbf16>, vector<8x8xf32> -> vector<8x8xf32>
    %12 = vector.broadcast %4 : vector<1x8xf32> to vector<8x8xf32>
    %13 = arith.addf %11, %12 : vector<8x8xf32>
    %c0_12 = arith.constant 0 : index
    %c0_13 = arith.constant 0 : index
    %c0_14 = arith.constant 0 : index
    %14 = vector.load %arg12[%c0_12, %c0_13, %c0_14] : memref<4x8x1xf32, #tpu.memory_space<vmem>>, vector<1x8x1xf32>
    %15 = vector.shape_cast %14 : vector<1x8x1xf32> to vector<8x1xf32>
    %cst_15 = arith.constant dense<0xFF800000> : vector<8xf32>
    %16 = vector.multi_reduction <maximumf>, %13, %cst_15 [1] : vector<8x8xf32> to vector<8xf32>
    %17 = vector.shape_cast %16 : vector<8xf32> to vector<8x1xf32>
    %18 = arith.maximumf %15, %17 : vector<8x1xf32>
    %19 = arith.subf %15, %18 : vector<8x1xf32>
    %20 = math.exp %19 : vector<8x1xf32>
    %21 = vector.broadcast %18 : vector<8x1xf32> to vector<8x8xf32>
    %22 = arith.subf %13, %21 : vector<8x8xf32>
    %23 = math.exp %22 : vector<8x8xf32>
    %c0_16 = arith.constant 0 : index
    %c0_17 = arith.constant 0 : index
    %c0_18 = arith.constant 0 : index
    %24 = vector.load %arg13[%c0_16, %c0_17, %c0_18] : memref<4x8x1xf32, #tpu.memory_space<vmem>>, vector<1x8x1xf32>
    %25 = vector.shape_cast %24 : vector<1x8x1xf32> to vector<8x1xf32>
    %26 = arith.mulf %20, %25 : vector<8x1xf32>
    %cst_19 = arith.constant dense<0.000000e+00> : vector<8xf32>
    %27 = vector.multi_reduction <add>, %23, %cst_19 [1] : vector<8x8xf32> to vector<8xf32>
    %28 = vector.shape_cast %27 : vector<8xf32> to vector<8x1xf32>
    %29 = arith.addf %26, %28 : vector<8x1xf32>
    %c0_20 = arith.constant 0 : index
    %c0_21 = arith.constant 0 : index
    %c0_22 = arith.constant 0 : index
    %30 = vector.load %arg13[%c0_20, %c0_21, %c0_22] : memref<4x8x1xf32, #tpu.memory_space<vmem>>, vector<1x8x1xf32>
    %31 = vector.shape_cast %30 : vector<1x8x1xf32> to vector<8x1xf32>
    %32 = vector.shape_cast %29 : vector<8x1xf32> to vector<1x8x1xf32>
    tpu.vector_store %arg13[%c0_20, %c0_21, %c0_22], %32 {strides = array<i32>} : memref<4x8x1xf32, #tpu.memory_space<vmem>>, vector<1x8x1xf32>,
    %c0_23 = arith.constant 0 : index
    %c0_24 = arith.constant 0 : index
    %33 = vector.load %arg14[%c0_23, %c0_24] : memref<8x32xf32, #tpu.memory_space<vmem>>, vector<8x8xf32>
    %34 = vector.broadcast %20 : vector<8x1xf32> to vector<8x8xf32>
    %35 = arith.mulf %34, %33 : vector<8x8xf32>
    %36 = arith.truncf %23 : vector<8x8xf32> to vector<8x8xbf16>
    %cst_25 = arith.constant dense<0.000000e+00> : vector<8x8xf32>
    %37 = tpu.matmul %36, %10, %cst_25 {dimension_numbers = #tpu.dot_dimension_numbers<[1], [0], [0], [1], [0, 0, 1, 1], [], []>} : vector<8x8xbf16>, vector<8x8xbf16>, vector<8x8xf32> -> vector<8x8xf32>
    %38 = arith.addf %35, %37 : vector<8x8xf32>
    %c0_26 = arith.constant 0 : index
    %c0_27 = arith.constant 0 : index
    %39 = vector.load %arg14[%c0_26, %c0_27] : memref<8x32xf32, #tpu.memory_space<vmem>>, vector<8x8xf32>
    tpu.vector_store %arg14[%c0_26, %c0_27], %38 {strides = array<i32>} : memref<8x32xf32, #tpu.memory_space<vmem>>, vector<8x8xf32>,
    %c0_28 = arith.constant 0 : index
    %c0_29 = arith.constant 0 : index
    %c0_30 = arith.constant 0 : index
    %40 = vector.load %arg12[%c0_28, %c0_29, %c0_30] : memref<4x8x1xf32, #tpu.memory_space<vmem>>, vector<1x8x1xf32>
    %41 = vector.shape_cast %40 : vector<1x8x1xf32> to vector<8x1xf32>
    %42 = vector.shape_cast %18 : vector<8x1xf32> to vector<1x8x1xf32>
    tpu.vector_store %arg12[%c0_28, %c0_29, %c0_30], %42 {strides = array<i32>} : memref<4x8x1xf32, #tpu.memory_space<vmem>>, vector<1x8x1xf32>,
    %c0_31 = arith.constant 0 : index
    %c0_32 = arith.constant 0 : index
    %c8 = arith.constant 8 : index
    %43 = vector.load %arg3[%c0_31, %c0_32, %c8] : memref<1x8x32xbf16, #tpu.memory_space<vmem>>, vector<1x8x8xbf16>
    %44 = vector.shape_cast %43 : vector<1x8x8xbf16> to vector<8x8xbf16>
    %c0_33 = arith.constant 0 : index
    %c0_34 = arith.constant 0 : index
    %c8_35 = arith.constant 8 : index
    %45 = vector.load %arg4[%c0_33, %c0_34, %c8_35] : memref<1x8x32xbf16, #tpu.memory_space<vmem>>, vector<1x8x8xbf16>
    %46 = vector.shape_cast %45 : vector<1x8x8xbf16> to vector<8x8xbf16>
    %c0_36 = arith.constant 0 : index
    %c0_37 = arith.constant 0 : index
    %c8_38 = arith.constant 8 : index
    %47 = vector.load %arg5[%c0_36, %c0_37, %c8_38] : memref<1x8x32xbf16, #tpu.memory_space<vmem>>, vector<1x8x8xbf16>
    %48 = vector.shape_cast %47 : vector<1x8x8xbf16> to vector<8x8xbf16>
    %cst_39 = arith.constant dense<0.000000e+00> : vector<8x8xf32>
    %49 = tpu.matmul %44, %46, %cst_39 {dimension_numbers = #tpu.dot_dimension_numbers<[1], [1], [0], [0], [0, 0, 1, 0], [], []>} : vector<8x8xbf16>, vector<8x8xbf16>, vector<8x8xf32> -> vector<8x8xf32>
    %50 = vector.broadcast %4 : vector<1x8xf32> to vector<8x8xf32>
    %51 = arith.addf %49, %50 : vector<8x8xf32>
    %c1 = arith.constant 1 : index
    %c0_40 = arith.constant 0 : index
    %c0_41 = arith.constant 0 : index
    %52 = vector.load %arg12[%c1, %c0_40, %c0_41] : memref<4x8x1xf32, #tpu.memory_space<vmem>>, vector<1x8x1xf32>
    %53 = vector.shape_cast %52 : vector<1x8x1xf32> to vector<8x1xf32>
    %cst_42 = arith.constant dense<0xFF800000> : vector<8xf32>
    %54 = vector.multi_reduction <maximumf>, %51, %cst_42 [1] : vector<8x8xf32> to vector<8xf32>
    %55 = vector.shape_cast %54 : vector<8xf32> to vector<8x1xf32>
    %56 = arith.maximumf %53, %55 : vector<8x1xf32>
    %57 = arith.subf %53, %56 : vector<8x1xf32>
    %58 = math.exp %57 : vector<8x1xf32>
    %59 = vector.broadcast %56 : vector<8x1xf32> to vector<8x8xf32>
    %60 = arith.subf %51, %59 : vector<8x8xf32>
    %61 = math.exp %60 : vector<8x8xf32>
    %c1_43 = arith.constant 1 : index
    %c0_44 = arith.constant 0 : index
    %c0_45 = arith.constant 0 : index
    %62 = vector.load %arg13[%c1_43, %c0_44, %c0_45] : memref<4x8x1xf32, #tpu.memory_space<vmem>>, vector<1x8x1xf32>
    %63 = vector.shape_cast %62 : vector<1x8x1xf32> to vector<8x1xf32>
    %64 = arith.mulf %58, %63 : vector<8x1xf32>
    %cst_46 = arith.constant dense<0.000000e+00> : vector<8xf32>
    %65 = vector.multi_reduction <add>, %61, %cst_46 [1] : vector<8x8xf32> to vector<8xf32>
    %66 = vector.shape_cast %65 : vector<8xf32> to vector<8x1xf32>
    %67 = arith.addf %64, %66 : vector<8x1xf32>
    %c1_47 = arith.constant 1 : index
    %c0_48 = arith.constant 0 : index
    %c0_49 = arith.constant 0 : index
    %68 = vector.load %arg13[%c1_47, %c0_48, %c0_49] : memref<4x8x1xf32, #tpu.memory_space<vmem>>, vector<1x8x1xf32>
    %69 = vector.shape_cast %68 : vector<1x8x1xf32> to vector<8x1xf32>
    %70 = vector.shape_cast %67 : vector<8x1xf32> to vector<1x8x1xf32>
    tpu.vector_store %arg13[%c1_47, %c0_48, %c0_49], %70 {strides = array<i32>} : memref<4x8x1xf32, #tpu.memory_space<vmem>>, vector<1x8x1xf32>,
    %c0_50 = arith.constant 0 : index
    %c8_51 = arith.constant 8 : index
    %71 = vector.load %arg14[%c0_50, %c8_51] : memref<8x32xf32, #tpu.memory_space<vmem>>, vector<8x8xf32>
    %72 = vector.broadcast %58 : vector<8x1xf32> to vector<8x8xf32>
    %73 = arith.mulf %72, %71 : vector<8x8xf32>
    %74 = arith.truncf %61 : vector<8x8xf32> to vector<8x8xbf16>
    %cst_52 = arith.constant dense<0.000000e+00> : vector<8x8xf32>
    %75 = tpu.matmul %74, %48, %cst_52 {dimension_numbers = #tpu.dot_dimension_numbers<[1], [0], [0], [1], [0, 0, 1, 1], [], []>} : vector<8x8xbf16>, vector<8x8xbf16>, vector<8x8xf32> -> vector<8x8xf32>
    %76 = arith.addf %73, %75 : vector<8x8xf32>
    %c0_53 = arith.constant 0 : index
    %c8_54 = arith.constant 8 : index
    %77 = vector.load %arg14[%c0_53, %c8_54] : memref<8x32xf32, #tpu.memory_space<vmem>>, vector<8x8xf32>
    tpu.vector_store %arg14[%c0_53, %c8_54], %76 {strides = array<i32>} : memref<8x32xf32, #tpu.memory_space<vmem>>, vector<8x8xf32>,
    %c1_55 = arith.constant 1 : index
    %c0_56 = arith.constant 0 : index
    %c0_57 = arith.constant 0 : index
    %78 = vector.load %arg12[%c1_55, %c0_56, %c0_57] : memref<4x8x1xf32, #tpu.memory_space<vmem>>, vector<1x8x1xf32>
    %79 = vector.shape_cast %78 : vector<1x8x1xf32> to vector<8x1xf32>
    %80 = vector.shape_cast %56 : vector<8x1xf32> to vector<1x8x1xf32>
    tpu.vector_store %arg12[%c1_55, %c0_56, %c0_57], %80 {strides = array<i32>} : memref<4x8x1xf32, #tpu.memory_space<vmem>>, vector<1x8x1xf32>,
    %c0_58 = arith.constant 0 : index
    %c0_59 = arith.constant 0 : index
    %c16 = arith.constant 16 : index
    %81 = vector.load %arg3[%c0_58, %c0_59, %c16] : memref<1x8x32xbf16, #tpu.memory_space<vmem>>, vector<1x8x8xbf16>
    %82 = vector.shape_cast %81 : vector<1x8x8xbf16> to vector<8x8xbf16>
    %c0_60 = arith.constant 0 : index
    %c0_61 = arith.constant 0 : index
    %c16_62 = arith.constant 16 : index
    %83 = vector.load %arg4[%c0_60, %c0_61, %c16_62] : memref<1x8x32xbf16, #tpu.memory_space<vmem>>, vector<1x8x8xbf16>
    %84 = vector.shape_cast %83 : vector<1x8x8xbf16> to vector<8x8xbf16>
    %c0_63 = arith.constant 0 : index
    %c0_64 = arith.constant 0 : index
    %c16_65 = arith.constant 16 : index
    %85 = vector.load %arg5[%c0_63, %c0_64, %c16_65] : memref<1x8x32xbf16, #tpu.memory_space<vmem>>, vector<1x8x8xbf16>
    %86 = vector.shape_cast %85 : vector<1x8x8xbf16> to vector<8x8xbf16>
    %cst_66 = arith.constant dense<0.000000e+00> : vector<8x8xf32>
    %87 = tpu.matmul %82, %84, %cst_66 {dimension_numbers = #tpu.dot_dimension_numbers<[1], [1], [0], [0], [0, 0, 1, 0], [], []>} : vector<8x8xbf16>, vector<8x8xbf16>, vector<8x8xf32> -> vector<8x8xf32>
    %88 = vector.broadcast %4 : vector<1x8xf32> to vector<8x8xf32>
    %89 = arith.addf %87, %88 : vector<8x8xf32>
    %c2 = arith.constant 2 : index
    %c0_67 = arith.constant 0 : index
    %c0_68 = arith.constant 0 : index
    %90 = vector.load %arg12[%c2, %c0_67, %c0_68] : memref<4x8x1xf32, #tpu.memory_space<vmem>>, vector<1x8x1xf32>
    %91 = vector.shape_cast %90 : vector<1x8x1xf32> to vector<8x1xf32>
    %cst_69 = arith.constant dense<0xFF800000> : vector<8xf32>
    %92 = vector.multi_reduction <maximumf>, %89, %cst_69 [1] : vector<8x8xf32> to vector<8xf32>
    %93 = vector.shape_cast %92 : vector<8xf32> to vector<8x1xf32>
    %94 = arith.maximumf %91, %93 : vector<8x1xf32>
    %95 = arith.subf %91, %94 : vector<8x1xf32>
    %96 = math.exp %95 : vector<8x1xf32>
    %97 = vector.broadcast %94 : vector<8x1xf32> to vector<8x8xf32>
    %98 = arith.subf %89, %97 : vector<8x8xf32>
    %99 = math.exp %98 : vector<8x8xf32>
    %c2_70 = arith.constant 2 : index
    %c0_71 = arith.constant 0 : index
    %c0_72 = arith.constant 0 : index
    %100 = vector.load %arg13[%c2_70, %c0_71, %c0_72] : memref<4x8x1xf32, #tpu.memory_space<vmem>>, vector<1x8x1xf32>
    %101 = vector.shape_cast %100 : vector<1x8x1xf32> to vector<8x1xf32>
    %102 = arith.mulf %96, %101 : vector<8x1xf32>
    %cst_73 = arith.constant dense<0.000000e+00> : vector<8xf32>
    %103 = vector.multi_reduction <add>, %99, %cst_73 [1] : vector<8x8xf32> to vector<8xf32>
    %104 = vector.shape_cast %103 : vector<8xf32> to vector<8x1xf32>
    %105 = arith.addf %102, %104 : vector<8x1xf32>
    %c2_74 = arith.constant 2 : index
    %c0_75 = arith.constant 0 : index
    %c0_76 = arith.constant 0 : index
    %106 = vector.load %arg13[%c2_74, %c0_75, %c0_76] : memref<4x8x1xf32, #tpu.memory_space<vmem>>, vector<1x8x1xf32>
    %107 = vector.shape_cast %106 : vector<1x8x1xf32> to vector<8x1xf32>
    %108 = vector.shape_cast %105 : vector<8x1xf32> to vector<1x8x1xf32>
    tpu.vector_store %arg13[%c2_74, %c0_75, %c0_76], %108 {strides = array<i32>} : memref<4x8x1xf32, #tpu.memory_space<vmem>>, vector<1x8x1xf32>,
    %c0_77 = arith.constant 0 : index
    %c16_78 = arith.constant 16 : index
    %109 = vector.load %arg14[%c0_77, %c16_78] : memref<8x32xf32, #tpu.memory_space<vmem>>, vector<8x8xf32>
    %110 = vector.broadcast %96 : vector<8x1xf32> to vector<8x8xf32>
    %111 = arith.mulf %110, %109 : vector<8x8xf32>
    %112 = arith.truncf %99 : vector<8x8xf32> to vector<8x8xbf16>
    %cst_79 = arith.constant dense<0.000000e+00> : vector<8x8xf32>
    %113 = tpu.matmul %112, %86, %cst_79 {dimension_numbers = #tpu.dot_dimension_numbers<[1], [0], [0], [1], [0, 0, 1, 1], [], []>} : vector<8x8xbf16>, vector<8x8xbf16>, vector<8x8xf32> -> vector<8x8xf32>
    %114 = arith.addf %111, %113 : vector<8x8xf32>
    %c0_80 = arith.constant 0 : index
    %c16_81 = arith.constant 16 : index
    %115 = vector.load %arg14[%c0_80, %c16_81] : memref<8x32xf32, #tpu.memory_space<vmem>>, vector<8x8xf32>
    tpu.vector_store %arg14[%c0_80, %c16_81], %114 {strides = array<i32>} : memref<8x32xf32, #tpu.memory_space<vmem>>, vector<8x8xf32>,
    %c2_82 = arith.constant 2 : index
    %c0_83 = arith.constant 0 : index
    %c0_84 = arith.constant 0 : index
    %116 = vector.load %arg12[%c2_82, %c0_83, %c0_84] : memref<4x8x1xf32, #tpu.memory_space<vmem>>, vector<1x8x1xf32>
    %117 = vector.shape_cast %116 : vector<1x8x1xf32> to vector<8x1xf32>
    %118 = vector.shape_cast %94 : vector<8x1xf32> to vector<1x8x1xf32>
    tpu.vector_store %arg12[%c2_82, %c0_83, %c0_84], %118 {strides = array<i32>} : memref<4x8x1xf32, #tpu.memory_space<vmem>>, vector<1x8x1xf32>,
    %c0_85 = arith.constant 0 : index
    %c0_86 = arith.constant 0 : index
    %c24 = arith.constant 24 : index
    %119 = vector.load %arg3[%c0_85, %c0_86, %c24] : memref<1x8x32xbf16, #tpu.memory_space<vmem>>, vector<1x8x8xbf16>
    %120 = vector.shape_cast %119 : vector<1x8x8xbf16> to vector<8x8xbf16>
    %c0_87 = arith.constant 0 : index
    %c0_88 = arith.constant 0 : index
    %c24_89 = arith.constant 24 : index
    %121 = vector.load %arg4[%c0_87, %c0_88, %c24_89] : memref<1x8x32xbf16, #tpu.memory_space<vmem>>, vector<1x8x8xbf16>
    %122 = vector.shape_cast %121 : vector<1x8x8xbf16> to vector<8x8xbf16>
    %c0_90 = arith.constant 0 : index
    %c0_91 = arith.constant 0 : index
    %c24_92 = arith.constant 24 : index
    %123 = vector.load %arg5[%c0_90, %c0_91, %c24_92] : memref<1x8x32xbf16, #tpu.memory_space<vmem>>, vector<1x8x8xbf16>
    %124 = vector.shape_cast %123 : vector<1x8x8xbf16> to vector<8x8xbf16>
    %cst_93 = arith.constant dense<0.000000e+00> : vector<8x8xf32>
    %125 = tpu.matmul %120, %122, %cst_93 {dimension_numbers = #tpu.dot_dimension_numbers<[1], [1], [0], [0], [0, 0, 1, 0], [], []>} : vector<8x8xbf16>, vector<8x8xbf16>, vector<8x8xf32> -> vector<8x8xf32>
    %126 = vector.broadcast %4 : vector<1x8xf32> to vector<8x8xf32>
    %127 = arith.addf %125, %126 : vector<8x8xf32>
    %c3 = arith.constant 3 : index
    %c0_94 = arith.constant 0 : index
    %c0_95 = arith.constant 0 : index
    %128 = vector.load %arg12[%c3, %c0_94, %c0_95] : memref<4x8x1xf32, #tpu.memory_space<vmem>>, vector<1x8x1xf32>
    %129 = vector.shape_cast %128 : vector<1x8x1xf32> to vector<8x1xf32>
    %cst_96 = arith.constant dense<0xFF800000> : vector<8xf32>
    %130 = vector.multi_reduction <maximumf>, %127, %cst_96 [1] : vector<8x8xf32> to vector<8xf32>
    %131 = vector.shape_cast %130 : vector<8xf32> to vector<8x1xf32>
    %132 = arith.maximumf %129, %131 : vector<8x1xf32>
    %133 = arith.subf %129, %132 : vector<8x1xf32>
    %134 = math.exp %133 : vector<8x1xf32>
    %135 = vector.broadcast %132 : vector<8x1xf32> to vector<8x8xf32>
    %136 = arith.subf %127, %135 : vector<8x8xf32>
    %137 = math.exp %136 : vector<8x8xf32>
    %c3_97 = arith.constant 3 : index
    %c0_98 = arith.constant 0 : index
    %c0_99 = arith.constant 0 : index
    %138 = vector.load %arg13[%c3_97, %c0_98, %c0_99] : memref<4x8x1xf32, #tpu.memory_space<vmem>>, vector<1x8x1xf32>
    %139 = vector.shape_cast %138 : vector<1x8x1xf32> to vector<8x1xf32>
    %140 = arith.mulf %134, %139 : vector<8x1xf32>
    %cst_100 = arith.constant dense<0.000000e+00> : vector<8xf32>
    %141 = vector.multi_reduction <add>, %137, %cst_100 [1] : vector<8x8xf32> to vector<8xf32>
    %142 = vector.shape_cast %141 : vector<8xf32> to vector<8x1xf32>
    %143 = arith.addf %140, %142 : vector<8x1xf32>
    %c3_101 = arith.constant 3 : index
    %c0_102 = arith.constant 0 : index
    %c0_103 = arith.constant 0 : index
    %144 = vector.load %arg13[%c3_101, %c0_102, %c0_103] : memref<4x8x1xf32, #tpu.memory_space<vmem>>, vector<1x8x1xf32>
    %145 = vector.shape_cast %144 : vector<1x8x1xf32> to vector<8x1xf32>
    %146 = vector.shape_cast %143 : vector<8x1xf32> to vector<1x8x1xf32>
    tpu.vector_store %arg13[%c3_101, %c0_102, %c0_103], %146 {strides = array<i32>} : memref<4x8x1xf32, #tpu.memory_space<vmem>>, vector<1x8x1xf32>,
    %c0_104 = arith.constant 0 : index
    %c24_105 = arith.constant 24 : index
    %147 = vector.load %arg14[%c0_104, %c24_105] : memref<8x32xf32, #tpu.memory_space<vmem>>, vector<8x8xf32>
    %148 = vector.broadcast %134 : vector<8x1xf32> to vector<8x8xf32>
    %149 = arith.mulf %148, %147 : vector<8x8xf32>
    %150 = arith.truncf %137 : vector<8x8xf32> to vector<8x8xbf16>
    %cst_106 = arith.constant dense<0.000000e+00> : vector<8x8xf32>
    %151 = tpu.matmul %150, %124, %cst_106 {dimension_numbers = #tpu.dot_dimension_numbers<[1], [0], [0], [1], [0, 0, 1, 1], [], []>} : vector<8x8xbf16>, vector<8x8xbf16>, vector<8x8xf32> -> vector<8x8xf32>
    %152 = arith.addf %149, %151 : vector<8x8xf32>
    %c0_107 = arith.constant 0 : index
    %c24_108 = arith.constant 24 : index
    %153 = vector.load %arg14[%c0_107, %c24_108] : memref<8x32xf32, #tpu.memory_space<vmem>>, vector<8x8xf32>
    tpu.vector_store %arg14[%c0_107, %c24_108], %152 {strides = array<i32>} : memref<8x32xf32, #tpu.memory_space<vmem>>, vector<8x8xf32>,
    %c3_109 = arith.constant 3 : index
    %c0_110 = arith.constant 0 : index
    %c0_111 = arith.constant 0 : index
    %154 = vector.load %arg12[%c3_109, %c0_110, %c0_111] : memref<4x8x1xf32, #tpu.memory_space<vmem>>, vector<1x8x1xf32>
    %155 = vector.shape_cast %154 : vector<1x8x1xf32> to vector<8x1xf32>
    %156 = vector.shape_cast %132 : vector<8x1xf32> to vector<1x8x1xf32>
    tpu.vector_store %arg12[%c3_109, %c0_110, %c0_111], %156 {strides = array<i32>} : memref<4x8x1xf32, #tpu.memory_space<vmem>>, vector<1x8x1xf32>,
    %c0_i32_112 = arith.constant 0 : i32
    %157 = arith.cmpi eq, %arg2, %c0_i32_112 : i32
    %158 = arith.extui %157 : i1 to i32
    %c0_i32_113 = arith.constant 0 : i32
    %159 = arith.cmpi ne, %158, %c0_i32_113 : i32
    scf.if %159 {
      %c0_114 = arith.constant 0 : index
      %c0_115 = arith.constant 0 : index
      %c0_116 = arith.constant 0 : index
      %160 = vector.load %arg13[%c0_114, %c0_115, %c0_116] : memref<4x8x1xf32, #tpu.memory_space<vmem>>, vector<1x8x1xf32>
      %161 = vector.shape_cast %160 : vector<1x8x1xf32> to vector<8x1xf32>
      %162 = tpu.reciprocal %161 {approx = true} : vector<8x1xf32> -> vector<8x1xf32>
      %163 = vector.shape_cast %162 : vector<8x1xf32> to vector<8x1xf32>
      %164 = vector.broadcast %163 : vector<8x1xf32> to vector<8x8xf32>
      %c1_117 = arith.constant 1 : index
      %c0_118 = arith.constant 0 : index
      %c0_119 = arith.constant 0 : index
      %165 = vector.load %arg13[%c1_117, %c0_118, %c0_119] : memref<4x8x1xf32, #tpu.memory_space<vmem>>, vector<1x8x1xf32>
      %166 = vector.shape_cast %165 : vector<1x8x1xf32> to vector<8x1xf32>
      %167 = tpu.reciprocal %166 {approx = true} : vector<8x1xf32> -> vector<8x1xf32>
      %168 = vector.shape_cast %167 : vector<8x1xf32> to vector<8x1xf32>
      %169 = vector.broadcast %168 : vector<8x1xf32> to vector<8x8xf32>
      %c2_120 = arith.constant 2 : index
      %c0_121 = arith.constant 0 : index
      %c0_122 = arith.constant 0 : index
      %170 = vector.load %arg13[%c2_120, %c0_121, %c0_122] : memref<4x8x1xf32, #tpu.memory_space<vmem>>, vector<1x8x1xf32>
      %171 = vector.shape_cast %170 : vector<1x8x1xf32> to vector<8x1xf32>
      %172 = tpu.reciprocal %171 {approx = true} : vector<8x1xf32> -> vector<8x1xf32>
      %173 = vector.shape_cast %172 : vector<8x1xf32> to vector<8x1xf32>
      %174 = vector.broadcast %173 : vector<8x1xf32> to vector<8x8xf32>
      %c3_123 = arith.constant 3 : index
      %c0_124 = arith.constant 0 : index
      %c0_125 = arith.constant 0 : index
      %175 = vector.load %arg13[%c3_123, %c0_124, %c0_125] : memref<4x8x1xf32, #tpu.memory_space<vmem>>, vector<1x8x1xf32>
      %176 = vector.shape_cast %175 : vector<1x8x1xf32> to vector<8x1xf32>
      %177 = tpu.reciprocal %176 {approx = true} : vector<8x1xf32> -> vector<8x1xf32>
      %178 = vector.shape_cast %177 : vector<8x1xf32> to vector<8x1xf32>
      %179 = vector.broadcast %178 : vector<8x1xf32> to vector<8x8xf32>
      %180 = tpu.concatenate %164, %169, %174, %179 in 1 : vector<8x8xf32>, vector<8x8xf32>, vector<8x8xf32>, vector<8x8xf32> -> vector<8x32xf32>
      %c0_126 = arith.constant 0 : index
      %c0_127 = arith.constant 0 : index
      %181 = vector.load %arg14[%c0_126, %c0_127] : memref<8x32xf32, #tpu.memory_space<vmem>>, vector<8x32xf32>
      %182 = arith.mulf %181, %180 : vector<8x32xf32>
      %183 = arith.truncf %182 : vector<8x32xf32> to vector<8x32xbf16>
      %c0_128 = arith.constant 0 : index
      %c0_129 = arith.constant 0 : index
      %184 = vector.load %arg7[%c0_128, %c0_129] : memref<32x32xbf16, #tpu.memory_space<vmem>>, vector<32x32xbf16>
      %cst_130 = arith.constant dense<0.000000e+00> : vector<8x32xf32>
      %185 = tpu.matmul %183, %184, %cst_130 {dimension_numbers = #tpu.dot_dimension_numbers<[1], [0], [0], [1], [0, 0, 1, 1], [], []>} : vector<8x32xbf16>, vector<32x32xbf16>, vector<8x32xf32> -> vector<8x32xf32>
      %c0_131 = arith.constant 0 : index
      %c0_132 = arith.constant 0 : index
      %c0_133 = arith.constant 0 : index
      %186 = vector.load %arg8[%c0_131, %c0_132, %c0_133] : memref<1x8x32xf32, #tpu.memory_space<vmem>>, vector<1x8x32xf32>
      %187 = vector.shape_cast %186 : vector<1x8x32xf32> to vector<8x32xf32>
      %188 = arith.addf %187, %185 : vector<8x32xf32>
      %cst_134 = arith.constant dense<0.000000e+00> : vector<8xf32>
      %189 = vector.multi_reduction <add>, %188, %cst_134 [1] : vector<8x32xf32> to vector<8xf32>
      %190 = vector.shape_cast %189 : vector<8xf32> to vector<8x1xf32>
      %cst_135 = arith.constant 3.200000e+01 : f32
      %191 = vector.broadcast %cst_135 : f32 to vector<8x1xf32>
      %192 = arith.divf %190, %191 : vector<8x1xf32>
      %193 = vector.broadcast %192 : vector<8x1xf32> to vector<8x32xf32>
      %194 = arith.subf %188, %193 : vector<8x32xf32>
      %195 = arith.mulf %194, %194 : vector<8x32xf32>
      %cst_136 = arith.constant dense<0.000000e+00> : vector<8xf32>
      %196 = vector.multi_reduction <add>, %195, %cst_136 [1] : vector<8x32xf32> to vector<8xf32>
      %197 = vector.shape_cast %196 : vector<8xf32> to vector<8x1xf32>
      %cst_137 = arith.constant 3.200000e+01 : f32
      %198 = vector.broadcast %cst_137 : f32 to vector<8x1xf32>
      %199 = arith.divf %197, %198 : vector<8x1xf32>
      %cst_138 = arith.constant 9.99999974E-6 : f32
      %200 = vector.broadcast %cst_138 : f32 to vector<8x1xf32>
      %201 = arith.addf %199, %200 : vector<8x1xf32>
      %202 = math.rsqrt %201 : vector<8x1xf32>
      %203 = vector.broadcast %202 : vector<8x1xf32> to vector<8x32xf32>
      %204 = arith.mulf %194, %203 : vector<8x32xf32>
      %c0_139 = arith.constant 0 : index
      %c0_140 = arith.constant 0 : index
      %205 = vector.load %arg9[%c0_139, %c0_140] : memref<1x32xf32, #tpu.memory_space<vmem>>, vector<1x32xf32>
      %206 = vector.broadcast %205 : vector<1x32xf32> to vector<8x32xf32>
      %207 = arith.mulf %204, %206 : vector<8x32xf32>
      %c0_141 = arith.constant 0 : index
      %c0_142 = arith.constant 0 : index
      %208 = vector.load %arg10[%c0_141, %c0_142] : memref<1x32xf32, #tpu.memory_space<vmem>>, vector<1x32xf32>
      %209 = vector.broadcast %208 : vector<1x32xf32> to vector<8x32xf32>
      %210 = arith.addf %207, %209 : vector<8x32xf32>
      %c0_143 = arith.constant 0 : index
      %c0_144 = arith.constant 0 : index
      %c0_145 = arith.constant 0 : index
      %211 = vector.load %arg11[%c0_143, %c0_144, %c0_145] : memref<1x8x32xf32, #tpu.memory_space<vmem>>, vector<1x8x32xf32>
      %212 = vector.shape_cast %211 : vector<1x8x32xf32> to vector<8x32xf32>
      %213 = vector.shape_cast %210 : vector<8x32xf32> to vector<1x8x32xf32>
      tpu.vector_store %arg11[%c0_143, %c0_144, %c0_145], %213 {strides = array<i32>} : memref<1x8x32xf32, #tpu.memory_space<vmem>>, vector<1x8x32xf32>,
    } else {
    }
    return
  }
  func.func @transform_0(%arg0: i32, %arg1: i32, %arg2: i32) -> (i32, i32, i32) {
    %c0_i32 = arith.constant 0 : i32
    %c0_i32_0 = arith.constant 0 : i32
    return %arg0, %arg1, %c0_i32 : i32, i32, i32
  }
  func.func @transform_1(%arg0: i32, %arg1: i32, %arg2: i32) -> (i32, i32, i32) {
    %c0_i32 = arith.constant 0 : i32
    %c0_i32_0 = arith.constant 0 : i32
    return %arg0, %arg2, %c0_i32 : i32, i32, i32
  }
  func.func @transform_2(%arg0: i32, %arg1: i32, %arg2: i32) -> (i32, i32, i32) {
    %c0_i32 = arith.constant 0 : i32
    %c0_i32_0 = arith.constant 0 : i32
    return %arg0, %arg2, %c0_i32 : i32, i32, i32
  }
  func.func @transform_3(%arg0: i32, %arg1: i32, %arg2: i32) -> (i32, i32, i32) {
    %c0_i32 = arith.constant 0 : i32
    %c0_i32_0 = arith.constant 0 : i32
    return %arg0, %c0_i32, %arg2 : i32, i32, i32
  }
  func.func @transform_4(%arg0: i32, %arg1: i32, %arg2: i32) -> (i32, i32) {
    %c0_i32 = arith.constant 0 : i32
    %c0_i32_0 = arith.constant 0 : i32
    %c0_i32_1 = arith.constant 0 : i32
    return %c0_i32, %c0_i32_0 : i32, i32
  }
  func.func @transform_5(%arg0: i32, %arg1: i32, %arg2: i32) -> (i32, i32, i32) {
    %c0_i32 = arith.constant 0 : i32
    %c0_i32_0 = arith.constant 0 : i32
    return %arg0, %arg1, %c0_i32 : i32, i32, i32
  }
  func.func @transform_6(%arg0: i32, %arg1: i32, %arg2: i32) -> (i32, i32) {
    %c0_i32 = arith.constant 0 : i32
    %c0_i32_0 = arith.constant 0 : i32
    %c0_i32_1 = arith.constant 0 : i32
    return %c0_i32, %c0_i32_0 : i32, i32
  }
  func.func @transform_7(%arg0: i32, %arg1: i32, %arg2: i32) -> (i32, i32) {
    %c0_i32 = arith.constant 0 : i32
    %c0_i32_0 = arith.constant 0 : i32
    %c0_i32_1 = arith.constant 0 : i32
    return %c0_i32, %c0_i32_0 : i32, i32
  }
  func.func @transform_8(%arg0: i32, %arg1: i32, %arg2: i32) -> (i32, i32, i32) {
    %c0_i32 = arith.constant 0 : i32
    %c0_i32_0 = arith.constant 0 : i32
    return %arg0, %arg1, %c0_i32 : i32, i32, i32
  }
}

module attributes {stable_mosaic.version = 11 : i64} {
  func.func @_linear_kernel(%arg0: i32, %arg1: i32, %arg2: i32, %arg3: memref<16x32xf32, #tpu.memory_space<vmem>>, %arg4: memref<32x128xbf16, #tpu.memory_space<vmem>>, %arg5: memref<1x128xf32, #tpu.memory_space<vmem>>, %arg6: memref<16x128xbf16, #tpu.memory_space<vmem>>, %arg7: memref<16x128xf32, #tpu.memory_space<vmem>>) attributes {dimension_semantics = [#tpu.dimension_semantics<parallel>, #tpu.dimension_semantics<parallel>, #tpu.dimension_semantics<arbitrary>], iteration_bounds = array<i64: 1, 1, 1>, scalar_prefetch = 0 : i64, scratch_operands = 1 : i64, tpu.core_type = #tpu.core_type<tc>, window_params = [{transform_indices = @transform_0, window_bounds = array<i64: 16, 32>}, {transform_indices = @transform_1, window_bounds = array<i64: 32, 128>}, {transform_indices = @transform_2, window_bounds = array<i64: 1, 128>}, {transform_indices = @transform_3, window_bounds = array<i64: 16, 128>}]} {
    %c0_i32 = arith.constant 0 : i32
    %0 = arith.cmpi eq, %arg2, %c0_i32 : i32
    %1 = arith.extui %0 : i1 to i32
    %c0_i32_0 = arith.constant 0 : i32
    %2 = arith.cmpi ne, %1, %c0_i32_0 : i32
    scf.if %2 {
      %cst_10 = arith.constant 0.000000e+00 : f32
      %13 = vector.broadcast %cst_10 : f32 to vector<16x128xf32>
      %c0_11 = arith.constant 0 : index
      %c0_12 = arith.constant 0 : index
      %14 = vector.load %arg7[%c0_11, %c0_12] : memref<16x128xf32, #tpu.memory_space<vmem>>, vector<16x128xf32>
      tpu.vector_store %arg7[%c0_11, %c0_12], %13 {strides = array<i32>} : memref<16x128xf32, #tpu.memory_space<vmem>>, vector<16x128xf32>,
    } else {
    }
    %c0 = arith.constant 0 : index
    %c0_1 = arith.constant 0 : index
    %3 = vector.load %arg7[%c0, %c0_1] : memref<16x128xf32, #tpu.memory_space<vmem>>, vector<16x128xf32>
    %c0_2 = arith.constant 0 : index
    %c0_3 = arith.constant 0 : index
    %4 = vector.load %arg3[%c0_2, %c0_3] : memref<16x32xf32, #tpu.memory_space<vmem>>, vector<16x32xf32>
    %5 = arith.truncf %4 : vector<16x32xf32> to vector<16x32xbf16>
    %c0_4 = arith.constant 0 : index
    %c0_5 = arith.constant 0 : index
    %6 = vector.load %arg4[%c0_4, %c0_5] : memref<32x128xbf16, #tpu.memory_space<vmem>>, vector<32x128xbf16>
    %cst = arith.constant dense<0.000000e+00> : vector<16x128xf32>
    %7 = tpu.matmul %5, %6, %cst {dimension_numbers = #tpu.dot_dimension_numbers<[1], [0], [0], [1], [0, 0, 1, 1], [], []>} : vector<16x32xbf16>, vector<32x128xbf16>, vector<16x128xf32> -> vector<16x128xf32>
    %8 = arith.addf %3, %7 : vector<16x128xf32>
    %c0_6 = arith.constant 0 : index
    %c0_7 = arith.constant 0 : index
    %9 = vector.load %arg7[%c0_6, %c0_7] : memref<16x128xf32, #tpu.memory_space<vmem>>, vector<16x128xf32>
    tpu.vector_store %arg7[%c0_6, %c0_7], %8 {strides = array<i32>} : memref<16x128xf32, #tpu.memory_space<vmem>>, vector<16x128xf32>,
    %c0_i32_8 = arith.constant 0 : i32
    %10 = arith.cmpi eq, %arg2, %c0_i32_8 : i32
    %11 = arith.extui %10 : i1 to i32
    %c0_i32_9 = arith.constant 0 : i32
    %12 = arith.cmpi ne, %11, %c0_i32_9 : i32
    scf.if %12 {
      %c0_10 = arith.constant 0 : index
      %c0_11 = arith.constant 0 : index
      %13 = vector.load %arg7[%c0_10, %c0_11] : memref<16x128xf32, #tpu.memory_space<vmem>>, vector<16x128xf32>
      %c0_12 = arith.constant 0 : index
      %c0_13 = arith.constant 0 : index
      %14 = vector.load %arg5[%c0_12, %c0_13] : memref<1x128xf32, #tpu.memory_space<vmem>>, vector<1x128xf32>
      %15 = vector.broadcast %14 : vector<1x128xf32> to vector<16x128xf32>
      %16 = arith.addf %13, %15 : vector<16x128xf32>
      %cst_14 = arith.constant 0.000000e+00 : f32
      %17 = vector.broadcast %cst_14 : f32 to vector<16x128xf32>
      %18 = arith.maximumf %16, %17 : vector<16x128xf32>
      %19 = arith.truncf %18 : vector<16x128xf32> to vector<16x128xbf16>
      %c0_15 = arith.constant 0 : index
      %c0_16 = arith.constant 0 : index
      %20 = vector.load %arg6[%c0_15, %c0_16] : memref<16x128xbf16, #tpu.memory_space<vmem>>, vector<16x128xbf16>
      tpu.vector_store %arg6[%c0_15, %c0_16], %19 {strides = array<i32>} : memref<16x128xbf16, #tpu.memory_space<vmem>>, vector<16x128xbf16>,
    } else {
    }
    return
  }
  func.func @transform_0(%arg0: i32, %arg1: i32, %arg2: i32) -> (i32, i32) {
    %c0_i32 = arith.constant 0 : i32
    return %arg0, %arg2 : i32, i32
  }
  func.func @transform_1(%arg0: i32, %arg1: i32, %arg2: i32) -> (i32, i32) {
    %c0_i32 = arith.constant 0 : i32
    return %arg2, %arg1 : i32, i32
  }
  func.func @transform_2(%arg0: i32, %arg1: i32, %arg2: i32) -> (i32, i32) {
    %c0_i32 = arith.constant 0 : i32
    %c0_i32_0 = arith.constant 0 : i32
    return %c0_i32, %arg1 : i32, i32
  }
  func.func @transform_3(%arg0: i32, %arg1: i32, %arg2: i32) -> (i32, i32) {
    %c0_i32 = arith.constant 0 : i32
    return %arg0, %arg1 : i32, i32
  }
}

module attributes {stable_mosaic.version = 11 : i64} {
  func.func @_linear_res_norm_kernel(%arg0: i32, %arg1: i32, %arg2: memref<16x128xbf16, #tpu.memory_space<vmem>>, %arg3: memref<128x32xbf16, #tpu.memory_space<vmem>>, %arg4: memref<1x32xf32, #tpu.memory_space<vmem>>, %arg5: memref<16x32xf32, #tpu.memory_space<vmem>>, %arg6: memref<1x32xf32, #tpu.memory_space<vmem>>, %arg7: memref<1x32xf32, #tpu.memory_space<vmem>>, %arg8: memref<16x32xf32, #tpu.memory_space<vmem>>, %arg9: memref<16x32xf32, #tpu.memory_space<vmem>>) attributes {dimension_semantics = [#tpu.dimension_semantics<parallel>, #tpu.dimension_semantics<arbitrary>], iteration_bounds = array<i64: 1, 1>, scalar_prefetch = 0 : i64, scratch_operands = 1 : i64, tpu.core_type = #tpu.core_type<tc>, window_params = [{transform_indices = @transform_0, window_bounds = array<i64: 16, 128>}, {transform_indices = @transform_1, window_bounds = array<i64: 128, 32>}, {pipeline_mode = #tpu.pipeline_mode<synchronous>, transform_indices = @transform_2, window_bounds = array<i64: 1, 32>}, {transform_indices = @transform_3, window_bounds = array<i64: 16, 32>}, {pipeline_mode = #tpu.pipeline_mode<synchronous>, transform_indices = @transform_4, window_bounds = array<i64: 1, 32>}, {pipeline_mode = #tpu.pipeline_mode<synchronous>, transform_indices = @transform_5, window_bounds = array<i64: 1, 32>}, {transform_indices = @transform_6, window_bounds = array<i64: 16, 32>}]} {
    %c0_i32 = arith.constant 0 : i32
    %0 = arith.cmpi eq, %arg1, %c0_i32 : i32
    %1 = arith.extui %0 : i1 to i32
    %c0_i32_0 = arith.constant 0 : i32
    %2 = arith.cmpi ne, %1, %c0_i32_0 : i32
    scf.if %2 {
      %cst_10 = arith.constant 0.000000e+00 : f32
      %12 = vector.broadcast %cst_10 : f32 to vector<16x32xf32>
      %c0_11 = arith.constant 0 : index
      %c0_12 = arith.constant 0 : index
      %13 = vector.load %arg9[%c0_11, %c0_12] : memref<16x32xf32, #tpu.memory_space<vmem>>, vector<16x32xf32>
      tpu.vector_store %arg9[%c0_11, %c0_12], %12 {strides = array<i32>} : memref<16x32xf32, #tpu.memory_space<vmem>>, vector<16x32xf32>,
    } else {
    }
    %c0 = arith.constant 0 : index
    %c0_1 = arith.constant 0 : index
    %3 = vector.load %arg9[%c0, %c0_1] : memref<16x32xf32, #tpu.memory_space<vmem>>, vector<16x32xf32>
    %c0_2 = arith.constant 0 : index
    %c0_3 = arith.constant 0 : index
    %4 = vector.load %arg2[%c0_2, %c0_3] : memref<16x128xbf16, #tpu.memory_space<vmem>>, vector<16x128xbf16>
    %c0_4 = arith.constant 0 : index
    %c0_5 = arith.constant 0 : index
    %5 = vector.load %arg3[%c0_4, %c0_5] : memref<128x32xbf16, #tpu.memory_space<vmem>>, vector<128x32xbf16>
    %cst = arith.constant dense<0.000000e+00> : vector<16x32xf32>
    %6 = tpu.matmul %4, %5, %cst {dimension_numbers = #tpu.dot_dimension_numbers<[1], [0], [0], [1], [0, 0, 1, 1], [], []>} : vector<16x128xbf16>, vector<128x32xbf16>, vector<16x32xf32> -> vector<16x32xf32>
    %7 = arith.addf %3, %6 : vector<16x32xf32>
    %c0_6 = arith.constant 0 : index
    %c0_7 = arith.constant 0 : index
    %8 = vector.load %arg9[%c0_6, %c0_7] : memref<16x32xf32, #tpu.memory_space<vmem>>, vector<16x32xf32>
    tpu.vector_store %arg9[%c0_6, %c0_7], %7 {strides = array<i32>} : memref<16x32xf32, #tpu.memory_space<vmem>>, vector<16x32xf32>,
    %c0_i32_8 = arith.constant 0 : i32
    %9 = arith.cmpi eq, %arg1, %c0_i32_8 : i32
    %10 = arith.extui %9 : i1 to i32
    %c0_i32_9 = arith.constant 0 : i32
    %11 = arith.cmpi ne, %10, %c0_i32_9 : i32
    scf.if %11 {
      %c0_10 = arith.constant 0 : index
      %c0_11 = arith.constant 0 : index
      %12 = vector.load %arg9[%c0_10, %c0_11] : memref<16x32xf32, #tpu.memory_space<vmem>>, vector<16x32xf32>
      %c0_12 = arith.constant 0 : index
      %c0_13 = arith.constant 0 : index
      %13 = vector.load %arg4[%c0_12, %c0_13] : memref<1x32xf32, #tpu.memory_space<vmem>>, vector<1x32xf32>
      %14 = vector.broadcast %13 : vector<1x32xf32> to vector<16x32xf32>
      %15 = arith.addf %12, %14 : vector<16x32xf32>
      %c0_14 = arith.constant 0 : index
      %c0_15 = arith.constant 0 : index
      %16 = vector.load %arg5[%c0_14, %c0_15] : memref<16x32xf32, #tpu.memory_space<vmem>>, vector<16x32xf32>
      %17 = arith.addf %15, %16 : vector<16x32xf32>
      %cst_16 = arith.constant dense<0.000000e+00> : vector<16xf32>
      %18 = vector.multi_reduction <add>, %17, %cst_16 [1] : vector<16x32xf32> to vector<16xf32>
      %19 = vector.shape_cast %18 : vector<16xf32> to vector<16x1xf32>
      %cst_17 = arith.constant 3.200000e+01 : f32
      %20 = vector.broadcast %cst_17 : f32 to vector<16x1xf32>
      %21 = arith.divf %19, %20 : vector<16x1xf32>
      %22 = vector.broadcast %21 : vector<16x1xf32> to vector<16x32xf32>
      %23 = arith.subf %17, %22 : vector<16x32xf32>
      %24 = arith.mulf %23, %23 : vector<16x32xf32>
      %cst_18 = arith.constant dense<0.000000e+00> : vector<16xf32>
      %25 = vector.multi_reduction <add>, %24, %cst_18 [1] : vector<16x32xf32> to vector<16xf32>
      %26 = vector.shape_cast %25 : vector<16xf32> to vector<16x1xf32>
      %cst_19 = arith.constant 3.200000e+01 : f32
      %27 = vector.broadcast %cst_19 : f32 to vector<16x1xf32>
      %28 = arith.divf %26, %27 : vector<16x1xf32>
      %cst_20 = arith.constant 9.99999974E-6 : f32
      %29 = vector.broadcast %cst_20 : f32 to vector<16x1xf32>
      %30 = arith.addf %28, %29 : vector<16x1xf32>
      %31 = math.rsqrt %30 : vector<16x1xf32>
      %32 = vector.broadcast %31 : vector<16x1xf32> to vector<16x32xf32>
      %33 = arith.mulf %23, %32 : vector<16x32xf32>
      %c0_21 = arith.constant 0 : index
      %c0_22 = arith.constant 0 : index
      %34 = vector.load %arg6[%c0_21, %c0_22] : memref<1x32xf32, #tpu.memory_space<vmem>>, vector<1x32xf32>
      %35 = vector.broadcast %34 : vector<1x32xf32> to vector<16x32xf32>
      %36 = arith.mulf %33, %35 : vector<16x32xf32>
      %c0_23 = arith.constant 0 : index
      %c0_24 = arith.constant 0 : index
      %37 = vector.load %arg7[%c0_23, %c0_24] : memref<1x32xf32, #tpu.memory_space<vmem>>, vector<1x32xf32>
      %38 = vector.broadcast %37 : vector<1x32xf32> to vector<16x32xf32>
      %39 = arith.addf %36, %38 : vector<16x32xf32>
      %c0_25 = arith.constant 0 : index
      %c0_26 = arith.constant 0 : index
      %40 = vector.load %arg8[%c0_25, %c0_26] : memref<16x32xf32, #tpu.memory_space<vmem>>, vector<16x32xf32>
      tpu.vector_store %arg8[%c0_25, %c0_26], %39 {strides = array<i32>} : memref<16x32xf32, #tpu.memory_space<vmem>>, vector<16x32xf32>,
    } else {
    }
    return
  }
  func.func @transform_0(%arg0: i32, %arg1: i32) -> (i32, i32) {
    %c0_i32 = arith.constant 0 : i32
    return %arg0, %arg1 : i32, i32
  }
  func.func @transform_1(%arg0: i32, %arg1: i32) -> (i32, i32) {
    %c0_i32 = arith.constant 0 : i32
    %c0_i32_0 = arith.constant 0 : i32
    return %arg1, %c0_i32 : i32, i32
  }
  func.func @transform_2(%arg0: i32, %arg1: i32) -> (i32, i32) {
    %c0_i32 = arith.constant 0 : i32
    %c0_i32_0 = arith.constant 0 : i32
    %c0_i32_1 = arith.constant 0 : i32
    return %c0_i32, %c0_i32_0 : i32, i32
  }
  func.func @transform_3(%arg0: i32, %arg1: i32) -> (i32, i32) {
    %c0_i32 = arith.constant 0 : i32
    %c0_i32_0 = arith.constant 0 : i32
    return %arg0, %c0_i32 : i32, i32
  }
  func.func @transform_4(%arg0: i32, %arg1: i32) -> (i32, i32) {
    %c0_i32 = arith.constant 0 : i32
    %c0_i32_0 = arith.constant 0 : i32
    %c0_i32_1 = arith.constant 0 : i32
    return %c0_i32, %c0_i32_0 : i32, i32
  }
  func.func @transform_5(%arg0: i32, %arg1: i32) -> (i32, i32) {
    %c0_i32 = arith.constant 0 : i32
    %c0_i32_0 = arith.constant 0 : i32
    %c0_i32_1 = arith.constant 0 : i32
    return %c0_i32, %c0_i32_0 : i32, i32
  }
  func.func @transform_6(%arg0: i32, %arg1: i32) -> (i32, i32) {
    %c0_i32 = arith.constant 0 : i32
    %c0_i32_0 = arith.constant 0 : i32
    return %arg0, %c0_i32 : i32, i32
  }
}

module attributes {stable_mosaic.version = 11 : i64} {
  func.func @_proj_kernel(%arg0: i32, %arg1: memref<16x32xf32, #tpu.memory_space<vmem>>, %arg2: memref<32x64xbf16, #tpu.memory_space<vmem>>, %arg3: memref<16x32xbf16, #tpu.memory_space<vmem>>, %arg4: memref<16x32xbf16, #tpu.memory_space<vmem>>) attributes {dimension_semantics = [#tpu.dimension_semantics<parallel>], iteration_bounds = array<i64: 1>, scalar_prefetch = 0 : i64, scratch_operands = 0 : i64, tpu.core_type = #tpu.core_type<tc>, window_params = [{transform_indices = @transform_0, window_bounds = array<i64: 16, 32>}, {pipeline_mode = #tpu.pipeline_mode<synchronous>, transform_indices = @transform_1, window_bounds = array<i64: 32, 64>}, {transform_indices = @transform_2, window_bounds = array<i64: 16, 32>}, {transform_indices = @transform_3, window_bounds = array<i64: 16, 32>}]} {
    %c0 = arith.constant 0 : index
    %c0_0 = arith.constant 0 : index
    %0 = vector.load %arg1[%c0, %c0_0] : memref<16x32xf32, #tpu.memory_space<vmem>>, vector<16x32xf32>
    %1 = arith.truncf %0 : vector<16x32xf32> to vector<16x32xbf16>
    %c0_1 = arith.constant 0 : index
    %c0_2 = arith.constant 0 : index
    %2 = vector.load %arg2[%c0_1, %c0_2] : memref<32x64xbf16, #tpu.memory_space<vmem>>, vector<32x64xbf16>
    %cst = arith.constant dense<0.000000e+00> : vector<16x64xf32>
    %3 = tpu.matmul %1, %2, %cst {dimension_numbers = #tpu.dot_dimension_numbers<[1], [0], [0], [1], [0, 0, 1, 1], [], []>} : vector<16x32xbf16>, vector<32x64xbf16>, vector<16x64xf32> -> vector<16x64xf32>
    %4 = vector.extract_strided_slice %3 {offsets = [0, 0], sizes = [16, 32], strides = [1, 1]} : vector<16x64xf32> to vector<16x32xf32>
    %5 = arith.truncf %4 : vector<16x32xf32> to vector<16x32xbf16>
    %c0_3 = arith.constant 0 : index
    %c0_4 = arith.constant 0 : index
    %6 = vector.load %arg3[%c0_3, %c0_4] : memref<16x32xbf16, #tpu.memory_space<vmem>>, vector<16x32xbf16>
    tpu.vector_store %arg3[%c0_3, %c0_4], %5 {strides = array<i32>} : memref<16x32xbf16, #tpu.memory_space<vmem>>, vector<16x32xbf16>,
    %7 = vector.extract_strided_slice %3 {offsets = [0, 32], sizes = [16, 32], strides = [1, 1]} : vector<16x64xf32> to vector<16x32xf32>
    %8 = arith.truncf %7 : vector<16x32xf32> to vector<16x32xbf16>
    %c0_5 = arith.constant 0 : index
    %c0_6 = arith.constant 0 : index
    %9 = vector.load %arg4[%c0_5, %c0_6] : memref<16x32xbf16, #tpu.memory_space<vmem>>, vector<16x32xbf16>
    tpu.vector_store %arg4[%c0_5, %c0_6], %8 {strides = array<i32>} : memref<16x32xbf16, #tpu.memory_space<vmem>>, vector<16x32xbf16>,
    return
  }
  func.func @transform_0(%arg0: i32) -> (i32, i32) {
    %c0_i32 = arith.constant 0 : i32
    %c0_i32_0 = arith.constant 0 : i32
    return %arg0, %c0_i32 : i32, i32
  }
  func.func @transform_1(%arg0: i32) -> (i32, i32) {
    %c0_i32 = arith.constant 0 : i32
    %c0_i32_0 = arith.constant 0 : i32
    %c0_i32_1 = arith.constant 0 : i32
    return %c0_i32, %c0_i32_0 : i32, i32
  }
  func.func @transform_2(%arg0: i32) -> (i32, i32) {
    %c0_i32 = arith.constant 0 : i32
    %c0_i32_0 = arith.constant 0 : i32
    return %arg0, %c0_i32 : i32, i32
  }
  func.func @transform_3(%arg0: i32) -> (i32, i32) {
    %c0_i32 = arith.constant 0 : i32
    %c0_i32_0 = arith.constant 0 : i32
    return %arg0, %c0_i32 : i32, i32
  }
}

module attributes {stable_mosaic.version = 11 : i64} {
  func.func @_linear_kernel(%arg0: i32, %arg1: i32, %arg2: i32, %arg3: memref<16x32xf32, #tpu.memory_space<vmem>>, %arg4: memref<32x64xbf16, #tpu.memory_space<vmem>>, %arg5: memref<1x64xf32, #tpu.memory_space<vmem>>, %arg6: memref<16x64xf32, #tpu.memory_space<vmem>>, %arg7: memref<16x64xf32, #tpu.memory_space<vmem>>) attributes {dimension_semantics = [#tpu.dimension_semantics<parallel>, #tpu.dimension_semantics<parallel>, #tpu.dimension_semantics<arbitrary>], iteration_bounds = array<i64: 1, 1, 1>, scalar_prefetch = 0 : i64, scratch_operands = 1 : i64, tpu.core_type = #tpu.core_type<tc>, window_params = [{transform_indices = @transform_0, window_bounds = array<i64: 16, 32>}, {transform_indices = @transform_1, window_bounds = array<i64: 32, 64>}, {transform_indices = @transform_2, window_bounds = array<i64: 1, 64>}, {transform_indices = @transform_3, window_bounds = array<i64: 16, 64>}]} {
    %c0_i32 = arith.constant 0 : i32
    %0 = arith.cmpi eq, %arg2, %c0_i32 : i32
    %1 = arith.extui %0 : i1 to i32
    %c0_i32_0 = arith.constant 0 : i32
    %2 = arith.cmpi ne, %1, %c0_i32_0 : i32
    scf.if %2 {
      %cst_10 = arith.constant 0.000000e+00 : f32
      %13 = vector.broadcast %cst_10 : f32 to vector<16x64xf32>
      %c0_11 = arith.constant 0 : index
      %c0_12 = arith.constant 0 : index
      %14 = vector.load %arg7[%c0_11, %c0_12] : memref<16x64xf32, #tpu.memory_space<vmem>>, vector<16x64xf32>
      tpu.vector_store %arg7[%c0_11, %c0_12], %13 {strides = array<i32>} : memref<16x64xf32, #tpu.memory_space<vmem>>, vector<16x64xf32>,
    } else {
    }
    %c0 = arith.constant 0 : index
    %c0_1 = arith.constant 0 : index
    %3 = vector.load %arg7[%c0, %c0_1] : memref<16x64xf32, #tpu.memory_space<vmem>>, vector<16x64xf32>
    %c0_2 = arith.constant 0 : index
    %c0_3 = arith.constant 0 : index
    %4 = vector.load %arg3[%c0_2, %c0_3] : memref<16x32xf32, #tpu.memory_space<vmem>>, vector<16x32xf32>
    %5 = arith.truncf %4 : vector<16x32xf32> to vector<16x32xbf16>
    %c0_4 = arith.constant 0 : index
    %c0_5 = arith.constant 0 : index
    %6 = vector.load %arg4[%c0_4, %c0_5] : memref<32x64xbf16, #tpu.memory_space<vmem>>, vector<32x64xbf16>
    %cst = arith.constant dense<0.000000e+00> : vector<16x64xf32>
    %7 = tpu.matmul %5, %6, %cst {dimension_numbers = #tpu.dot_dimension_numbers<[1], [0], [0], [1], [0, 0, 1, 1], [], []>} : vector<16x32xbf16>, vector<32x64xbf16>, vector<16x64xf32> -> vector<16x64xf32>
    %8 = arith.addf %3, %7 : vector<16x64xf32>
    %c0_6 = arith.constant 0 : index
    %c0_7 = arith.constant 0 : index
    %9 = vector.load %arg7[%c0_6, %c0_7] : memref<16x64xf32, #tpu.memory_space<vmem>>, vector<16x64xf32>
    tpu.vector_store %arg7[%c0_6, %c0_7], %8 {strides = array<i32>} : memref<16x64xf32, #tpu.memory_space<vmem>>, vector<16x64xf32>,
    %c0_i32_8 = arith.constant 0 : i32
    %10 = arith.cmpi eq, %arg2, %c0_i32_8 : i32
    %11 = arith.extui %10 : i1 to i32
    %c0_i32_9 = arith.constant 0 : i32
    %12 = arith.cmpi ne, %11, %c0_i32_9 : i32
    scf.if %12 {
      %c0_10 = arith.constant 0 : index
      %c0_11 = arith.constant 0 : index
      %13 = vector.load %arg7[%c0_10, %c0_11] : memref<16x64xf32, #tpu.memory_space<vmem>>, vector<16x64xf32>
      %c0_12 = arith.constant 0 : index
      %c0_13 = arith.constant 0 : index
      %14 = vector.load %arg5[%c0_12, %c0_13] : memref<1x64xf32, #tpu.memory_space<vmem>>, vector<1x64xf32>
      %15 = vector.broadcast %14 : vector<1x64xf32> to vector<16x64xf32>
      %16 = arith.addf %13, %15 : vector<16x64xf32>
      %c0_14 = arith.constant 0 : index
      %c0_15 = arith.constant 0 : index
      %17 = vector.load %arg6[%c0_14, %c0_15] : memref<16x64xf32, #tpu.memory_space<vmem>>, vector<16x64xf32>
      tpu.vector_store %arg6[%c0_14, %c0_15], %16 {strides = array<i32>} : memref<16x64xf32, #tpu.memory_space<vmem>>, vector<16x64xf32>,
    } else {
    }
    return
  }
  func.func @transform_0(%arg0: i32, %arg1: i32, %arg2: i32) -> (i32, i32) {
    %c0_i32 = arith.constant 0 : i32
    return %arg0, %arg2 : i32, i32
  }
  func.func @transform_1(%arg0: i32, %arg1: i32, %arg2: i32) -> (i32, i32) {
    %c0_i32 = arith.constant 0 : i32
    return %arg2, %arg1 : i32, i32
  }
  func.func @transform_2(%arg0: i32, %arg1: i32, %arg2: i32) -> (i32, i32) {
    %c0_i32 = arith.constant 0 : i32
    %c0_i32_0 = arith.constant 0 : i32
    return %c0_i32, %arg1 : i32, i32
  }
  func.func @transform_3(%arg0: i32, %arg1: i32, %arg2: i32) -> (i32, i32) {
    %c0_i32 = arith.constant 0 : i32
    return %arg0, %arg1 : i32, i32
  }
}

</mosaic_0001>

<bundles_post_ra>
// kernel: transformer_forward.33
= control target key start
LH: loop header
LB: loop body
LE: loop exit
PB: predicated region body
PF: predicated region fallthrough
CT: control target
= control target key end

     0   :  { %v113_v0 = vmov 0.0   ;;  %vm114_vm0 = vmmov 0   ;;  %vm31_vm1 = vcmask 261120   ;;  %vm84_vm2 = vcmask 257024   ;;  %s148_s1 = inlined_call_operand.vmem [shape: bf16[32,32], index: 1, kind: input, shape index: {}]   ;;  %s149_s0 = inlined_call_operand.vmem [shape: f32[16,32], index: 0, kind: input, shape index: {}]   ;;  %s150_s2 = inlined_call_operand.vmem [shape: bf16[16,32], index: 2, kind: output, shape index: {}]  }
   0x1   :  { %101 = vmatprep.subr.bf16.mxu0 %v113_v0  ;;  %v111_v1 = vld [vmem:[%s148_s1] sm:$0xff]   ;;  %105 = vmatprep.mubr.msk.bf16.mxu0 %vm114_vm0, %v113_v0  ;;  %v112_v2 = vld [vmem:[%s148_s1 + $0x8] sm:$0xff]  }
   0x2   :  { %102 = vmatpush3.bf16.msra.mxu0 %v111_v1  ;;  %v12_v3 = vld [vmem:[%s149_s0] sm:$0xff]  ;;  %v13_v4 = vld [vmem:[%s149_s0 + $0x8] sm:$0xff] }
   0x3   :  { %103 = vmatprep.subr.bf16.mxu0 %v113_v0  ;;  %v14_v5 = vpack.c.bf16 %v13_v4, %v12_v3 }
   0x6   :  { %104 = vmatpush3.bf16.msra.mxu0 %v112_v2 }
   0x9   :  { %106 = vmatmul.mubr.msk.bf16.vlgmr.msra.gmra.mrb[0].mxu0 %vm31_vm1, %v14_v5 }
  0xdc   :  { %v69_v6 = vpop.f32.mrb[0].mxu0 }
  0xdd   :  { %v96_v7 = vpack.c.bf16 %v69_v6, %v69_v6  ;;  %v107_v8 = vpop.f32.mrb[1].mxu0 }
  0xde   :  { %v72_v9 = vpop.f32.mrb[2].mxu0 }
  0xdf   :  { %85 = vst.msk [vmem:[%s150_s2] sm:$0xf] %vm84_vm2, %v96_v7  ;;  %v97_v10 = vpack.c.bf16 %v72_v9, %v72_v9  ;;  %v108_v11 = vpop.f32.mrb[3].mxu0 }
  0xe1   :  { %86 = vst.msk [vmem:[%s150_s2 + $0x4] sm:$0xf] %vm84_vm2, %v97_v10 }

// kernel: transformer_forward.31
= control target key start
LH: loop header
LB: loop body
LE: loop exit
PB: predicated region body
PF: predicated region fallthrough
CT: control target
= control target key end

     0   :  { %v142_v0 = vmov 0.0   ;;  %vm143_vm0 = vmmov 0   ;;  %vm34_vm1 = vcmask 261120   ;;  %vm87_vm2 = vcmask 257024   ;;  %s144_s24 = smov 64   ;;  %s145_s25 = smov 96   ;;  %s207_s1 = inlined_call_operand.vmem [shape: bf16[32,96], index: 1, kind: input, shape index: {}]   ;;  %s208_s0 = inlined_call_operand.vmem [shape: f32[16,32], index: 0, kind: input, shape index: {}]   ;;  %s209_s2 = inlined_call_operand.vmem [shape: bf16[16,32], index: 2, kind: output, shape index: {0}]   ;;  %s210_s4 = inlined_call_operand.vmem [shape: bf16[16,32], index: 4, kind: output, shape index: {2}]   ;;  %s211_s3 = inlined_call_operand.vmem [shape: bf16[16,32], index: 3, kind: output, shape index: {1}]  }
   0x1   :  { %128 = vmatprep.subr.bf16.mxu0 %v142_v0  ;;  %v140_v1 = vld [vmem:[%s207_s1] sm:$0xff]   ;;  %132 = vmatprep.mubr.msk.bf16.mxu0 %vm143_vm0, %v142_v0  ;;  %v141_v2 = vld [vmem:[%s207_s1 + $0x8] sm:$0xff]  }
   0x2   :  { %129 = vmatpush3.bf16.msra.mxu0 %v140_v1  ;;  %v15_v3 = vld [vmem:[%s208_s0] sm:$0xff]  ;;  %v16_v4 = vld [vmem:[%s208_s0 + $0x8] sm:$0xff] }
   0x3   :  { %130 = vmatprep.subr.bf16.mxu0 %v142_v0  ;;  %v17_v5 = vpack.c.bf16 %v16_v4, %v15_v3 }
   0x6   :  { %131 = vmatpush3.bf16.msra.mxu0 %v141_v2 }
   0x9   :  { %133 = vmatmul.mubr.msk.bf16.vlgmr.msra.gmra.mrb[0].mxu0 %vm34_vm1, %v17_v5 }
  0xdc   :  { %v72_v6 = vpop.f32.mrb[0].mxu0 }
  0xdd   :  { %v123_v7 = vpack.c.bf16 %v72_v6, %v72_v6  ;;  %v134_v8 = vpop.f32.mrb[1].mxu0 }
  0xde   :  { %v75_v9 = vpop.f32.mrb[2].mxu0 }
  0xdf   :  { %88 = vst.msk [vmem:[%s209_s2] sm:$0xf] %vm87_vm2, %v123_v7  ;;  %v124_v10 = vpack.c.bf16 %v75_v9, %v75_v9  ;;  %98 = vrot.lane.b32.xlu1 %v123_v7, %s144_s24  ;;  %90 = vrot.lane.b32.xlu0 %v123_v7, %s145_s25  ;;  %v135_v11 = vpop.f32.mrb[3].mxu0 }
  0xe1   :  { %89 = vst.msk [vmem:[%s209_s2 + $0x4] sm:$0xf] %vm87_vm2, %v124_v10 }
  0xe3   :  { %100 = vrot.lane.b32.xlu1 %v124_v10, %s144_s24  ;;  %92 = vrot.lane.b32.xlu0 %v124_v10, %s145_s25 }
 0x151   :  { %v99_v12 = vpop.permute.xlu1 %98  ;;  %v91_v13 = vpop.permute.xlu0 %90 }
 0x152   :  { %104 = vst.msk [vmem:[%s210_s4] sm:$0xf] %vm87_vm2, %v99_v12  ;;  %96 = vst.msk [vmem:[%s211_s3] sm:$0xf] %vm87_vm2, %v91_v13 }
 0x155   :  { %v101_v14 = vpop.permute.xlu1 %100  ;;  %v93_v15 = vpop.permute.xlu0 %92 }
 0x156   :  { %105 = vst.msk [vmem:[%s210_s4 + $0x4] sm:$0xf] %vm87_vm2, %v101_v14  ;;  %97 = vst.msk [vmem:[%s211_s3 + $0x4] sm:$0xf] %vm87_vm2, %v93_v15 }

// kernel: transformer_forward.24
= control target key start
LH: loop header
LB: loop body
LE: loop exit
PB: predicated region body
PF: predicated region fallthrough
CT: control target
= control target key end

     0   :  { %s1584_s27 = smov 0   ;;  %s1586_s28 = smov 0   ;;  %s1796_s0 = inlined_call_operand.vmem [shape: bf16[2,8,32], index: 0, kind: input, shape index: {}]   ;;  %s1797_s1 = inlined_call_operand.vmem [shape: bf16[2,8,32], index: 1, kind: input, shape index: {}]   ;;  %s1798_s2 = inlined_call_operand.vmem [shape: bf16[2,8,32], index: 2, kind: input, shape index: {}]   ;;  %s1799_s3 = inlined_call_operand.vmem [shape: f32[2,1,8], index: 3, kind: input, shape index: {}]   ;;  %s1800_s4 = inlined_call_operand.vmem [shape: bf16[32,32], index: 4, kind: input, shape index: {}]   ;;  %s1801_s5 = inlined_call_operand.vmem [shape: f32[2,8,32], index: 5, kind: input, shape index: {}]   ;;  %s1802_s6 = inlined_call_operand.vmem [shape: f32[1,32], index: 6, kind: input, shape index: {}]   ;;  %s1803_s7 = inlined_call_operand.vmem [shape: f32[1,32], index: 7, kind: input, shape index: {}]   ;;  %s1804_s8 = inlined_call_operand.vmem [shape: f32[2,8,32], index: 8, kind: output, shape index: {}]  }
   0x1   :  { %s1588_s29 = smov 0  }
   0x2 LB: > { %s37_s30 = sadd.s32 1, %s1523_s28  ;;  %p1326_p0 = scmp.ge.s32.totalorder %s1527_s29, 1  ;;  %s1527_s29 = sphi %s1588_s29, %s18_s29   ;;  %s1523_s28 = sphi %s1586_s28, %s1806_s28   ;;  %s1519_s27 = sphi %s1584_s27, %s1805_s27  }
   0x3   : > { %p39_p1 = scmp.ge.s32.totalorder %s37_s30, 2  ;;  %p342_p2 = scmp.lt.s32.totalorder %s1527_s29, 3 }
   0x5   : > { %s1808_s30 = smov (%p39_p1, %s37_s30), 0  ;;  %p343_p3 = pnand %p1326_p0, %p342_p2 }
   0x6   : > { %p407_p4 = scmp.lt.s32.totalorder (!%p343_p3), %s1519_s27, 1  ;;  %v1529_v0 = vmov (!%p343_p3), 0.0   ;;  %vm1530_vm0 = vmmov (!%p343_p3), 0   ;;  %vm474_vm1 = vcmask (!%p343_p3), 64512   ;;  %vm453_vm2 = vcmask (!%p343_p3), 7168   ;;  %s1533_s19 = smov (!%p343_p3), 120  }
   0x7   : > { %346 = sbr.rel (%p343_p3) target bundleno = 1940 (0x794), region = 52  ;;  %1376 = vmatprep.subr.bf16.mxu0 (!%p343_p3), %v1529_v0  ;;  %1378 = vmatprep.mubr.msk.bf16.mxu0 (!%p343_p3), %vm1530_vm0, %v1529_v0  ;;  %v1531_v4 = vmov (!%p343_p3), -1e+30   ;;  %458 = vst.msk [vmem:[#allocation3] sm:$0xff] (!%p343_p3), %vm453_vm2, %v1529_v0  ;;  %459 = vst.msk [vmem:[#allocation3 + $0x8] sm:$0xff] (!%p343_p3), %vm453_vm2, %v1529_v0  ;;  %v1532_v12 = vmov (!%p343_p3), 0  }
   0x8   : > { %1382 = vmatprep.subr.bf16.mxu1 (!%p343_p3), %v1529_v0  ;;  %1384 = vmatprep.mubr.msk.bf16.mxu1 (!%p343_p3), %vm1530_vm0, %v1529_v0  ;;  %454 = vst.msk [vmem:[#allocation2] sm:$0xff] (!%p343_p3), %vm453_vm2, %v1531_v4  ;;  %455 = vst.msk [vmem:[#allocation2 + $0x8] sm:$0xff] (!%p343_p3), %vm453_vm2, %v1531_v4  ;;  %s1534_s20 = smov (!%p343_p3), 112   ;;  %s1535_s21 = smov (!%p343_p3), 104   ;;  %vm556_vm3 = vcmask (!%p343_p3), 1043456   ;;  %vm462_vm4 = vcmask (!%p343_p3), 261120  }
   0x9   : > { %456 = vst.msk [vmem:[#allocation2 + $0x10] sm:$0xff] (!%p343_p3), %vm453_vm2, %v1531_v4  ;;  %457 = vst.msk [vmem:[#allocation2 + $0x18] sm:$0xff] (!%p343_p3), %vm453_vm2, %v1531_v4  ;;  %1466 = vset.pattern.permute.xlu0 (!%p343_p3), %v1532_v12  ;;  %1467 = vset.pattern.permute.xlu1 (!%p343_p3), %v1532_v12  ;;  %s1536_s25 = smov (!%p343_p3), 8   ;;  %s1537_s26 = smov (!%p343_p3), 16   ;;  %vm751_vm5 = vcmask (!%p343_p3), 130112   ;;  %vm902_vm6 = vcmask (!%p343_p3), 195712  }
   0xa   : > { %460 = vst.msk [vmem:[#allocation3 + $0x10] sm:$0xff] (!%p343_p3), %vm453_vm2, %v1529_v0  ;;  %461 = vst.msk [vmem:[#allocation3 + $0x18] sm:$0xff] (!%p343_p3), %vm453_vm2, %v1529_v0  ;;  %vm1053_vm7 = vcmask (!%p343_p3), 261312   ;;  %vm1088_vm8 = vcmask (!%p343_p3), 130048   ;;  %vm1090_vm9 = vcmask (!%p343_p3), 195584  }
   0xb   : > { %463 = vst.msk [vmem:[#allocation4] sm:$0xff] (!%p343_p3), %vm462_vm4, %v1529_v0 }
   0xe   : > { %s1810_s27 = smov (!%p407_p4, %s1519_s27), 1 }
   0xf   : > { %s1611_s9 = sshll.u32 %s1810_s27, 2  ;;  %s433_s18 = scalar_lea.vmem %s1799_s3, %s1810_s27  ;;  %v1664_v19 = vld [vmem:[#allocation2] sm:$0xff]  ;;  %v1713_v61 = vld [vmem:[#allocation2 + $0x8] sm:$0xff] }
  0x10   : > { %s1617_s12 = scalar_lea.vmem %s1797_s1, %s1611_s9  ;;  %s1624_s15 = scalar_lea.vmem %s1796_s0, %s1611_s9  ;;  %v1648_v5 = vld [vmem:[%s433_s18] ss:$0 sm:$0xff] }
  0x11   : > { %v466_v1 = vld [vmem:[%s1617_s12] sm:$0xf]  ;;  %s1678_s24 = scalar_lea.vmem %s1798_s2, %s1611_s9  ;;  %s1538_s9 = smov 24  }
  0x12   : > { %v479_v2 = vsel %vm474_vm1, %v466_v1, 0  ;;  %v465_v3 = vld [vmem:[%s1624_s15] sm:$0xf]  ;;  %s1330_s14 = sshll.u32 %s1810_s27, 3 }
  0x13   : > { %1377 = vmatpush3.bf16.xpose.msra.mxu0 %v479_v2  ;;  %v1468_v13 = vld [vmem:[%s1617_s12] ss:$0 sps:$4 sm:$0xff]   ;;  %s440_s17 = scalar_lea.vmem %s1801_s5, %s1330_s14  ;;  %s447_s23 = scalar_lea.vmem %s1804_s8, %s1330_s14 }
  0x14   : > { %1394 = vmatprep.subr.bf16.mxu0 %v1529_v0  ;;  %614 = vrot.lane.b32.xlu1 %v1468_v13, %s1533_s19  ;;  %v1469_v14 = vld [vmem:[%s1624_s15] ss:$0 sps:$4 sm:$0xff]  }
  0x15   : > { %v1470_v15 = vld [vmem:[%s1617_s12] ss:$0 sps:$4 sm:$0xff]  }
  0x16   : > { %v1471_v16 = vld [vmem:[%s1624_s15] ss:$0 sps:$4 sm:$0xff]  }
  0x17   : > { %v1472_v17 = vld [vmem:[%s1617_s12] ss:$0 sps:$4 sm:$0xff]  }
  0x18   : > { %609 = vrot.lane.b32.xlu1 %v1469_v14, %s1533_s19  ;;  %v1473_v18 = vld [vmem:[%s1624_s15] ss:$0 sps:$4 sm:$0xff]  }
  0x19   : > { %v467_v23 = vld [vmem:[%s1678_s24] sm:$0xf] }
  0x1a   : > { %1379 = vmatmul.mubr.msk.bf16.vlgmr.msra.gmra.mrb[0].mxu0 %vm474_vm1, %v465_v3  ;;  %v558_v24 = vsel %vm556_vm3, %v467_v23, 0  ;;  %v1474_v2 = vld [vmem:[%s1678_s24] ss:$0 sps:$4 sm:$0xff]   ;;  %v814_v3 = vld [vmem:[#allocation2 + $0x10] sm:$0xff] }
  0x1b   : > { %1396 = vmatprep.mubr.msk.bf16.mxu0 %vm1530_vm0, %v1529_v0  ;;  %1383 = vmatpush3.bf16.msra.mxu1 %v558_v24  ;;  %v1476_v12 = vld [vmem:[%s1678_s24] ss:$0 sps:$4 sm:$0xff]  }
  0x1c   : > { %765 = vrot.lane.b32.xlu1 %v1470_v15, %s1534_s20  ;;  %1388 = vmatprep.subr.bf16.mxu1 %v1529_v0 }
  0x20   : > { %760 = vrot.lane.b32.xlu1 %v1471_v16, %s1534_s20 }
  0x24   : > { %916 = vrot.lane.b32.xlu1 %v1472_v17, %s1535_s21 }
  0x28   : > { %911 = vrot.lane.b32.xlu1 %v1473_v18, %s1535_s21 }
  0x86   : > { %v615_v28 = vpop.permute.xlu1 %614 }
  0x87   : > { %v620_v31 = vsel %vm474_vm1, %v615_v28, 0 }
  0x8a   : > { %v610_v29 = vpop.permute.xlu1 %609 }
  0x8e   : > { %v766_v33 = vpop.permute.xlu1 %765 }
  0x8f   : > { %v771_v35 = vsel %vm474_vm1, %v766_v33, 0 }
  0x92   : > { %v761_v34 = vpop.permute.xlu1 %760 }
  0x96   : > { %v917_v36 = vpop.permute.xlu1 %916 }
  0x97   : > { %v922_v37 = vsel %vm474_vm1, %v917_v36, 0 }
  0x9a   : > { %v912_v38 = vpop.permute.xlu1 %911 }
  0xed   : > { %v515_v6 = vpop.f32.mrb[0].mxu0 }
  0xee   : > { %v516_v7 = vadd.f32 %v1648_v5, %v515_v6  ;;  %v1380_v8 = vpop.f32.mrb[1].mxu0 }
  0xef   : > { %v518_v9 = vpop.f32.mrb[2].mxu0 }
  0xf0   : > { %v1381_v10 = vpop.f32.mrb[3].mxu0  ;;  %v522_v11 = vsel %vm474_vm1, %v516_v7, -inf }
  0xf1   : > { %523 = vmax.xlane.f32.xlu0 %v522_v11  ;;  %v1475_v11 = vld [vmem:[%s1678_s24] ss:$0 sps:$4 sm:$0xff]  }
 0x17e   : > { %v524_v20 = vpop.xlane.xlu0 %523 }
 0x17f   : > { %v1667_v21 = vmax.f32 %v1664_v19, %v524_v20 }
 0x181   : > { %v526_v22 = vsub.f32 %v1664_v19, %v1667_v21  ;;  %602 = vst.msk [vmem:[#allocation2] sm:$0xff] %vm453_vm2, %v1667_v21  ;;  %531 = vperm.xlu0 %1466, %v1667_v21  }
 0x200   : > { %v532_v25 = vpop.permute.xlu0 %531 }
 0x201   : > { %v534_v26 = vsub.f32 %v516_v7, %v532_v25  ;;  %v965_v7 = vld [vmem:[#allocation2 + $0x18] sm:$0xff] }
 0x203   : > { %v535_v27 = vmul.f32 1.442695, %v534_v26 }
 0x205   : > { %1479 = vpow2.f32 %v535_v27 }
 0x20f   : > { %v1683_v30 = vpop.eup %1479 }
 0x210   : > { %v552_v32 = vpack.c.bf16 %v1683_v30, %v1683_v30  ;;  %v539_v13 = vsel %vm474_vm1, %v1683_v30, 0.0 }
 0x212   : > { %1385 = vmatmul.mubr.msk.bf16.vlgmr.msra.gmra.mrb[0].mxu1 %vm474_vm1, %v552_v32 }
 0x213   : > { %1389 = vmatpush3.bf16.xpose.msra.mxu1 %v620_v31  ;;  %1390 = vmatprep.mubr.msk.bf16.mxu1 %vm1530_vm0, %v1529_v0 }
 0x214   : > { %1400 = vmatprep.subr.bf16.mxu1 %v1529_v0 }
 0x21a   : > { %1391 = vmatmul.mubr.msk.bf16.vlgmr.msra.gmra.mrb[4].mxu1 %vm474_vm1, %v610_v29 }
 0x21b   : > { %1401 = vmatpush3.bf16.xpose.msra.mxu1 %v771_v35  ;;  %1402 = vmatprep.mubr.msk.bf16.mxu1 %vm1530_vm0, %v1529_v0 }
 0x21c   : > { %1412 = vmatprep.subr.bf16.mxu1 %v1529_v0 }
 0x222   : > { %1403 = vmatmul.mubr.msk.bf16.vlgmr.msra.gmra.mrb[8].mxu1 %vm474_vm1, %v761_v34 }
 0x223   : > { %1413 = vmatpush3.bf16.xpose.msra.mxu1 %v922_v37  ;;  %1414 = vmatprep.mubr.msk.bf16.mxu1 %vm1530_vm0, %v1529_v0 }
 0x224   : > { %1424 = vmatprep.subr.bf16.mxu1 %v1529_v0 }
 0x22a   : > { %1415 = vmatmul.mubr.msk.bf16.vlgmr.msra.gmra.mrb[12].mxu1 %vm474_vm1, %v912_v38 }
 0x22b   : > { %1428 = vmatprep.mubr.msk.bf16.mxu1 %vm1530_vm0, %v1529_v0 }
 0x2e5   : > { %v1705_v39 = vpop.f32.mrb[0].mxu1 }
 0x2e6   : > { %v1386_v40 = vpop.f32.mrb[1].mxu1 }
 0x2e7   : > { %v597_v41 = vpop.f32.mrb[2].mxu1  ;;  %v527_v40 = vmul.f32 1.442695, %v526_v22 }
 0x2e8   : > { %v1387_v42 = vpop.f32.mrb[3].mxu1 }
 0x2ed   : > { %v656_v43 = vpop.f32.mrb[4].mxu1 }
 0x2ee   : > { %v657_v44 = vadd.f32 %v1648_v5, %v656_v43  ;;  %v1392_v45 = vpop.f32.mrb[5].mxu1 }
 0x2ef   : > { %v659_v46 = vpop.f32.mrb[6].mxu1 }
 0x2f0   : > { %v1393_v47 = vpop.f32.mrb[7].mxu1  ;;  %v664_v48 = vsel %vm474_vm1, %v657_v44, -inf }
 0x2f1   : > { %665 = vmax.xlane.f32.xlu1 %v664_v48  ;;  %v537_v47 = vld [vmem:[#allocation3] sm:$0xff] }
 0x2f5   : > { %v807_v49 = vpop.f32.mrb[8].mxu1 }
 0x2f6   : > { %v808_v50 = vadd.f32 %v1648_v5, %v807_v49  ;;  %v1404_v51 = vpop.f32.mrb[9].mxu1 }
 0x2f7   : > { %v810_v52 = vpop.f32.mrb[10].mxu1 }
 0x2f8   : > { %v1405_v53 = vpop.f32.mrb[11].mxu1  ;;  %v815_v54 = vsel %vm474_vm1, %v808_v50, -inf }
 0x2f9   : > { %816 = vmax.xlane.f32.xlu0 %v815_v54  ;;  %v680_v53 = vld [vmem:[#allocation3 + $0x8] sm:$0xff] }
 0x2fd   : > { %v958_v55 = vpop.f32.mrb[12].mxu1 }
 0x2fe   : > { %v959_v56 = vadd.f32 %v1648_v5, %v958_v55  ;;  %v1416_v57 = vpop.f32.mrb[13].mxu1 }
 0x2ff   : > { %v961_v58 = vpop.f32.mrb[14].mxu1  ;;  %v831_v57 = vld [vmem:[#allocation3 + $0x10] sm:$0xff] }
 0x300   : > { %v1417_v59 = vpop.f32.mrb[15].mxu1  ;;  %v966_v60 = vsel %vm474_vm1, %v959_v56, -inf }
 0x301   : > { %967 = vmax.xlane.f32.xlu1 %v966_v60 }
 0x37e   : > { %v666_v62 = vpop.xlane.xlu1 %665 }
 0x37f   : > { %v1716_v63 = vmax.f32 %v1713_v61, %v666_v62  ;;  %v545_v62 = vld [vmem:[#allocation4] sm:$0xff] }
 0x381   : > { %v668_v1 = vsub.f32 %v1713_v61, %v1716_v63  ;;  %753 = vst.msk [vmem:[#allocation2 + $0x8] sm:$0xff] %vm453_vm2, %v1716_v63  ;;  %673 = vperm.xlu1 %1467, %v1716_v63   ;;  %v982_v61 = vld [vmem:[#allocation3 + $0x18] sm:$0xff] }
 0x383   : > { %v669_v43 = vmul.f32 1.442695, %v668_v1 }
 0x385   : > { %698 = vrot.lane.b32.xlu1 %v1474_v2, %s1533_s19 }
 0x386   : > { %v817_v4 = vpop.xlane.xlu0 %816 }
 0x387   : > { %v818_v5 = vmax.f32 %v814_v3, %v817_v4 }
 0x389   : > { %v819_v6 = vsub.f32 %v814_v3, %v818_v5  ;;  %904 = vst.msk [vmem:[#allocation2 + $0x10] sm:$0xff] %vm453_vm2, %v818_v5  ;;  %824 = vperm.xlu0 %1466, %v818_v5  }
 0x38e   : > { %v968_v8 = vpop.xlane.xlu1 %967 }
 0x38f   : > { %v969_v9 = vmax.f32 %v965_v7, %v968_v8 }
 0x391   : > { %v970_v10 = vsub.f32 %v965_v7, %v969_v9  ;;  %1055 = vst.msk [vmem:[#allocation2 + $0x18] sm:$0xff] %vm453_vm2, %v969_v9  ;;  %975 = vperm.xlu1 %1467, %v969_v9  }
 0x393   : > { %v971_v19 = vmul.f32 1.442695, %v970_v10 }
 0x395   : > { %849 = vrot.lane.b32.xlu1 %v1475_v11, %s1534_s20 }
 0x399   : > { %1000 = vrot.lane.b32.xlu1 %v1476_v12, %s1535_s21 }
 0x3bd   : > { %540 = vadd.xlane.f32.xlu1 %v539_v13 }
 0x400   : > { %v674_v14 = vpop.permute.xlu1 %673 }
 0x401   : > { %v676_v15 = vsub.f32 %v657_v44, %v674_v14  ;;  %v820_v44 = vmul.f32 1.442695, %v819_v6 }
 0x403   : > { %v677_v16 = vmul.f32 1.442695, %v676_v15 }
 0x404   : > { %v699_v17 = vpop.permute.xlu1 %698 }
 0x405   : > { %1481 = vpow2.f32 %v677_v16  ;;  %v704_v18 = vsel %vm556_vm3, %v699_v17, 0 }
 0x406   : > { %1395 = vmatpush3.bf16.msra.mxu0 %v704_v18 }
 0x407   : > { %1406 = vmatprep.subr.bf16.mxu0 %v1529_v0 }
 0x408   : > { %v825_v20 = vpop.permute.xlu0 %824 }
 0x409   : > { %v827_v23 = vsub.f32 %v808_v50, %v825_v20 }
 0x40b   : > { %v828_v24 = vmul.f32 1.442695, %v827_v23 }
 0x40d   : > { %1483 = vpow2.f32 %v828_v24 }
 0x40f   : > { %v1482_v25 = vpop.eup %1481 }
 0x410   : > { %v976_v26 = vpop.permute.xlu1 %975  ;;  %v682_v27 = vsel %vm474_vm1, %v1482_v25, 0.0  ;;  %v694_v28 = vpack.c.bf16 %v1482_v25, %v1482_v25 }
 0x411   : > { %v978_v29 = vsub.f32 %v959_v56, %v976_v26  ;;  %683 = vadd.xlane.f32.xlu0 %v682_v27  ;;  %v1477_v26 = vld [vmem:[%s1800_s4] sm:$0xff]   ;;  %v1478_v27 = vld [vmem:[%s1800_s4 + $0x8] sm:$0xff]  }
 0x412   : > { %1397 = vmatmul.mubr.msk.bf16.vlgmr.msra.gmra.mrb[4].mxu0 %vm474_vm1, %v694_v28  ;;  %1425 = vmatpush3.bf16.msra.mxu1 %v1477_v26 }
 0x413   : > { %v979_v30 = vmul.f32 1.442695, %v978_v29  ;;  %1408 = vmatprep.mubr.msk.bf16.mxu0 %vm1530_vm0, %v1529_v0  ;;  %1426 = vmatprep.subr.bf16.mxu1 %v1529_v0 }
 0x414   : > { %v850_v31 = vpop.permute.xlu1 %849 }
 0x415   : > { %1485 = vpow2.f32 %v979_v30  ;;  %v855_v32 = vsel %vm556_vm3, %v850_v31, 0 }
 0x416   : > { %1407 = vmatpush3.bf16.msra.mxu0 %v855_v32  ;;  %1487 = vpow2.f32 %v527_v40  ;;  %1427 = vmatpush3.bf16.msra.mxu1 %v1478_v27 }
 0x417   : > { %v1484_v33 = vpop.eup %1483  ;;  %1418 = vmatprep.subr.bf16.mxu0 %v1529_v0  ;;  %1489 = vpow2.f32 %v669_v43 }
 0x418   : > { %v833_v34 = vsel %vm474_vm1, %v1484_v33, 0.0  ;;  %v845_v35 = vpack.c.bf16 %v1484_v33, %v1484_v33  ;;  %v1001_v36 = vpop.permute.xlu1 %1000  ;;  %1491 = vpow2.f32 %v820_v44 }
 0x419   : > { %834 = vadd.xlane.f32.xlu0 %v833_v34  ;;  %v1006_v37 = vsel %vm556_vm3, %v1001_v36, 0  ;;  %1493 = vpow2.f32 %v971_v19 }
 0x41a   : > { %1409 = vmatmul.mubr.msk.bf16.vlgmr.msra.gmra.mrb[8].mxu0 %vm474_vm1, %v845_v35 }
 0x41b   : > { %1419 = vmatpush3.bf16.msra.mxu0 %v1006_v37  ;;  %1420 = vmatprep.mubr.msk.bf16.mxu0 %vm1530_vm0, %v1529_v0 }
 0x41f   : > { %v1486_v38 = vpop.eup %1485 }
 0x420   : > { %v984_v41 = vsel %vm474_vm1, %v1486_v38, 0.0  ;;  %v996_v42 = vpack.c.bf16 %v1486_v38, %v1486_v38  ;;  %v1488_v21 = vpop.eup %1487 }
 0x421   : > { %985 = vadd.xlane.f32.xlu1 %v984_v41  ;;  %v1490_v22 = vpop.eup %1489  ;;  %v538_v48 = vmul.f32 %v1488_v21, %v537_v47 }
 0x422   : > { %1421 = vmatmul.mubr.msk.bf16.vlgmr.msra.gmra.mrb[12].mxu0 %vm474_vm1, %v996_v42  ;;  %v1492_v45 = vpop.eup %1491  ;;  %v681_v54 = vmul.f32 %v1490_v22, %v680_v53 }
 0x423   : > { %v1494_v46 = vpop.eup %1493  ;;  %v832_v58 = vmul.f32 %v1492_v45, %v831_v57 }
 0x424   : > { %v983_v63 = vmul.f32 %v1494_v46, %v982_v61 }
 0x42f   : > { %548 = vperm.xlu0 %1466, %v1488_v21  }
 0x432   : > { %690 = vperm.xlu1 %1467, %v1490_v22  }
 0x433   : > { %841 = vperm.xlu0 %1466, %v1492_v45  }
 0x437   : > { %992 = vperm.xlu0 %1466, %v1494_v46  }
 0x44a   : > { %v541_v49 = vpop.xlane.xlu1 %540 }
 0x44b   : > { %v542_v50 = vadd.f32 %v541_v49, %v538_v48 }
 0x44d   : > { %544 = vst.msk [vmem:[#allocation3] sm:$0xff] %vm453_vm2, %v542_v50  ;;  %v1155_v50 = vld [vmem:[%s440_s17] sm:$0xff] }
 0x454   : > { %v1059_v51 = vld [vmem:[#allocation3] sm:$0xff] }
 0x455   : > { %1495 = vrcp.f32 %v1059_v51 }
 0x45f   : > { %v1496_v52 = vpop.eup %1495 }
 0x460   : > { %1063 = vperm.xlu0 %1466, %v1496_v52  }
 0x49e   : > { %v684_v55 = vpop.xlane.xlu0 %683 }
 0x49f   : > { %v685_v56 = vadd.f32 %v684_v55, %v681_v54 }
 0x4a1   : > { %686 = vst.msk [vmem:[#allocation3 + $0x8] sm:$0xff] %vm453_vm2, %v685_v56 }
 0x4a6   : > { %v835_v59 = vpop.xlane.xlu0 %834 }
 0x4a7   : > { %v836_v60 = vadd.f32 %v835_v59, %v832_v58 }
 0x4a8   : > { %v1066_v8 = vld [vmem:[#allocation3 + $0x8] sm:$0xff] }
 0x4a9   : > { %837 = vst.msk [vmem:[#allocation3 + $0x10] sm:$0xff] %vm453_vm2, %v836_v60 }
 0x4ae   : > { %v986_v1 = vpop.xlane.xlu1 %985  ;;  %v549_v2 = vpop.permute.xlu0 %548 }
 0x4af   : > { %v987_v3 = vadd.f32 %v986_v1, %v983_v63  ;;  %v551_v4 = vmul.f32 %v549_v2, %v545_v62 }
 0x4b0   : > { %v1073_v5 = vld [vmem:[#allocation3 + $0x10] sm:$0xff] }
 0x4b1   : > { %988 = vst.msk [vmem:[#allocation3 + $0x18] sm:$0xff] %vm453_vm2, %v987_v3  ;;  %v600_v6 = vadd.f32 %v1705_v39, %v551_v4  ;;  %1497 = vrcp.f32 %v1073_v5  ;;  %v1353_v3 = vld [vmem:[%s1802_s6] ss:$0 sm:$0xff] }
 0x4b2   : > { %1499 = vrcp.f32 %v1066_v8  ;;  %v691_v28 = vpop.permute.xlu1 %690  ;;  %v842_v33 = vpop.permute.xlu0 %841  ;;  %v1354_v5 = vld [vmem:[%s1803_s7] ss:$0 sm:$0xff] }
 0x4b3   : > { %601 = vst.msk [vmem:[#allocation4] sm:$0xff] %vm474_vm1, %v600_v6 }
 0x4b6   : > { %v993_v40 = vpop.permute.xlu0 %992 }
 0x4b8   : > { %v1080_v13 = vld [vmem:[#allocation3 + $0x18] sm:$0xff] }
 0x4b9   : > { %1501 = vrcp.f32 %v1080_v13 }
 0x4ba   : > { %v687_v29 = vld [vmem:[#allocation4] sm:$0xff] }
 0x4bb   : > { %v1498_v7 = vpop.eup %1497  ;;  %v693_v30 = vmul.f32 %v691_v28, %v687_v29 }
 0x4bc   : > { %1077 = vperm.xlu0 %1466, %v1498_v7   ;;  %v1500_v17 = vpop.eup %1499 }
 0x4c3   : > { %v1502_v25 = vpop.eup %1501 }
 0x4df   : > { %v1064_v44 = vpop.permute.xlu0 %1063 }
 0x4e5   : > { %v740_v9 = vpop.f32.mrb[4].mxu0 }
 0x4e6   : > { %747 = vrot.lane.b32.xlu1 %v740_v9, %s1536_s25  ;;  %v1398_v10 = vpop.f32.mrb[5].mxu0 }
 0x4e7   : > { %v743_v11 = vpop.f32.mrb[6].mxu0 }
 0x4e8   : > { %v1399_v12 = vpop.f32.mrb[7].mxu0 }
 0x4ed   : > { %v891_v14 = vpop.f32.mrb[8].mxu0 }
 0x4ee   : > { %898 = vrot.lane.b32.xlu1 %v891_v14, %s1537_s26  ;;  %v1410_v15 = vpop.f32.mrb[9].mxu0 }
 0x4ef   : > { %v894_v16 = vpop.f32.mrb[10].mxu0 }
 0x4f0   : > { %v1411_v39 = vpop.f32.mrb[11].mxu0 }
 0x4f2   : > { %1070 = vperm.xlu1 %1467, %v1500_v17  }
 0x4f5   : > { %v1042_v18 = vpop.f32.mrb[12].mxu0 }
 0x4f6   : > { %1049 = vrot.lane.b32.xlu1 %v1042_v18, %s1538_s9  ;;  %v1422_v20 = vpop.f32.mrb[13].mxu0 }
 0x4f7   : > { %v1045_v23 = vpop.f32.mrb[14].mxu0 }
 0x4f8   : > { %v1423_v24 = vpop.f32.mrb[15].mxu0 }
 0x4fa   : > { %1084 = vperm.xlu1 %1467, %v1502_v25  }
 0x53b   : > { %v1078_v22 = vpop.permute.xlu0 %1077 }
 0x558   : > { %v748_v31 = vpop.permute.xlu1 %747 }
 0x559   : > { %v750_v32 = vadd.f32 %v748_v31, %v693_v30 }
 0x55b   : > { %752 = vst.msk [vmem:[#allocation4] sm:$0xff] %vm751_vm5, %v750_v32 }
 0x560   : > { %v899_v36 = vpop.permute.xlu1 %898 }
 0x562   : > { %v838_v34 = vld [vmem:[#allocation4] sm:$0xff] }
 0x563   : > { %v844_v35 = vmul.f32 %v842_v33, %v838_v34 }
 0x565   : > { %v901_v37 = vadd.f32 %v899_v36, %v844_v35 }
 0x567   : > { %903 = vst.msk [vmem:[#allocation4] sm:$0xff] %vm902_vm6, %v901_v37 }
 0x56e   : > { %v989_v38 = vld [vmem:[#allocation4] sm:$0xff] }
 0x56f   : > { %v995_v41 = vmul.f32 %v993_v40, %v989_v38 }
 0x571   : > { %v1071_v0 = vpop.permute.xlu1 %1070 }
 0x572   : > { %v1087_v19 = vsel %vm474_vm1, %v1064_v44, %v1071_v0 }
 0x573   : > { %v1089_v45 = vsel %vm1088_vm8, %v1087_v19, %v1078_v22 }
 0x575   : > { %v1050_v42 = vpop.permute.xlu1 %1049 }
 0x576   : > { %v1052_v43 = vadd.f32 %v1050_v42, %v995_v41 }
 0x578   : > { %1054 = vst.msk [vmem:[#allocation4] sm:$0xff] %vm1053_vm7, %v1052_v43 }
 0x579   : > { %v1085_v21 = vpop.permute.xlu1 %1084 }
 0x57a   : > { %v1091_v47 = vsel %vm1090_vm9, %v1089_v45, %v1085_v21 }
 0x57f   : > { %v1092_v46 = vld [vmem:[#allocation4] sm:$0xff] }
 0x580   : > { %v1093_v48 = vmul.f32 %v1092_v46, %v1091_v47 }
 0x582   : > { %v1094_v49 = vpack.c.bf16 %v1093_v48, %v1093_v48 }
 0x584   : > { %1429 = vmatmul.mubr.msk.bf16.vlgmr.msra.gmra.mrb[16].mxu1 %vm462_vm4, %v1094_v49 }
 0x657   : > { %v1149_v51 = vpop.f32.mrb[16].mxu1 }
 0x658   : > { %v1156_v52 = vadd.f32 %v1155_v50, %v1149_v51  ;;  %v1430_v53 = vpop.f32.mrb[17].mxu1 }
 0x659   : > { %v1152_v54 = vpop.f32.mrb[18].mxu1 }
 0x65a   : > { %v1431_v55 = vpop.f32.mrb[19].mxu1  ;;  %v1157_v56 = vsel %vm462_vm4, %v1156_v52, 0.0 }
 0x65b   : > { %1158 = vadd.xlane.f32.xlu0 %v1157_v56 }
 0x6e8   : > { %v1159_v57 = vpop.xlane.xlu0 %1158 }
 0x6e9   : > { %v1161_v58 = vmul.f32 0.03125, %v1159_v57 }
 0x6eb   : > { %v1162_v59 = vsub.f32 %v1156_v52, %v1161_v58 }
 0x6ed   : > { %v1163_v60 = vmul.f32 %v1162_v59, %v1162_v59 }
 0x6ef   : > { %v1164_v61 = vsel %vm462_vm4, %v1163_v60, 0.0 }
 0x6f0   : > { %1165 = vadd.xlane.f32.xlu1 %v1164_v61 }
 0x77d   : > { %v1166_v62 = vpop.xlane.xlu1 %1165 }
 0x77e   : > { %v1167_v63 = vmul.f32 0.03125, %v1166_v62 }
 0x780   : > { %v1168_v1 = vadd.f32 1e-05, %v1167_v63 }
 0x782   : > { %1503 = vrsqrt.f32 %v1168_v1 }
 0x78c   : > { %v1504_v2 = vpop.eup %1503 }
 0x78d   : > { %v1170_v4 = vmul.f32 %v1504_v2, %v1162_v59 }
 0x78f   : > { %v1178_v6 = vmul.f32 %v1353_v3, %v1170_v4 }
 0x791   : > { %v1186_v7 = vadd.f32 %v1354_v5, %v1178_v6 }
 0x793   : > { %1187 = vst.msk [vmem:[%s447_s23] sm:$0xff] %vm462_vm4, %v1186_v7 }
 0x794 PF: > { %s18_s29 = sadd.s32 1, %s1527_s29   ;;  %s1805_s27 = smov %s1523_s28 }
 0x795   : > { %p15_p5 = scmp.ge.s32.totalorder %s18_s29, 4   ;;  %s1806_s28 = smov %s1808_s30 }
 0x797   :  { %17 = sbr.rel (!%p15_p5) target bundleno = 2 (0x2), region = 108 }

// kernel: transformer_forward.25
= control target key start
LH: loop header
LB: loop body
LE: loop exit
PB: predicated region body
PF: predicated region fallthrough
CT: control target
= control target key end

     0   :  { %v149_v0 = vmov 0.0   ;;  %vm150_vm0 = vmmov 0   ;;  %vm42_vm1 = vcmask 261120   ;;  %s189_s1 = inlined_call_operand.vmem [shape: bf16[32,128], index: 1, kind: input, shape index: {}]   ;;  %s190_s0 = inlined_call_operand.vmem [shape: f32[16,32], index: 0, kind: input, shape index: {}]   ;;  %s191_s2 = inlined_call_operand.vmem [shape: f32[1,128], index: 2, kind: input, shape index: {}]   ;;  %s192_s3 = inlined_call_operand.vmem [shape: bf16[16,128], index: 3, kind: output, shape index: {}]  }
   0x1   :  { %137 = vmatprep.subr.bf16.mxu0 %v149_v0  ;;  %v147_v1 = vld [vmem:[%s189_s1] sm:$0xff]   ;;  %141 = vmatprep.mubr.msk.bf16.mxu0 %vm150_vm0, %v149_v0  ;;  %v148_v2 = vld [vmem:[%s189_s1 + $0x8] sm:$0xff]  }
   0x2   :  { %138 = vmatpush3.bf16.msra.mxu0 %v147_v1  ;;  %v23_v3 = vld [vmem:[%s190_s0] sm:$0xff]  ;;  %v24_v4 = vld [vmem:[%s190_s0 + $0x8] sm:$0xff] }
   0x3   :  { %139 = vmatprep.subr.bf16.mxu0 %v149_v0  ;;  %v25_v5 = vpack.c.bf16 %v24_v4, %v23_v3  ;;  %v124_v6 = vld [vmem:[%s191_s2] ss:$0 sm:$0xff] }
   0x6   :  { %140 = vmatpush3.bf16.msra.mxu0 %v148_v2 }
   0x9   :  { %142 = vmatmul.mubr.msk.bf16.vlgmr.msra.gmra.mrb[0].mxu0 %vm42_vm1, %v25_v5 }
  0xdc   :  { %v80_v7 = vpop.f32.mrb[0].mxu0 }
  0xdd   :  { %v103_v8 = vadd.f32 %v124_v6, %v80_v7  ;;  %v143_v9 = vpop.f32.mrb[1].mxu0 }
  0xde   :  { %v83_v10 = vpop.f32.mrb[2].mxu0 }
  0xdf   :  { %v104_v11 = vadd.f32 %v124_v6, %v83_v10  ;;  %v144_v12 = vpop.f32.mrb[3].mxu0  ;;  %v105_v13 = vmax.f32 %v103_v8, 0.0 }
  0xe1   :  { %v106_v14 = vmax.f32 %v104_v11, 0.0 }
  0xe3   :  { %v132_v15 = vpack.c.bf16 %v106_v14, %v105_v13 }
  0xe5   :  { %133 = vst [vmem:[%s192_s3] sm:$0xff] %v132_v15  }

// kernel: transformer_forward.32
= control target key start
LH: loop header
LB: loop body
LE: loop exit
PB: predicated region body
PF: predicated region fallthrough
CT: control target
= control target key end

     0   :  { %s1606_s27 = smov 0   ;;  %s1608_s28 = smov 0   ;;  %s1818_s0 = inlined_call_operand.vmem [shape: bf16[2,8,32], index: 0, kind: input, shape index: {}]   ;;  %s1819_s1 = inlined_call_operand.vmem [shape: bf16[2,8,32], index: 1, kind: input, shape index: {}]   ;;  %s1820_s2 = inlined_call_operand.vmem [shape: bf16[2,8,32], index: 2, kind: input, shape index: {}]   ;;  %s1821_s3 = inlined_call_operand.vmem [shape: f32[2,1,8], index: 3, kind: input, shape index: {}]   ;;  %s1822_s4 = inlined_call_operand.vmem [shape: bf16[32,32], index: 4, kind: input, shape index: {}]   ;;  %s1823_s5 = inlined_call_operand.vmem [shape: f32[2,8,32], index: 5, kind: input, shape index: {}]   ;;  %s1824_s6 = inlined_call_operand.vmem [shape: f32[1,32], index: 6, kind: input, shape index: {}]   ;;  %s1825_s7 = inlined_call_operand.vmem [shape: f32[1,32], index: 7, kind: input, shape index: {}]   ;;  %s1826_s8 = inlined_call_operand.vmem [shape: f32[2,8,32], index: 8, kind: output, shape index: {}]  }
   0x1   :  { %s1610_s29 = smov 0  }
   0x2 LB: > { %s37_s30 = sadd.s32 1, %s1545_s28  ;;  %p1348_p0 = scmp.ge.s32.totalorder %s1549_s29, 1  ;;  %s1549_s29 = sphi %s1610_s29, %s18_s29   ;;  %s1545_s28 = sphi %s1608_s28, %s1828_s28   ;;  %s1541_s27 = sphi %s1606_s27, %s1827_s27  }
   0x3   : > { %p39_p1 = scmp.ge.s32.totalorder %s37_s30, 2  ;;  %p342_p2 = scmp.lt.s32.totalorder %s1549_s29, 3 }
   0x5   : > { %s1830_s30 = smov (%p39_p1, %s37_s30), 0  ;;  %p343_p3 = pnand %p1348_p0, %p342_p2 }
   0x6   : > { %p407_p4 = scmp.lt.s32.totalorder (!%p343_p3), %s1541_s27, 1  ;;  %v1551_v0 = vmov (!%p343_p3), 0.0   ;;  %vm1552_vm0 = vmmov (!%p343_p3), 0   ;;  %vm492_vm1 = vcmask (!%p343_p3), 64512   ;;  %vm453_vm2 = vcmask (!%p343_p3), 7168   ;;  %s1555_s19 = smov (!%p343_p3), 120  }
   0x7   : > { %346 = sbr.rel (%p343_p3) target bundleno = 1940 (0x794), region = 52  ;;  %1398 = vmatprep.subr.bf16.mxu0 (!%p343_p3), %v1551_v0  ;;  %1400 = vmatprep.mubr.msk.bf16.mxu0 (!%p343_p3), %vm1552_vm0, %v1551_v0  ;;  %v1553_v4 = vmov (!%p343_p3), -1e+30   ;;  %458 = vst.msk [vmem:[#allocation3] sm:$0xff] (!%p343_p3), %vm453_vm2, %v1551_v0  ;;  %459 = vst.msk [vmem:[#allocation3 + $0x8] sm:$0xff] (!%p343_p3), %vm453_vm2, %v1551_v0  ;;  %v472_v5 = vlaneseq (!%p343_p3)  ;;  %v1554_v17 = vmov (!%p343_p3), 0  }
   0x8   : > { %1404 = vmatprep.subr.bf16.mxu1 (!%p343_p3), %v1551_v0  ;;  %1406 = vmatprep.mubr.msk.bf16.mxu1 (!%p343_p3), %vm1552_vm0, %v1551_v0  ;;  %454 = vst.msk [vmem:[#allocation2] sm:$0xff] (!%p343_p3), %vm453_vm2, %v1553_v4  ;;  %455 = vst.msk [vmem:[#allocation2 + $0x8] sm:$0xff] (!%p343_p3), %vm453_vm2, %v1553_v4  ;;  %s1556_s20 = smov (!%p343_p3), 112   ;;  %s1557_s21 = smov (!%p343_p3), 104   ;;  %vm574_vm4 = vcmask (!%p343_p3), 1043456   ;;  %vm462_vm5 = vcmask (!%p343_p3), 261120  }
   0x9   : > { %456 = vst.msk [vmem:[#allocation2 + $0x10] sm:$0xff] (!%p343_p3), %vm453_vm2, %v1553_v4  ;;  %457 = vst.msk [vmem:[#allocation2 + $0x18] sm:$0xff] (!%p343_p3), %vm453_vm2, %v1553_v4  ;;  %v473_v6 = vshrl.u32 (!%p343_p3), %v472_v5, 7  ;;  %v477_v7 = vand.u32 (!%p343_p3), 127, %v472_v5  ;;  %1488 = vset.pattern.permute.xlu0 (!%p343_p3), %v1554_v17  ;;  %1489 = vset.pattern.permute.xlu1 (!%p343_p3), %v1554_v17  ;;  %s1558_s25 = smov (!%p343_p3), 8   ;;  %s1559_s26 = smov (!%p343_p3), 16  }
   0xa   : > { %460 = vst.msk [vmem:[#allocation3 + $0x10] sm:$0xff] (!%p343_p3), %vm453_vm2, %v1551_v0  ;;  %461 = vst.msk [vmem:[#allocation3 + $0x18] sm:$0xff] (!%p343_p3), %vm453_vm2, %v1551_v0  ;;  %vm769_vm6 = vcmask (!%p343_p3), 130112   ;;  %vm920_vm7 = vcmask (!%p343_p3), 195712   ;;  %vm1071_vm8 = vcmask (!%p343_p3), 261312   ;;  %vm1110_vm9 = vcmask (!%p343_p3), 130048  }
   0xb   : > { %vm480_vm3 = vcmp.ge.s32.totalorder (!%p343_p3), %v473_v6, %v477_v7  ;;  %463 = vst.msk [vmem:[#allocation4] sm:$0xff] (!%p343_p3), %vm462_vm5, %v1551_v0  ;;  %vm1112_vm10 = vcmask (!%p343_p3), 195584  }
   0xc   : > { %v481_v9 = vsel (!%p343_p3), %vm480_vm3, 0.0, %v1553_v4 }
   0xe   : > { %s1832_s27 = smov (!%p407_p4, %s1541_s27), 1 }
   0xf   : > { %s1633_s9 = sshll.u32 %s1832_s27, 2  ;;  %s433_s18 = scalar_lea.vmem %s1821_s3, %s1832_s27  ;;  %v1686_v24 = vld [vmem:[#allocation2] sm:$0xff] }
  0x10   : > { %s1639_s12 = scalar_lea.vmem %s1819_s1, %s1633_s9  ;;  %s1646_s15 = scalar_lea.vmem %s1818_s0, %s1633_s9  ;;  %v1354_v8 = vld [vmem:[%s433_s18] ss:$0 sm:$0xff] }
  0x11   : > { %v490_v1 = vld [vmem:[%s1639_s12] sm:$0xf]  ;;  %v1670_v10 = vadd.f32 %v1354_v8, %v481_v9  ;;  %s1700_s24 = scalar_lea.vmem %s1820_s2, %s1633_s9  ;;  %v832_v8 = vld [vmem:[#allocation2 + $0x10] sm:$0xff]  ;;  %s1560_s9 = smov 24  }
  0x12   : > { %v497_v2 = vsel %vm492_vm1, %v490_v1, 0  ;;  %v489_v3 = vld [vmem:[%s1646_s15] sm:$0xf]  ;;  %s1352_s14 = sshll.u32 %s1832_s27, 3 }
  0x13   : > { %1399 = vmatpush3.bf16.xpose.msra.mxu0 %v497_v2  ;;  %v1490_v18 = vld [vmem:[%s1639_s12] ss:$0 sps:$4 sm:$0xff]   ;;  %s440_s17 = scalar_lea.vmem %s1823_s5, %s1352_s14  ;;  %s447_s23 = scalar_lea.vmem %s1826_s8, %s1352_s14 }
  0x14   : > { %1416 = vmatprep.subr.bf16.mxu0 %v1551_v0  ;;  %632 = vrot.lane.b32.xlu1 %v1490_v18, %s1555_s19  ;;  %v1491_v19 = vld [vmem:[%s1646_s15] ss:$0 sps:$4 sm:$0xff]  }
  0x15   : > { %v1492_v20 = vld [vmem:[%s1639_s12] ss:$0 sps:$4 sm:$0xff]  }
  0x16   : > { %v1493_v21 = vld [vmem:[%s1646_s15] ss:$0 sps:$4 sm:$0xff]  }
  0x17   : > { %v1494_v22 = vld [vmem:[%s1639_s12] ss:$0 sps:$4 sm:$0xff]  }
  0x18   : > { %627 = vrot.lane.b32.xlu1 %v1491_v19, %s1555_s19  ;;  %v1495_v23 = vld [vmem:[%s1646_s15] ss:$0 sps:$4 sm:$0xff]  }
  0x19   : > { %v491_v28 = vld [vmem:[%s1700_s24] sm:$0xf] }
  0x1a   : > { %1401 = vmatmul.mubr.msk.bf16.vlgmr.msra.gmra.mrb[0].mxu0 %vm492_vm1, %v489_v3  ;;  %v576_v29 = vsel %vm574_vm4, %v491_v28, 0  ;;  %v1735_v3 = vld [vmem:[#allocation2 + $0x8] sm:$0xff]  ;;  %v1496_v7 = vld [vmem:[%s1700_s24] ss:$0 sps:$4 sm:$0xff]  }
  0x1b   : > { %1418 = vmatprep.mubr.msk.bf16.mxu0 %vm1552_vm0, %v1551_v0  ;;  %1405 = vmatpush3.bf16.msra.mxu1 %v576_v29  ;;  %v1498_v17 = vld [vmem:[%s1700_s24] ss:$0 sps:$4 sm:$0xff]  }
  0x1c   : > { %783 = vrot.lane.b32.xlu1 %v1492_v20, %s1556_s20  ;;  %1410 = vmatprep.subr.bf16.mxu1 %v1551_v0 }
  0x20   : > { %778 = vrot.lane.b32.xlu1 %v1493_v21, %s1556_s20 }
  0x24   : > { %934 = vrot.lane.b32.xlu1 %v1494_v22, %s1557_s21 }
  0x28   : > { %929 = vrot.lane.b32.xlu1 %v1495_v23, %s1557_s21 }
  0x86   : > { %v633_v33 = vpop.permute.xlu1 %632 }
  0x87   : > { %v638_v36 = vsel %vm492_vm1, %v633_v33, 0 }
  0x8a   : > { %v628_v34 = vpop.permute.xlu1 %627 }
  0x8e   : > { %v784_v38 = vpop.permute.xlu1 %783 }
  0x8f   : > { %v789_v40 = vsel %vm492_vm1, %v784_v38, 0 }
  0x92   : > { %v779_v39 = vpop.permute.xlu1 %778 }
  0x96   : > { %v935_v41 = vpop.permute.xlu1 %934 }
  0x97   : > { %v940_v42 = vsel %vm492_vm1, %v935_v41, 0 }
  0x9a   : > { %v930_v43 = vpop.permute.xlu1 %929 }
  0xed   : > { %v533_v11 = vpop.f32.mrb[0].mxu0 }
  0xee   : > { %v534_v12 = vadd.f32 %v533_v11, %v1670_v10  ;;  %v1402_v13 = vpop.f32.mrb[1].mxu0 }
  0xef   : > { %v536_v14 = vpop.f32.mrb[2].mxu0 }
  0xf0   : > { %v1403_v15 = vpop.f32.mrb[3].mxu0  ;;  %v540_v16 = vsel %vm492_vm1, %v534_v12, -inf }
  0xf1   : > { %541 = vmax.xlane.f32.xlu0 %v540_v16  ;;  %v1497_v16 = vld [vmem:[%s1700_s24] ss:$0 sps:$4 sm:$0xff]  }
 0x17e   : > { %v542_v25 = vpop.xlane.xlu0 %541 }
 0x17f   : > { %v1689_v26 = vmax.f32 %v1686_v24, %v542_v25 }
 0x181   : > { %v544_v27 = vsub.f32 %v1686_v24, %v1689_v26  ;;  %620 = vst.msk [vmem:[#allocation2] sm:$0xff] %vm453_vm2, %v1689_v26  ;;  %549 = vperm.xlu0 %1488, %v1689_v26  }
 0x200   : > { %v550_v30 = vpop.permute.xlu0 %549 }
 0x201   : > { %v552_v31 = vsub.f32 %v534_v12, %v550_v30  ;;  %v983_v12 = vld [vmem:[#allocation2 + $0x18] sm:$0xff] }
 0x203   : > { %v553_v32 = vmul.f32 1.442695, %v552_v31 }
 0x205   : > { %1501 = vpow2.f32 %v553_v32 }
 0x20f   : > { %v1705_v35 = vpop.eup %1501 }
 0x210   : > { %v570_v37 = vpack.c.bf16 %v1705_v35, %v1705_v35  ;;  %v557_v18 = vsel %vm492_vm1, %v1705_v35, 0.0 }
 0x212   : > { %1407 = vmatmul.mubr.msk.bf16.vlgmr.msra.gmra.mrb[0].mxu1 %vm492_vm1, %v570_v37 }
 0x213   : > { %1411 = vmatpush3.bf16.xpose.msra.mxu1 %v638_v36  ;;  %1412 = vmatprep.mubr.msk.bf16.mxu1 %vm1552_vm0, %v1551_v0 }
 0x214   : > { %1422 = vmatprep.subr.bf16.mxu1 %v1551_v0 }
 0x21a   : > { %1413 = vmatmul.mubr.msk.bf16.vlgmr.msra.gmra.mrb[4].mxu1 %vm492_vm1, %v628_v34 }
 0x21b   : > { %1423 = vmatpush3.bf16.xpose.msra.mxu1 %v789_v40  ;;  %1424 = vmatprep.mubr.msk.bf16.mxu1 %vm1552_vm0, %v1551_v0 }
 0x21c   : > { %1434 = vmatprep.subr.bf16.mxu1 %v1551_v0 }
 0x222   : > { %1425 = vmatmul.mubr.msk.bf16.vlgmr.msra.gmra.mrb[8].mxu1 %vm492_vm1, %v779_v39 }
 0x223   : > { %1435 = vmatpush3.bf16.xpose.msra.mxu1 %v940_v42  ;;  %1436 = vmatprep.mubr.msk.bf16.mxu1 %vm1552_vm0, %v1551_v0 }
 0x224   : > { %1446 = vmatprep.subr.bf16.mxu1 %v1551_v0 }
 0x22a   : > { %1437 = vmatmul.mubr.msk.bf16.vlgmr.msra.gmra.mrb[12].mxu1 %vm492_vm1, %v930_v43 }
 0x22b   : > { %1450 = vmatprep.mubr.msk.bf16.mxu1 %vm1552_vm0, %v1551_v0 }
 0x2e5   : > { %v1727_v44 = vpop.f32.mrb[0].mxu1 }
 0x2e6   : > { %v1408_v45 = vpop.f32.mrb[1].mxu1 }
 0x2e7   : > { %v615_v46 = vpop.f32.mrb[2].mxu1  ;;  %v545_v45 = vmul.f32 1.442695, %v544_v27 }
 0x2e8   : > { %v1409_v47 = vpop.f32.mrb[3].mxu1 }
 0x2ed   : > { %v674_v48 = vpop.f32.mrb[4].mxu1 }
 0x2ee   : > { %v675_v49 = vadd.f32 %v674_v48, %v1670_v10  ;;  %v1414_v50 = vpop.f32.mrb[5].mxu1 }
 0x2ef   : > { %v677_v51 = vpop.f32.mrb[6].mxu1 }
 0x2f0   : > { %v1415_v52 = vpop.f32.mrb[7].mxu1  ;;  %v682_v53 = vsel %vm492_vm1, %v675_v49, -inf }
 0x2f1   : > { %683 = vmax.xlane.f32.xlu1 %v682_v53  ;;  %v555_v52 = vld [vmem:[#allocation3] sm:$0xff] }
 0x2f5   : > { %v825_v54 = vpop.f32.mrb[8].mxu1 }
 0x2f6   : > { %v826_v55 = vadd.f32 %v825_v54, %v1670_v10  ;;  %v1426_v56 = vpop.f32.mrb[9].mxu1 }
 0x2f7   : > { %v828_v57 = vpop.f32.mrb[10].mxu1 }
 0x2f8   : > { %v1427_v58 = vpop.f32.mrb[11].mxu1  ;;  %v833_v59 = vsel %vm492_vm1, %v826_v55, -inf }
 0x2f9   : > { %834 = vmax.xlane.f32.xlu0 %v833_v59  ;;  %v698_v58 = vld [vmem:[#allocation3 + $0x8] sm:$0xff] }
 0x2fd   : > { %v976_v60 = vpop.f32.mrb[12].mxu1 }
 0x2fe   : > { %v977_v61 = vadd.f32 %v976_v60, %v1670_v10  ;;  %v1438_v62 = vpop.f32.mrb[13].mxu1 }
 0x2ff   : > { %v979_v63 = vpop.f32.mrb[14].mxu1  ;;  %v849_v62 = vld [vmem:[#allocation3 + $0x10] sm:$0xff] }
 0x300   : > { %v1439_v1 = vpop.f32.mrb[15].mxu1  ;;  %v984_v2 = vsel %vm492_vm1, %v977_v61, -inf }
 0x301   : > { %985 = vmax.xlane.f32.xlu1 %v984_v2 }
 0x37e   : > { %v684_v4 = vpop.xlane.xlu1 %683 }
 0x37f   : > { %v1738_v5 = vmax.f32 %v1735_v3, %v684_v4  ;;  %v563_v4 = vld [vmem:[#allocation4] sm:$0xff] }
 0x381   : > { %v686_v6 = vsub.f32 %v1735_v3, %v1738_v5  ;;  %771 = vst.msk [vmem:[#allocation2 + $0x8] sm:$0xff] %vm453_vm2, %v1738_v5  ;;  %691 = vperm.xlu1 %1489, %v1738_v5   ;;  %v1000_v3 = vld [vmem:[#allocation3 + $0x18] sm:$0xff] }
 0x383   : > { %v687_v48 = vmul.f32 1.442695, %v686_v6 }
 0x385   : > { %716 = vrot.lane.b32.xlu1 %v1496_v7, %s1555_s19 }
 0x386   : > { %v835_v9 = vpop.xlane.xlu0 %834 }
 0x387   : > { %v836_v10 = vmax.f32 %v832_v8, %v835_v9 }
 0x389   : > { %v837_v11 = vsub.f32 %v832_v8, %v836_v10  ;;  %922 = vst.msk [vmem:[#allocation2 + $0x10] sm:$0xff] %vm453_vm2, %v836_v10  ;;  %842 = vperm.xlu0 %1488, %v836_v10  }
 0x38e   : > { %v986_v13 = vpop.xlane.xlu1 %985 }
 0x38f   : > { %v987_v14 = vmax.f32 %v983_v12, %v986_v13 }
 0x391   : > { %v988_v15 = vsub.f32 %v983_v12, %v987_v14  ;;  %1073 = vst.msk [vmem:[#allocation2 + $0x18] sm:$0xff] %vm453_vm2, %v987_v14  ;;  %993 = vperm.xlu1 %1489, %v987_v14  }
 0x393   : > { %v989_v24 = vmul.f32 1.442695, %v988_v15 }
 0x395   : > { %867 = vrot.lane.b32.xlu1 %v1497_v16, %s1556_s20 }
 0x399   : > { %1018 = vrot.lane.b32.xlu1 %v1498_v17, %s1557_s21 }
 0x3bd   : > { %558 = vadd.xlane.f32.xlu1 %v557_v18 }
 0x400   : > { %v692_v19 = vpop.permute.xlu1 %691 }
 0x401   : > { %v694_v20 = vsub.f32 %v675_v49, %v692_v19  ;;  %v838_v49 = vmul.f32 1.442695, %v837_v11 }
 0x403   : > { %v695_v21 = vmul.f32 1.442695, %v694_v20 }
 0x404   : > { %v717_v22 = vpop.permute.xlu1 %716 }
 0x405   : > { %1503 = vpow2.f32 %v695_v21  ;;  %v722_v23 = vsel %vm574_vm4, %v717_v22, 0 }
 0x406   : > { %1417 = vmatpush3.bf16.msra.mxu0 %v722_v23 }
 0x407   : > { %1428 = vmatprep.subr.bf16.mxu0 %v1551_v0 }
 0x408   : > { %v843_v25 = vpop.permute.xlu0 %842 }
 0x409   : > { %v845_v28 = vsub.f32 %v826_v55, %v843_v25 }
 0x40b   : > { %v846_v29 = vmul.f32 1.442695, %v845_v28 }
 0x40d   : > { %1505 = vpow2.f32 %v846_v29 }
 0x40f   : > { %v1504_v30 = vpop.eup %1503 }
 0x410   : > { %v994_v31 = vpop.permute.xlu1 %993  ;;  %v700_v32 = vsel %vm492_vm1, %v1504_v30, 0.0  ;;  %v712_v33 = vpack.c.bf16 %v1504_v30, %v1504_v30 }
 0x411   : > { %v996_v34 = vsub.f32 %v977_v61, %v994_v31  ;;  %701 = vadd.xlane.f32.xlu0 %v700_v32  ;;  %v1499_v31 = vld [vmem:[%s1822_s4] sm:$0xff]   ;;  %v1500_v32 = vld [vmem:[%s1822_s4 + $0x8] sm:$0xff]  }
 0x412   : > { %1419 = vmatmul.mubr.msk.bf16.vlgmr.msra.gmra.mrb[4].mxu0 %vm492_vm1, %v712_v33  ;;  %1447 = vmatpush3.bf16.msra.mxu1 %v1499_v31 }
 0x413   : > { %v997_v35 = vmul.f32 1.442695, %v996_v34  ;;  %1430 = vmatprep.mubr.msk.bf16.mxu0 %vm1552_vm0, %v1551_v0  ;;  %1448 = vmatprep.subr.bf16.mxu1 %v1551_v0 }
 0x414   : > { %v868_v36 = vpop.permute.xlu1 %867 }
 0x415   : > { %1507 = vpow2.f32 %v997_v35  ;;  %v873_v37 = vsel %vm574_vm4, %v868_v36, 0 }
 0x416   : > { %1429 = vmatpush3.bf16.msra.mxu0 %v873_v37  ;;  %1509 = vpow2.f32 %v545_v45  ;;  %1449 = vmatpush3.bf16.msra.mxu1 %v1500_v32 }
 0x417   : > { %v1506_v38 = vpop.eup %1505  ;;  %1440 = vmatprep.subr.bf16.mxu0 %v1551_v0  ;;  %1511 = vpow2.f32 %v687_v48 }
 0x418   : > { %v851_v39 = vsel %vm492_vm1, %v1506_v38, 0.0  ;;  %v863_v40 = vpack.c.bf16 %v1506_v38, %v1506_v38  ;;  %v1019_v41 = vpop.permute.xlu1 %1018  ;;  %1513 = vpow2.f32 %v838_v49 }
 0x419   : > { %852 = vadd.xlane.f32.xlu0 %v851_v39  ;;  %v1024_v42 = vsel %vm574_vm4, %v1019_v41, 0  ;;  %1515 = vpow2.f32 %v989_v24 }
 0x41a   : > { %1431 = vmatmul.mubr.msk.bf16.vlgmr.msra.gmra.mrb[8].mxu0 %vm492_vm1, %v863_v40 }
 0x41b   : > { %1441 = vmatpush3.bf16.msra.mxu0 %v1024_v42  ;;  %1442 = vmatprep.mubr.msk.bf16.mxu0 %vm1552_vm0, %v1551_v0 }
 0x41f   : > { %v1508_v43 = vpop.eup %1507 }
 0x420   : > { %v1002_v46 = vsel %vm492_vm1, %v1508_v43, 0.0  ;;  %v1014_v47 = vpack.c.bf16 %v1508_v43, %v1508_v43  ;;  %v1510_v26 = vpop.eup %1509 }
 0x421   : > { %1003 = vadd.xlane.f32.xlu1 %v1002_v46  ;;  %v1512_v27 = vpop.eup %1511  ;;  %v556_v53 = vmul.f32 %v1510_v26, %v555_v52 }
 0x422   : > { %1443 = vmatmul.mubr.msk.bf16.vlgmr.msra.gmra.mrb[12].mxu0 %vm492_vm1, %v1014_v47  ;;  %v1514_v50 = vpop.eup %1513  ;;  %v699_v59 = vmul.f32 %v1512_v27, %v698_v58 }
 0x423   : > { %v1516_v51 = vpop.eup %1515  ;;  %v850_v63 = vmul.f32 %v1514_v50, %v849_v62 }
 0x424   : > { %v1001_v5 = vmul.f32 %v1516_v51, %v1000_v3 }
 0x42f   : > { %566 = vperm.xlu0 %1488, %v1510_v26  }
 0x432   : > { %708 = vperm.xlu1 %1489, %v1512_v27  }
 0x433   : > { %859 = vperm.xlu0 %1488, %v1514_v50  }
 0x437   : > { %1010 = vperm.xlu0 %1488, %v1516_v51  }
 0x44a   : > { %v559_v54 = vpop.xlane.xlu1 %558 }
 0x44b   : > { %v560_v55 = vadd.f32 %v559_v54, %v556_v53 }
 0x44d   : > { %562 = vst.msk [vmem:[#allocation3] sm:$0xff] %vm453_vm2, %v560_v55  ;;  %v1177_v55 = vld [vmem:[%s440_s17] sm:$0xff] }
 0x454   : > { %v1077_v56 = vld [vmem:[#allocation3] sm:$0xff] }
 0x455   : > { %1517 = vrcp.f32 %v1077_v56 }
 0x45f   : > { %v1518_v57 = vpop.eup %1517 }
 0x460   : > { %1081 = vperm.xlu0 %1488, %v1518_v57  }
 0x49e   : > { %v702_v60 = vpop.xlane.xlu0 %701 }
 0x49f   : > { %v703_v61 = vadd.f32 %v702_v60, %v699_v59 }
 0x4a1   : > { %704 = vst.msk [vmem:[#allocation3 + $0x8] sm:$0xff] %vm453_vm2, %v703_v61 }
 0x4a6   : > { %v853_v1 = vpop.xlane.xlu0 %852 }
 0x4a7   : > { %v854_v2 = vadd.f32 %v853_v1, %v850_v63 }
 0x4a8   : > { %v1085_v13 = vld [vmem:[#allocation3 + $0x8] sm:$0xff] }
 0x4a9   : > { %855 = vst.msk [vmem:[#allocation3 + $0x10] sm:$0xff] %vm453_vm2, %v854_v2 }
 0x4ae   : > { %v1004_v6 = vpop.xlane.xlu1 %1003  ;;  %v567_v7 = vpop.permute.xlu0 %566 }
 0x4af   : > { %v1005_v8 = vadd.f32 %v1004_v6, %v1001_v5  ;;  %v569_v9 = vmul.f32 %v567_v7, %v563_v4 }
 0x4b0   : > { %v1093_v10 = vld [vmem:[#allocation3 + $0x10] sm:$0xff] }
 0x4b1   : > { %1006 = vst.msk [vmem:[#allocation3 + $0x18] sm:$0xff] %vm453_vm2, %v1005_v8  ;;  %v618_v11 = vadd.f32 %v1727_v44, %v569_v9  ;;  %1519 = vrcp.f32 %v1093_v10  ;;  %v1375_v8 = vld [vmem:[%s1824_s6] ss:$0 sm:$0xff] }
 0x4b2   : > { %1521 = vrcp.f32 %v1085_v13  ;;  %v709_v33 = vpop.permute.xlu1 %708  ;;  %v860_v38 = vpop.permute.xlu0 %859  ;;  %v1376_v10 = vld [vmem:[%s1825_s7] ss:$0 sm:$0xff] }
 0x4b3   : > { %619 = vst.msk [vmem:[#allocation4] sm:$0xff] %vm492_vm1, %v618_v11 }
 0x4b6   : > { %v1011_v45 = vpop.permute.xlu0 %1010 }
 0x4b8   : > { %v1101_v18 = vld [vmem:[#allocation3 + $0x18] sm:$0xff] }
 0x4b9   : > { %1523 = vrcp.f32 %v1101_v18 }
 0x4ba   : > { %v705_v34 = vld [vmem:[#allocation4] sm:$0xff] }
 0x4bb   : > { %v1520_v12 = vpop.eup %1519  ;;  %v711_v35 = vmul.f32 %v709_v33, %v705_v34 }
 0x4bc   : > { %1097 = vperm.xlu0 %1488, %v1520_v12   ;;  %v1522_v22 = vpop.eup %1521 }
 0x4c3   : > { %v1524_v30 = vpop.eup %1523 }
 0x4df   : > { %v1082_v49 = vpop.permute.xlu0 %1081 }
 0x4e5   : > { %v758_v14 = vpop.f32.mrb[4].mxu0 }
 0x4e6   : > { %765 = vrot.lane.b32.xlu1 %v758_v14, %s1558_s25  ;;  %v1420_v15 = vpop.f32.mrb[5].mxu0 }
 0x4e7   : > { %v761_v16 = vpop.f32.mrb[6].mxu0 }
 0x4e8   : > { %v1421_v17 = vpop.f32.mrb[7].mxu0 }
 0x4ed   : > { %v909_v19 = vpop.f32.mrb[8].mxu0 }
 0x4ee   : > { %916 = vrot.lane.b32.xlu1 %v909_v19, %s1559_s26  ;;  %v1432_v20 = vpop.f32.mrb[9].mxu0 }
 0x4ef   : > { %v912_v21 = vpop.f32.mrb[10].mxu0 }
 0x4f0   : > { %v1433_v44 = vpop.f32.mrb[11].mxu0 }
 0x4f2   : > { %1089 = vperm.xlu1 %1489, %v1522_v22  }
 0x4f5   : > { %v1060_v23 = vpop.f32.mrb[12].mxu0 }
 0x4f6   : > { %1067 = vrot.lane.b32.xlu1 %v1060_v23, %s1560_s9  ;;  %v1444_v25 = vpop.f32.mrb[13].mxu0 }
 0x4f7   : > { %v1063_v28 = vpop.f32.mrb[14].mxu0 }
 0x4f8   : > { %v1445_v29 = vpop.f32.mrb[15].mxu0 }
 0x4fa   : > { %1105 = vperm.xlu1 %1489, %v1524_v30  }
 0x53b   : > { %v1098_v27 = vpop.permute.xlu0 %1097 }
 0x558   : > { %v766_v36 = vpop.permute.xlu1 %765 }
 0x559   : > { %v768_v37 = vadd.f32 %v766_v36, %v711_v35 }
 0x55b   : > { %770 = vst.msk [vmem:[#allocation4] sm:$0xff] %vm769_vm6, %v768_v37 }
 0x560   : > { %v917_v41 = vpop.permute.xlu1 %916 }
 0x562   : > { %v856_v39 = vld [vmem:[#allocation4] sm:$0xff] }
 0x563   : > { %v862_v40 = vmul.f32 %v860_v38, %v856_v39 }
 0x565   : > { %v919_v42 = vadd.f32 %v917_v41, %v862_v40 }
 0x567   : > { %921 = vst.msk [vmem:[#allocation4] sm:$0xff] %vm920_vm7, %v919_v42 }
 0x56e   : > { %v1007_v43 = vld [vmem:[#allocation4] sm:$0xff] }
 0x56f   : > { %v1013_v46 = vmul.f32 %v1011_v45, %v1007_v43 }
 0x571   : > { %v1090_v0 = vpop.permute.xlu1 %1089 }
 0x572   : > { %v1109_v24 = vsel %vm492_vm1, %v1082_v49, %v1090_v0 }
 0x573   : > { %v1111_v50 = vsel %vm1110_vm9, %v1109_v24, %v1098_v27 }
 0x575   : > { %v1068_v47 = vpop.permute.xlu1 %1067 }
 0x576   : > { %v1070_v48 = vadd.f32 %v1068_v47, %v1013_v46 }
 0x578   : > { %1072 = vst.msk [vmem:[#allocation4] sm:$0xff] %vm1071_vm8, %v1070_v48 }
 0x579   : > { %v1106_v26 = vpop.permute.xlu1 %1105 }
 0x57a   : > { %v1113_v52 = vsel %vm1112_vm10, %v1111_v50, %v1106_v26 }
 0x57f   : > { %v1114_v51 = vld [vmem:[#allocation4] sm:$0xff] }
 0x580   : > { %v1115_v53 = vmul.f32 %v1114_v51, %v1113_v52 }
 0x582   : > { %v1116_v54 = vpack.c.bf16 %v1115_v53, %v1115_v53 }
 0x584   : > { %1451 = vmatmul.mubr.msk.bf16.vlgmr.msra.gmra.mrb[16].mxu1 %vm462_vm5, %v1116_v54 }
 0x657   : > { %v1171_v56 = vpop.f32.mrb[16].mxu1 }
 0x658   : > { %v1178_v57 = vadd.f32 %v1177_v55, %v1171_v56  ;;  %v1452_v58 = vpop.f32.mrb[17].mxu1 }
 0x659   : > { %v1174_v59 = vpop.f32.mrb[18].mxu1 }
 0x65a   : > { %v1453_v60 = vpop.f32.mrb[19].mxu1  ;;  %v1179_v61 = vsel %vm462_vm5, %v1178_v57, 0.0 }
 0x65b   : > { %1180 = vadd.xlane.f32.xlu0 %v1179_v61 }
 0x6e8   : > { %v1181_v62 = vpop.xlane.xlu0 %1180 }
 0x6e9   : > { %v1183_v63 = vmul.f32 0.03125, %v1181_v62 }
 0x6eb   : > { %v1184_v1 = vsub.f32 %v1178_v57, %v1183_v63 }
 0x6ed   : > { %v1185_v2 = vmul.f32 %v1184_v1, %v1184_v1 }
 0x6ef   : > { %v1186_v3 = vsel %vm462_vm5, %v1185_v2, 0.0 }
 0x6f0   : > { %1187 = vadd.xlane.f32.xlu1 %v1186_v3 }
 0x77d   : > { %v1188_v4 = vpop.xlane.xlu1 %1187 }
 0x77e   : > { %v1189_v5 = vmul.f32 0.03125, %v1188_v4 }
 0x780   : > { %v1190_v6 = vadd.f32 1e-05, %v1189_v5 }
 0x782   : > { %1525 = vrsqrt.f32 %v1190_v6 }
 0x78c   : > { %v1526_v7 = vpop.eup %1525 }
 0x78d   : > { %v1192_v9 = vmul.f32 %v1526_v7, %v1184_v1 }
 0x78f   : > { %v1200_v11 = vmul.f32 %v1375_v8, %v1192_v9 }
 0x791   : > { %v1208_v12 = vadd.f32 %v1376_v10, %v1200_v11 }
 0x793   : > { %1209 = vst.msk [vmem:[%s447_s23] sm:$0xff] %vm462_vm5, %v1208_v12 }
 0x794 PF: > { %s18_s29 = sadd.s32 1, %s1549_s29   ;;  %s1827_s27 = smov %s1545_s28 }
 0x795   : > { %p15_p5 = scmp.ge.s32.totalorder %s18_s29, 4   ;;  %s1828_s28 = smov %s1830_s30 }
 0x797   :  { %17 = sbr.rel (!%p15_p5) target bundleno = 2 (0x2), region = 115 }

// kernel: transformer_forward.26
= control target key start
LH: loop header
LB: loop body
LE: loop exit
PB: predicated region body
PF: predicated region fallthrough
CT: control target
= control target key end

     0   :  { %vm28_vm0 = vcmask 261120   ;;  %v276_v0 = vmov 0.0   ;;  %vm277_vm1 = vmmov 0   ;;  %s371_s1 = inlined_call_operand.vmem [shape: bf16[128,32], index: 1, kind: input, shape index: {}]   ;;  %s372_s0 = inlined_call_operand.vmem [shape: bf16[16,128], index: 0, kind: input, shape index: {}]   ;;  %s373_s2 = inlined_call_operand.vmem [shape: f32[1,32], index: 2, kind: input, shape index: {}]   ;;  %s374_s3 = inlined_call_operand.vmem [shape: f32[16,32], index: 3, kind: input, shape index: {}]   ;;  %s375_s4 = inlined_call_operand.vmem [shape: f32[1,32], index: 4, kind: input, shape index: {}]   ;;  %s376_s5 = inlined_call_operand.vmem [shape: f32[1,32], index: 5, kind: input, shape index: {}]   ;;  %s377_s6 = inlined_call_operand.vmem [shape: f32[16,32], index: 6, kind: output, shape index: {}]  }
   0x1   :  { %241 = vmatprep.subr.bf16.mxu0 %v276_v0  ;;  %v263_v1 = vld [vmem:[%s371_s1] sm:$0xff]   ;;  %257 = vmatprep.mubr.msk.bf16.mxu0 %vm277_vm1, %v276_v0  ;;  %29 = vst.msk [vmem:[#allocation2] sm:$0xff] %vm28_vm0, %v276_v0  ;;  %30 = vst.msk [vmem:[#allocation2 + $0x8] sm:$0xff] %vm28_vm0, %v276_v0  ;;  %v264_v2 = vld [vmem:[%s371_s1 + $0x8] sm:$0xff]  }
   0x2   :  { %242 = vmatpush3.bf16.msra.mxu0 %v263_v1  ;;  %v265_v3 = vld [vmem:[%s371_s1 + $0x10] sm:$0xff]   ;;  %v266_v4 = vld [vmem:[%s371_s1 + $0x18] sm:$0xff]   ;;  %v267_v5 = vld [vmem:[%s371_s1 + $0x20] sm:$0xff]  }
   0x3   :  { %243 = vmatprep.subr.bf16.mxu0 %v276_v0  ;;  %v268_v6 = vld [vmem:[%s371_s1 + $0x28] sm:$0xff]   ;;  %v269_v7 = vld [vmem:[%s371_s1 + $0x30] sm:$0xff]   ;;  %v270_v8 = vld [vmem:[%s371_s1 + $0x38] sm:$0xff]  }
   0x4   :  { %v271_v9 = vld [vmem:[%s372_s0] sm:$0xff]   ;;  %v166_v23 = vld [vmem:[%s374_s3 + $0x8] sm:$0xff] }
   0x5   :  { %v229_v18 = vld [vmem:[%s373_s2] ss:$0 sm:$0xff] }
   0x6   :  { %244 = vmatpush3.bf16.msra.mxu0 %v264_v2  ;;  %v165_v20 = vld [vmem:[%s374_s3] sm:$0xff] }
   0x7   :  { %245 = vmatprep.subr.bf16.mxu0 %v276_v0  ;;  %v230_v46 = vld [vmem:[%s375_s4] ss:$0 sm:$0xff] }
   0x8   :  { %v31_v10 = vld [vmem:[#allocation2] sm:$0xff]  ;;  %v32_v12 = vld [vmem:[#allocation2 + $0x8] sm:$0xff] }
   0x9   :  { %v231_v48 = vld [vmem:[%s376_s5] ss:$0 sm:$0xff] }
   0xa   :  { %246 = vmatpush3.bf16.msra.mxu0 %v265_v3 }
   0xb   :  { %247 = vmatprep.subr.bf16.mxu0 %v276_v0 }
   0xe   :  { %248 = vmatpush3.bf16.msra.mxu0 %v266_v4 }
   0xf   :  { %249 = vmatprep.subr.bf16.mxu0 %v276_v0 }
  0x12   :  { %250 = vmatpush3.bf16.msra.mxu0 %v267_v5 }
  0x13   :  { %251 = vmatprep.subr.bf16.mxu0 %v276_v0 }
  0x16   :  { %252 = vmatpush3.bf16.msra.mxu0 %v268_v6 }
  0x17   :  { %253 = vmatprep.subr.bf16.mxu0 %v276_v0 }
  0x1a   :  { %254 = vmatpush3.bf16.msra.mxu0 %v269_v7 }
  0x1b   :  { %255 = vmatprep.subr.bf16.mxu0 %v276_v0 }
  0x1e   :  { %256 = vmatpush3.bf16.msra.mxu0 %v270_v8 }
  0x21   :  { %258 = vmatmul.mubr.bf16.vlgmr.msra.gmra.mrb[0].mxu0 %v271_v9 }
  0xf4   :  { %v139_v11 = vpop.f32.mrb[0].mxu0 }
  0xf5   :  { %v146_v13 = vadd.f32 %v139_v11, %v31_v10  ;;  %v259_v14 = vpop.f32.mrb[1].mxu0 }
  0xf6   :  { %v142_v15 = vpop.f32.mrb[2].mxu0 }
  0xf7   :  { %149 = vst.msk [vmem:[#allocation2] sm:$0xff] %vm28_vm0, %v146_v13  ;;  %v147_v16 = vadd.f32 %v142_v15, %v32_v12  ;;  %v260_v17 = vpop.f32.mrb[3].mxu0 }
  0xf9   :  { %150 = vst.msk [vmem:[#allocation2 + $0x8] sm:$0xff] %vm28_vm0, %v147_v16 }
  0xfe   :  { %v154_v19 = vld [vmem:[#allocation2] sm:$0xff] }
  0xff   :  { %v163_v21 = vadd.f32 %v229_v18, %v154_v19 }
 0x100   :  { %v155_v22 = vld [vmem:[#allocation2 + $0x8] sm:$0xff] }
 0x101   :  { %v167_v24 = vadd.f32 %v165_v20, %v163_v21  ;;  %v164_v25 = vadd.f32 %v229_v18, %v155_v22 }
 0x103   :  { %v169_v26 = vsel %vm28_vm0, %v167_v24, 0.0  ;;  %v168_v27 = vadd.f32 %v166_v23, %v164_v25 }
 0x104   :  { %170 = vadd.xlane.f32.xlu0 %v169_v26 }
 0x105   :  { %v172_v28 = vsel %vm28_vm0, %v168_v27, 0.0 }
 0x108   :  { %173 = vadd.xlane.f32.xlu0 %v172_v28 }
 0x191   :  { %v171_v29 = vpop.xlane.xlu0 %170 }
 0x192   :  { %v176_v30 = vmul.f32 0.03125, %v171_v29 }
 0x194   :  { %v178_v31 = vsub.f32 %v167_v24, %v176_v30 }
 0x195   :  { %v174_v32 = vpop.xlane.xlu0 %173 }
 0x196   :  { %v177_v33 = vmul.f32 0.03125, %v174_v32  ;;  %v180_v34 = vmul.f32 %v178_v31, %v178_v31 }
 0x198   :  { %v179_v35 = vsub.f32 %v168_v27, %v177_v33  ;;  %v182_v36 = vsel %vm28_vm0, %v180_v34, 0.0 }
 0x199   :  { %183 = vadd.xlane.f32.xlu1 %v182_v36 }
 0x19a   :  { %v181_v37 = vmul.f32 %v179_v35, %v179_v35 }
 0x19c   :  { %v185_v38 = vsel %vm28_vm0, %v181_v37, 0.0 }
 0x19d   :  { %186 = vadd.xlane.f32.xlu1 %v185_v38 }
 0x226   :  { %v184_v39 = vpop.xlane.xlu1 %183 }
 0x227   :  { %v188_v40 = vmul.f32 0.03125, %v184_v39 }
 0x229   :  { %v190_v41 = vadd.f32 1e-05, %v188_v40 }
 0x22a   :  { %v187_v42 = vpop.xlane.xlu1 %186 }
 0x22b   :  { %272 = vrsqrt.f32 %v190_v41  ;;  %v189_v43 = vmul.f32 0.03125, %v187_v42 }
 0x22d   :  { %v191_v44 = vadd.f32 1e-05, %v189_v43 }
 0x22f   :  { %274 = vrsqrt.f32 %v191_v44 }
 0x235   :  { %v273_v45 = vpop.eup %272 }
 0x236   :  { %v194_v47 = vmul.f32 %v273_v45, %v178_v31 }
 0x238   :  { %v203_v49 = vmul.f32 %v230_v46, %v194_v47 }
 0x239   :  { %v275_v50 = vpop.eup %274 }
 0x23a   :  { %v212_v51 = vadd.f32 %v231_v48, %v203_v49  ;;  %v195_v52 = vmul.f32 %v275_v50, %v179_v35 }
 0x23c   :  { %214 = vst.msk [vmem:[%s377_s6] sm:$0xff] %vm28_vm0, %v212_v51  ;;  %v204_v53 = vmul.f32 %v230_v46, %v195_v52 }
 0x23e   :  { %v213_v54 = vadd.f32 %v231_v48, %v204_v53 }
 0x240   :  { %215 = vst.msk [vmem:[%s377_s6 + $0x8] sm:$0xff] %vm28_vm0, %v213_v54 }

// kernel: transformer_forward.34
= control target key start
LH: loop header
LB: loop body
LE: loop exit
PB: predicated region body
PF: predicated region fallthrough
CT: control target
= control target key end

     0   :  { %v128_v0 = vmov 0.0   ;;  %vm129_vm0 = vmmov 0   ;;  %vm33_vm1 = vcmask 261120   ;;  %vm86_vm2 = vcmask 257024   ;;  %s130_s21 = smov 96   ;;  %s175_s1 = inlined_call_operand.vmem [shape: bf16[32,64], index: 1, kind: input, shape index: {}]   ;;  %s176_s0 = inlined_call_operand.vmem [shape: f32[16,32], index: 0, kind: input, shape index: {}]   ;;  %s177_s2 = inlined_call_operand.vmem [shape: bf16[16,32], index: 2, kind: output, shape index: {0}]   ;;  %s178_s3 = inlined_call_operand.vmem [shape: bf16[16,32], index: 3, kind: output, shape index: {1}]  }
   0x1   :  { %115 = vmatprep.subr.bf16.mxu0 %v128_v0  ;;  %v126_v1 = vld [vmem:[%s175_s1] sm:$0xff]   ;;  %119 = vmatprep.mubr.msk.bf16.mxu0 %vm129_vm0, %v128_v0  ;;  %v127_v2 = vld [vmem:[%s175_s1 + $0x8] sm:$0xff]  }
   0x2   :  { %116 = vmatpush3.bf16.msra.mxu0 %v126_v1  ;;  %v14_v3 = vld [vmem:[%s176_s0] sm:$0xff]  ;;  %v15_v4 = vld [vmem:[%s176_s0 + $0x8] sm:$0xff] }
   0x3   :  { %117 = vmatprep.subr.bf16.mxu0 %v128_v0  ;;  %v16_v5 = vpack.c.bf16 %v15_v4, %v14_v3 }
   0x6   :  { %118 = vmatpush3.bf16.msra.mxu0 %v127_v2 }
   0x9   :  { %120 = vmatmul.mubr.msk.bf16.vlgmr.msra.gmra.mrb[0].mxu0 %vm33_vm1, %v16_v5 }
  0xdc   :  { %v71_v6 = vpop.f32.mrb[0].mxu0 }
  0xdd   :  { %v110_v7 = vpack.c.bf16 %v71_v6, %v71_v6  ;;  %v121_v8 = vpop.f32.mrb[1].mxu0 }
  0xde   :  { %v74_v9 = vpop.f32.mrb[2].mxu0 }
  0xdf   :  { %87 = vst.msk [vmem:[%s177_s2] sm:$0xf] %vm86_vm2, %v110_v7  ;;  %v111_v10 = vpack.c.bf16 %v74_v9, %v74_v9  ;;  %89 = vrot.lane.b32.xlu0 %v110_v7, %s130_s21  ;;  %v122_v11 = vpop.f32.mrb[3].mxu0 }
  0xe1   :  { %88 = vst.msk [vmem:[%s177_s2 + $0x4] sm:$0xf] %vm86_vm2, %v111_v10 }
  0xe3   :  { %91 = vrot.lane.b32.xlu0 %v111_v10, %s130_s21 }
 0x151   :  { %v90_v12 = vpop.permute.xlu0 %89 }
 0x152   :  { %95 = vst.msk [vmem:[%s178_s3] sm:$0xf] %vm86_vm2, %v90_v12 }
 0x155   :  { %v92_v13 = vpop.permute.xlu0 %91 }
 0x156   :  { %96 = vst.msk [vmem:[%s178_s3 + $0x4] sm:$0xf] %vm86_vm2, %v92_v13 }

// kernel: transformer_forward.45
= control target key start
LH: loop header
LB: loop body
LE: loop exit
PB: predicated region body
PF: predicated region fallthrough
CT: control target
= control target key end

     0   :  { %v172_v1 = vmov 0.0   ;;  %vm173_vm0 = vmmov 0   ;;  %vm20_vm1 = vcmask 523264   ;;  %s230_s0 = inlined_call_operand.vmem [shape: f32[16,32], index: 0, kind: input, shape index: {}]   ;;  %s231_s1 = inlined_call_operand.vmem [shape: bf16[32,64], index: 1, kind: input, shape index: {}]   ;;  %s232_s2 = inlined_call_operand.vmem [shape: f32[1,64], index: 2, kind: input, shape index: {}]   ;;  %s233_s3 = inlined_call_operand.hbm [shape: f32[16,64], index: 3, kind: output, shape index: {}]  }
   0x1   :  { %v146_v0 = vld [vmem:[%s231_s1] sm:$0xff]   ;;  %133 = vmatprep.subr.bf16.mxu0 %v172_v1  ;;  %v147_v2 = vld [vmem:[%s231_s1 + $0x8] sm:$0xff]   ;;  %137 = vmatprep.mubr.msk.bf16.mxu0 %vm173_vm0, %v172_v1 }
   0x2   :  { %134 = vmatpush3.bf16.msra.mxu0 %v146_v0  ;;  %v25_v3 = vld [vmem:[%s230_s0] sm:$0xff]  ;;  %v26_v4 = vld [vmem:[%s230_s0 + $0x8] sm:$0xff] }
   0x3   :  { %8 = vsyncpa [#allocation4], 0  ;;  %135 = vmatprep.subr.bf16.mxu0 %v172_v1  ;;  %21 = vst.msk [vmem:[#allocation2] sm:$0xff] %vm20_vm1, %v172_v1  ;;  %v27_v5 = vpack.c.bf16 %v26_v4, %v25_v3  ;;  %vm44_vm2 = vcmask 261120   ;;  %v129_v14 = vld [vmem:[%s232_s2] ss:$0 sm:$0xff] }
   0x4   :  { %22 = vst.msk [vmem:[#allocation2 + $0x8] sm:$0xff] %vm20_vm1, %v172_v1  ;;  %s174_s20 = smov [#allocation3]  }
   0x5   :  { %s115_s21 = sshll.u32 %s174_s20, 4  ;;  %s116_s21 = int_to_ptr.vmem [resolvable:$true] %s115_s21 }
   0x6   :  { %136 = vmatpush3.bf16.msra.mxu0 %v147_v2  ;;  %s148_s22 = scalar_lea.vmem %s116_s21, 256  ;;  %p153_p1 = scmp.lt.s32.totalorder %s116_s21, %s116_s21 }
   0x7   :  { %p149_p0 = scmp.ne.s32.totalorder %s116_s21, %s148_s22  ;;  %p154_p2 = scmp.lt.s32.totalorder %s148_s22, %s148_s22 }
   0x9   :  { %138 = vmatmul.mubr.msk.bf16.vlgmr.msra.gmra.mrb[0].mxu0 %vm44_vm2, %v27_v5  ;;  %p155_p3 = por %p154_p2, %p153_p1 }
   0xa   :  { %v23_v6 = vld [vmem:[#allocation2] sm:$0xff] }
   0xb   :  { %v24_v8 = vld [vmem:[#allocation2 + $0x8] sm:$0xff]  ;;  %p156_p4 = pnand %p155_p3, %p149_p0 }
  0xdc   :  { %v82_v7 = vpop.f32.mrb[0].mxu0 }
  0xdd   :  { %v89_v9 = vadd.f32 %v82_v7, %v23_v6  ;;  %v139_v10 = vpop.f32.mrb[1].mxu0 }
  0xde   :  { %v85_v11 = vpop.f32.mrb[2].mxu0 }
  0xdf   :  { %92 = vst.msk [vmem:[#allocation2] sm:$0xff] %vm20_vm1, %v89_v9  ;;  %v90_v12 = vadd.f32 %v85_v11, %v24_v8  ;;  %v140_v13 = vpop.f32.mrb[3].mxu0 }
  0xe1   :  { %93 = vst.msk [vmem:[#allocation2 + $0x8] sm:$0xff] %vm20_vm1, %v90_v12 }
  0xe6   :  { %v97_v15 = vld [vmem:[#allocation2] sm:$0xff] }
  0xe7   :  { %v106_v16 = vadd.f32 %v129_v14, %v97_v15 }
  0xe8   :  { %v98_v17 = vld [vmem:[#allocation2 + $0x8] sm:$0xff] }
  0xe9   :  { %v107_v18 = vadd.f32 %v129_v14, %v98_v17  ;;  %108 = vst.msk [vmem:[#allocation3] sm:$0xff] %vm20_vm1, %v106_v16 }
  0xeb   :  { %109 = vst.msk [vmem:[#allocation3 + $0x8] sm:$0xff] %vm20_vm1, %v107_v18 }
  0xec   :  { %159 = shalt.err (!%p156_p4)
}
  0xed   :  { %s160_s24 = scalar_lea.hbm %s233_s3, 256 }
  0xee   :  { %p161_p5 = scmp.ne.s32.totalorder %s233_s3, %s160_s24  ;;  %p164_p6 = scmp.lt.u32.totalorder %s160_s24, %s233_s3 }
  0xf0   :  { %p166_p7 = pnand %p164_p6, %p161_p5 }
  0xf2   :  { %169 = shalt.err (!%p166_p7)
}
  0xf3   :  { %s175_s29 = smov 128   ;;  %s176_s30 = smov 8  }
  0xf4   :  { %121 = dma.vmem_to_hbm [thread:$0]  %s116_s21, 256, %s233_s3, [#allocation4], %s175_s29, %s175_s29, %s176_s30  }
  0xf5   :  { %170 = dma.done.wait [#allocation4], 256  }
  0xf6   :  { %171 = vsyncadd [#allocation4], 4294967040 }
  0xf7   :  { %125 = vsyncpa [#allocation4], 1 }

</bundles_post_ra>
